<compile_context>
chip_gen: v6e
topology: v6e:2x2x1
jax: 0.10.0
libtpu: 0.0.40
codegen_flags: <defaults>
</compile_context>

<pallas_src>
import functools

import jax
import jax.numpy as jnp
from jax import lax
from jax.experimental import pallas as pl
from jax.experimental.pallas import tpu as pltpu


# ----------------------------- tiling heuristic ------------------------------

def _pick_row_tile(H, W, cin, cout, itemsize, pool):
    """Largest divisor of H (even if pooling) whose per-tile buffers fit a
    modest VMEM budget, so tiles stay well within the scoped-VMEM limits on
    v5e/v6e/v7x."""
    budget = 2 * 1024 * 1024                      # bytes per dominant buffer
    per_row = max((W + 2) * cin * itemsize, W * cout * 4)
    max_rows = max(2 if pool else 1, budget // max(per_row, 1))
    best = 2 if pool else 1
    for ti in range(1, H + 1):
        if H % ti:
            continue
        if pool and ti % 2:
            continue
        if ti <= max_rows:
            best = ti
    return best


# ------------------- conv3x3 + bias + ReLU (+ fused maxpool) -----------------

def _conv3x3_kernel(xb_ref, ht_ref, hb_ref, w_ref, b_ref, o_ref,
                    xs_ref, acc_ref, *, fuse_pool, im2col):
    # xb_ref : (1, ti, W, Cin)     row tile of the NHWC input (no halo, no pad)
    # ht_ref : (1, 1, W, Cin)      row above the tile (zeros at the top edge)
    # hb_ref : (1, 1, W, Cin)      row below the tile (zeros at the bottom edge)
    # w_ref  : (3, 3, Cin, Cout)   HWIO weights, or (9*Cin, Cout) when im2col
    # b_ref  : (1, Cout)           f32 bias
    # o_ref  : (1, t_out, W_out, Cout)   output tile (pooled if fuse_pool)
    # xs_ref : (ti+2, W+2, Cin)    VMEM scratch: zero-padded tile with halo
    # acc_ref: (ti*W, Cout)        f32 accumulator scratch
    _, ti, W, cin = xb_ref.shape
    cout = o_ref.shape[3]

    # Assemble the zero-padded tile in VMEM (replaces the HBM-side jnp.pad).
    xs_ref[...] = jnp.zeros_like(xs_ref)
    xs_ref[0, pl.ds(1, W), :] = ht_ref[0, 0]
    xs_ref[ti + 1, pl.ds(1, W), :] = hb_ref[0, 0]
    xs_ref[pl.ds(1, ti), pl.ds(1, W), :] = xb_ref[0]

    if im2col:
        # Tiny-Cin layers (e.g. the Cin=3 first conv): one MXU matmul with
        # K = 9*Cin instead of 9 matmuls with K = Cin.
        cols = [xs_ref[pl.ds(dy, ti), pl.ds(dx, W), :].reshape(ti * W, cin)
                for dy in range(3) for dx in range(3)]
        patches = jnp.concatenate(cols, axis=1)            # (ti*W, 9*Cin)
        acc_ref[...] = jnp.dot(patches, w_ref[...],
                               preferred_element_type=jnp.float32)
    else:
        acc_ref[...] = jnp.zeros_like(acc_ref)
        for dy in range(3):                                # static 3x3 tap loop
            for dx in range(3):
                patch = xs_ref[pl.ds(dy, ti), pl.ds(dx, W), :].reshape(ti * W, cin)
                acc_ref[...] += jnp.dot(patch, w_ref[dy, dx],
                                        preferred_element_type=jnp.float32)

    z = jnp.maximum(acc_ref[...] + b_ref[...], 0.0)        # bias + ReLU (f32)
    if fuse_pool:
        wo = W // 2
        z = z.reshape(ti // 2, 2, wo, 2, cout)
        z = jnp.max(jnp.max(z, axis=3), axis=1)            # fused 2x2 max-pool
        o_ref[0] = z.astype(o_ref.dtype)
    else:
        o_ref[0] = z.reshape(ti, W, cout).astype(o_ref.dtype)


def conv3x3_relu(x_nhwc, w_hwio, b, *, pool=False, row_tile=None,
                 compute_dtype=None):
    """3x3 conv (padding=1) + bias + ReLU, optionally fused with MaxPool2d(2,2)."""
    N, H, W, Cin = x_nhwc.shape
    Cout = w_hwio.shape[-1]
    if pool:
        # TODO(synk): PyTorch MaxPool2d(2,2) floors odd sizes; only even H/W here.
        assert H % 2 == 0 and W % 2 == 0, (H, W)

    cdtype = compute_dtype if compute_dtype is not None else x_nhwc.dtype
    itemsize = jnp.dtype(cdtype).itemsize
    ti = row_tile if row_tile is not None else _pick_row_tile(
        H, W, Cin, Cout, itemsize, pool)
    assert H % ti == 0 and (not pool or ti % 2 == 0), (H, ti, pool)
    nI = H // ti

    x = x_nhwc.astype(cdtype)
    w = w_hwio.astype(cdtype)
    b2 = b.astype(jnp.float32).reshape(1, Cout)

    # One-row halos for every row tile (zeros at the image top/bottom).  These
    # are ~2/ti of the activation, vs. the full padded copy jnp.pad would write.
    zrow = jnp.zeros((N, 1, W, Cin), cdtype)
    if nI > 1:
        top = x[:, ti - 1::ti][:, :nI - 1]       # rows ti-1, 2ti-1, ...
        bot = x[:, ti::ti]                       # rows ti, 2ti, ...
        ht = jnp.concatenate([zrow, top], axis=1)
        hb = jnp.concatenate([bot, zrow], axis=1)
    else:
        ht = zrow
        hb = zrow

    im2col = Cin <= 4                            # tiny-Cin first layer
    if im2col:
        w_in = w.reshape(9 * Cin, Cout)
        w_spec = pl.BlockSpec((9 * Cin, Cout), lambda n, i: (0, 0))
    else:
        w_in = w
        w_spec = pl.BlockSpec((3, 3, Cin, Cout), lambda n, i: (0, 0, 0, 0))

    t_out = ti // 2 if pool else ti
    H_out = H // 2 if pool else H
    W_out = W // 2 if pool else W

    kernel = functools.partial(_conv3x3_kernel, fuse_pool=pool, im2col=im2col)

    return pl.pallas_call(
        kernel,
        out_shape=jax.ShapeDtypeStruct((N, H_out, W_out, Cout), cdtype),
        grid_spec=pltpu.PrefetchScalarGridSpec(
            num_scalar_prefetch=0,
            grid=(N, nI),
            in_specs=[
                pl.BlockSpec((1, ti, W, Cin), lambda n, i: (n, i, 0, 0)),
                pl.BlockSpec((1, 1, W, Cin), lambda n, i: (n, i, 0, 0)),
                pl.BlockSpec((1, 1, W, Cin), lambda n, i: (n, i, 0, 0)),
                w_spec,
                pl.BlockSpec((1, Cout), lambda n, i: (0, 0)),
            ],
            out_specs=pl.BlockSpec((1, t_out, W_out, Cout),
                                   lambda n, i: (n, i, 0, 0)),
            scratch_shapes=[
                pltpu.VMEM((ti + 2, W + 2, Cin), cdtype),
                pltpu.VMEM((ti * W, Cout), jnp.float32),
            ],
        ),
        compiler_params=pltpu.CompilerParams(
            dimension_semantics=("parallel", "parallel"),
            vmem_limit_bytes=32 * 1024 * 1024,
        ),
    )(x, ht, hb, w_in, b2)


# -------------------- standalone maxpool 2x2 (unfused path) ------------------

def _maxpool2x2_kernel(x_ref, o_ref):
    # x_ref: (1, ti, W, C)   o_ref: (1, ti//2, W//2, C)
    _, ti, W, C = x_ref.shape
    x = x_ref[0].reshape(ti // 2, 2, W // 2, 2, C)
    o_ref[0] = jnp.max(jnp.max(x, axis=3), axis=1)


def maxpool2x2(x_nhwc, *, row_tile=None):
    """MaxPool2d(kernel=2, stride=2) for an 'M' not preceded by a conv."""
    N, H, W, C = x_nhwc.shape
    # TODO(synk): PyTorch floors odd sizes; only even H/W supported here.
    assert H % 2 == 0 and W % 2 == 0, (H, W)
    itemsize = jnp.dtype(x_nhwc.dtype).itemsize
    ti = row_tile if row_tile is not None else _pick_row_tile(
        H, W, C, C, itemsize, True)
    nI = H // ti
    return pl.pallas_call(
        _maxpool2x2_kernel,
        out_shape=jax.ShapeDtypeStruct((N, H // 2, W // 2, C), x_nhwc.dtype),
        grid_spec=pltpu.PrefetchScalarGridSpec(
            num_scalar_prefetch=0,
            grid=(N, nI),
            in_specs=[pl.BlockSpec((1, ti, W, C), lambda n, i: (n, i, 0, 0))],
            out_specs=pl.BlockSpec((1, ti // 2, W // 2, C),
                                   lambda n, i: (n, i, 0, 0)),
        ),
        compiler_params=pltpu.CompilerParams(
            dimension_semantics=("parallel", "parallel"),
            vmem_limit_bytes=32 * 1024 * 1024,
        ),
    )(x_nhwc)


# ------------------------------ VGG_features ---------------------------------

class VGGFeaturesPallas:
    """Mirror of the PyTorch VGG_features module (batch_norm=False)."""

    def __init__(self, cfg, batch_norm=False, key=None, compute_dtype=None):
        if batch_norm:
            # TODO(synk): BatchNorm2d (training-mode batch statistics) not implemented.
            raise NotImplementedError("batch_norm=True is not supported")
        if key is None:
            key = jax.random.PRNGKey(0)
        self.cfg = list(cfg)
        self.compute_dtype = compute_dtype
        self.params = []
        in_ch = 3  # make_layers hardcodes in_channels = 3
        for v in self.cfg:
            if v == 'M':
                self.params.append(None)
            else:
                key, kw, kb = jax.random.split(key, 3)
                fan_in = in_ch * 3 * 3
                bound = 1.0 / (fan_in ** 0.5)  # PyTorch Conv2d default init range
                w = jax.random.uniform(kw, (3, 3, in_ch, v), jnp.float32,
                                       -bound, bound)   # HWIO
                bb = jax.random.uniform(kb, (v,), jnp.float32, -bound, bound)
                self.params.append((w, bb))
                in_ch = v
        self.backbone_features = None

    def forward(self, x_nchw):
        # Accepts NCHW like PyTorch; runs NHWC internally.
        x = jnp.transpose(x_nchw, (0, 2, 3, 1))
        feats_nhwc = []
        i = 0
        n = len(self.cfg)
        while i < n:
            v = self.cfg[i]
            if v == 'M':
                x = maxpool2x2(x)
                feats_nhwc.append(x)
                i += 1
            else:
                w, bb = self.params[i]
                fuse = (i + 1 < n) and (self.cfg[i + 1] == 'M')
                x = conv3x3_relu(x, w, bb, pool=fuse,
                                 compute_dtype=self.compute_dtype)
                if fuse:
                    feats_nhwc.append(x)   # pool fused into the conv epilogue
                    i += 2
                else:
                    i += 1
        # PyTorch keeps NCHW feature maps; transpose once, after the compute
        # loop, so layout traffic doesn't interleave with the conv pipeline.
        self.backbone_features = [x_nchw] + [
            jnp.transpose(f, (0, 3, 1, 2)) for f in feats_nhwc]
        return jnp.transpose(x, (0, 3, 1, 2))   # back to NCHW


# --------------------------- pure-JAX reference -------------------------------

def _ref_conv_block(x_nchw, w_hwio, b, pool):
    w_oihw = jnp.transpose(w_hwio, (3, 2, 0, 1))
    y = lax.conv_general_dilated(
        x_nchw, w_oihw, window_strides=(1, 1), padding=((1, 1), (1, 1)),
        dimension_numbers=('NCHW', 'OIHW', 'NCHW'))
    y = jnp.maximum(y + b.reshape(1, -1, 1, 1), 0.0)
    if pool:
        y = lax.reduce_window(y, -jnp.inf, lax.max,
                              (1, 1, 2, 2), (1, 1, 2, 2), 'VALID')
    return y


def ref_forward(x_nchw, model):
    x = x_nchw
    for v, p in zip(model.cfg, model.params):
        if v == 'M':
            x = lax.reduce_window(x, -jnp.inf, lax.max,
                                  (1, 1, 2, 2), (1, 1, 2, 2), 'VALID')
        else:
            w, bb = p
            x = _ref_conv_block(x, w, bb, pool=False)
    return x


if __name__ == "__main__":
    key = jax.random.PRNGKey(0)
    kx, kp = jax.random.split(key)

    cfg = [8, 'M', 16, 'M']                                   # small VGG-style config
    x = jax.random.normal(kx, (2, 3, 16, 16), jnp.float32)    # NCHW, like PyTorch

    # --- full model, f32 compute (tight check) ---
    model = VGGFeaturesPallas(cfg, batch_norm=False, key=kp)
    out = jax.block_until_ready(model.forward(x))
    assert out.shape == (2, 16, 4, 4), out.shape
    assert len(model.backbone_features) == 3
    ref = ref_forward(x, model)
    assert jnp.allclose(out, ref, atol=1e-4, rtol=1e-4), \
        float(jnp.max(jnp.abs(out - ref)))

    # --- spatial row tiling + halo paths, exercised explicitly ---
    x_nhwc = jnp.transpose(x, (0, 2, 3, 1))
    w0, b0 = model.params[0]
    w1, b1 = model.params[2]

    # im2col (Cin=3) conv + fused pool, 4-row tiles (interior halos).
    got = jax.block_until_ready(conv3x3_relu(x_nhwc, w0, b0, pool=True, row_tile=4))
    want = jnp.transpose(_ref_conv_block(x, w0, b0, pool=True), (0, 2, 3, 1))
    assert jnp.allclose(got, want, atol=1e-4, rtol=1e-4), \
        float(jnp.max(jnp.abs(got - want)))

    # im2col conv, no pool, 8-row tiles.
    got = jax.block_until_ready(conv3x3_relu(x_nhwc, w0, b0, pool=False, row_tile=8))
    want = jnp.transpose(_ref_conv_block(x, w0, b0, pool=False), (0, 2, 3, 1))
    assert jnp.allclose(got, want, atol=1e-4, rtol=1e-4), \
        float(jnp.max(jnp.abs(got - want)))

    # 9-tap (Cin=8) conv + fused pool, 4-row tiles.
    a1 = _ref_conv_block(x, w0, b0, pool=True)                # (2, 8, 8, 8) NCHW
    a1_nhwc = jnp.transpose(a1, (0, 2, 3, 1))
    got = jax.block_until_ready(conv3x3_relu(a1_nhwc, w1, b1, pool=True, row_tile=4))
    want = jnp.transpose(_ref_conv_block(a1, w1, b1, pool=True), (0, 2, 3, 1))
    assert jnp.allclose(got, want, atol=1e-4, rtol=1e-4), \
        float(jnp.max(jnp.abs(got - want)))

    # standalone (unfused) maxpool kernel.
    got = jax.block_until_ready(maxpool2x2(x_nhwc))
    want = jnp.transpose(
        lax.reduce_window(x, -jnp.inf, lax.max, (1, 1, 2, 2), (1, 1, 2, 2), 'VALID'),
        (0, 2, 3, 1))
    assert jnp.allclose(got, want)

    # --- full model, bf16 MXU compute (loose check) ---
    model_bf16 = VGGFeaturesPallas(cfg, batch_norm=False, key=kp,
                                   compute_dtype=jnp.bfloat16)
    out_bf = jax.block_until_ready(model_bf16.forward(x))
    assert jnp.allclose(out_bf.astype(jnp.float32), ref, atol=1e-1, rtol=1e-1), \
        float(jnp.max(jnp.abs(out_bf.astype(jnp.float32) - ref)))

    print("KERNEL_OK")
</pallas_src>

<mosaic_0001>
module attributes {stable_mosaic.version = 11 : i64} {
  func.func @_conv3x3_kernel(%arg0: i32, %arg1: i32, %arg2: memref<1x16x16x3xf32, #tpu.memory_space<vmem>>, %arg3: memref<1x1x16x3xf32, #tpu.memory_space<vmem>>, %arg4: memref<1x1x16x3xf32, #tpu.memory_space<vmem>>, %arg5: memref<27x8xf32, #tpu.memory_space<vmem>>, %arg6: memref<1x8xf32, #tpu.memory_space<vmem>>, %arg7: memref<1x8x8x8xf32, #tpu.memory_space<vmem>>, %arg8: memref<18x18x3xf32, #tpu.memory_space<vmem>>, %arg9: memref<256x8xf32, #tpu.memory_space<vmem>>) attributes {dimension_semantics = [#tpu.dimension_semantics<parallel>, #tpu.dimension_semantics<parallel>], iteration_bounds = array<i64: 2, 1>, scalar_prefetch = 0 : i64, scratch_operands = 2 : i64, tpu.core_type = #tpu.core_type<tc>, window_params = [{transform_indices = @transform_0, window_bounds = array<i64: 1, 16, 16, 3>}, {transform_indices = @transform_1, window_bounds = array<i64: 1, 1, 16, 3>}, {transform_indices = @transform_2, window_bounds = array<i64: 1, 1, 16, 3>}, {pipeline_mode = #tpu.pipeline_mode<synchronous>, transform_indices = @transform_3, window_bounds = array<i64: 27, 8>}, {pipeline_mode = #tpu.pipeline_mode<synchronous>, transform_indices = @transform_4, window_bounds = array<i64: 1, 8>}, {transform_indices = @transform_5, window_bounds = array<i64: 1, 8, 8, 8>}]} {
    %cst = arith.constant 0.000000e+00 : f32
    %0 = vector.broadcast %cst : f32 to vector<18x18x3xf32>
    %c0 = arith.constant 0 : index
    %c0_0 = arith.constant 0 : index
    %c0_1 = arith.constant 0 : index
    %1 = vector.load %arg8[%c0, %c0_0, %c0_1] : memref<18x18x3xf32, #tpu.memory_space<vmem>>, vector<18x18x3xf32>
    tpu.vector_store %arg8[%c0, %c0_0, %c0_1], %0 {strides = array<i32>} : memref<18x18x3xf32, #tpu.memory_space<vmem>>, vector<18x18x3xf32>,
    %c0_2 = arith.constant 0 : index
    %c0_3 = arith.constant 0 : index
    %c0_4 = arith.constant 0 : index
    %c0_5 = arith.constant 0 : index
    %2 = vector.load %arg3[%c0_2, %c0_3, %c0_4, %c0_5] : memref<1x1x16x3xf32, #tpu.memory_space<vmem>>, vector<1x1x16x3xf32>
    %3 = vector.shape_cast %2 : vector<1x1x16x3xf32> to vector<16x3xf32>
    %c0_6 = arith.constant 0 : index
    %c1 = arith.constant 1 : index
    %c0_7 = arith.constant 0 : index
    %4 = vector.load %arg8[%c0_6, %c1, %c0_7] : memref<18x18x3xf32, #tpu.memory_space<vmem>>, vector<1x16x3xf32>
    %5 = vector.shape_cast %4 : vector<1x16x3xf32> to vector<16x3xf32>
    %6 = vector.shape_cast %3 : vector<16x3xf32> to vector<1x16x3xf32>
    tpu.vector_store %arg8[%c0_6, %c1, %c0_7], %6 {strides = array<i32>} : memref<18x18x3xf32, #tpu.memory_space<vmem>>, vector<1x16x3xf32>,
    %c0_8 = arith.constant 0 : index
    %c0_9 = arith.constant 0 : index
    %c0_10 = arith.constant 0 : index
    %c0_11 = arith.constant 0 : index
    %7 = vector.load %arg4[%c0_8, %c0_9, %c0_10, %c0_11] : memref<1x1x16x3xf32, #tpu.memory_space<vmem>>, vector<1x1x16x3xf32>
    %8 = vector.shape_cast %7 : vector<1x1x16x3xf32> to vector<16x3xf32>
    %c17 = arith.constant 17 : index
    %c1_12 = arith.constant 1 : index
    %c0_13 = arith.constant 0 : index
    %9 = vector.load %arg8[%c17, %c1_12, %c0_13] : memref<18x18x3xf32, #tpu.memory_space<vmem>>, vector<1x16x3xf32>
    %10 = vector.shape_cast %9 : vector<1x16x3xf32> to vector<16x3xf32>
    %11 = vector.shape_cast %8 : vector<16x3xf32> to vector<1x16x3xf32>
    tpu.vector_store %arg8[%c17, %c1_12, %c0_13], %11 {strides = array<i32>} : memref<18x18x3xf32, #tpu.memory_space<vmem>>, vector<1x16x3xf32>,
    %c0_14 = arith.constant 0 : index
    %c0_15 = arith.constant 0 : index
    %c0_16 = arith.constant 0 : index
    %c0_17 = arith.constant 0 : index
    %12 = vector.load %arg2[%c0_14, %c0_15, %c0_16, %c0_17] : memref<1x16x16x3xf32, #tpu.memory_space<vmem>>, vector<1x16x16x3xf32>
    %13 = vector.shape_cast %12 : vector<1x16x16x3xf32> to vector<16x16x3xf32>
    %c1_18 = arith.constant 1 : index
    %c1_19 = arith.constant 1 : index
    %c0_20 = arith.constant 0 : index
    %14 = vector.load %arg8[%c1_18, %c1_19, %c0_20] : memref<18x18x3xf32, #tpu.memory_space<vmem>>, vector<16x16x3xf32>
    tpu.vector_store %arg8[%c1_18, %c1_19, %c0_20], %13 {strides = array<i32>} : memref<18x18x3xf32, #tpu.memory_space<vmem>>, vector<16x16x3xf32>,
    %c0_21 = arith.constant 0 : index
    %c0_22 = arith.constant 0 : index
    %c0_23 = arith.constant 0 : index
    %15 = vector.load %arg8[%c0_21, %c0_22, %c0_23] : memref<18x18x3xf32, #tpu.memory_space<vmem>>, vector<16x16x3xf32>
    %16 = vector.shape_cast %15 : vector<16x16x3xf32> to vector<256x3xf32>
    %c0_24 = arith.constant 0 : index
    %c1_25 = arith.constant 1 : index
    %c0_26 = arith.constant 0 : index
    %17 = vector.load %arg8[%c0_24, %c1_25, %c0_26] : memref<18x18x3xf32, #tpu.memory_space<vmem>>, vector<16x16x3xf32>
    %18 = vector.shape_cast %17 : vector<16x16x3xf32> to vector<256x3xf32>
    %c0_27 = arith.constant 0 : index
    %c2 = arith.constant 2 : index
    %c0_28 = arith.constant 0 : index
    %19 = vector.load %arg8[%c0_27, %c2, %c0_28] : memref<18x18x3xf32, #tpu.memory_space<vmem>>, vector<16x16x3xf32>
    %20 = vector.shape_cast %19 : vector<16x16x3xf32> to vector<256x3xf32>
    %c1_29 = arith.constant 1 : index
    %c0_30 = arith.constant 0 : index
    %c0_31 = arith.constant 0 : index
    %21 = vector.load %arg8[%c1_29, %c0_30, %c0_31] : memref<18x18x3xf32, #tpu.memory_space<vmem>>, vector<16x16x3xf32>
    %22 = vector.shape_cast %21 : vector<16x16x3xf32> to vector<256x3xf32>
    %c1_32 = arith.constant 1 : index
    %c1_33 = arith.constant 1 : index
    %c0_34 = arith.constant 0 : index
    %23 = vector.load %arg8[%c1_32, %c1_33, %c0_34] : memref<18x18x3xf32, #tpu.memory_space<vmem>>, vector<16x16x3xf32>
    %24 = vector.shape_cast %23 : vector<16x16x3xf32> to vector<256x3xf32>
    %c1_35 = arith.constant 1 : index
    %c2_36 = arith.constant 2 : index
    %c0_37 = arith.constant 0 : index
    %25 = vector.load %arg8[%c1_35, %c2_36, %c0_37] : memref<18x18x3xf32, #tpu.memory_space<vmem>>, vector<16x16x3xf32>
    %26 = vector.shape_cast %25 : vector<16x16x3xf32> to vector<256x3xf32>
    %c2_38 = arith.constant 2 : index
    %c0_39 = arith.constant 0 : index
    %c0_40 = arith.constant 0 : index
    %27 = vector.load %arg8[%c2_38, %c0_39, %c0_40] : memref<18x18x3xf32, #tpu.memory_space<vmem>>, vector<16x16x3xf32>
    %28 = vector.shape_cast %27 : vector<16x16x3xf32> to vector<256x3xf32>
    %c2_41 = arith.constant 2 : index
    %c1_42 = arith.constant 1 : index
    %c0_43 = arith.constant 0 : index
    %29 = vector.load %arg8[%c2_41, %c1_42, %c0_43] : memref<18x18x3xf32, #tpu.memory_space<vmem>>, vector<16x16x3xf32>
    %30 = vector.shape_cast %29 : vector<16x16x3xf32> to vector<256x3xf32>
    %c2_44 = arith.constant 2 : index
    %c2_45 = arith.constant 2 : index
    %c0_46 = arith.constant 0 : index
    %31 = vector.load %arg8[%c2_44, %c2_45, %c0_46] : memref<18x18x3xf32, #tpu.memory_space<vmem>>, vector<16x16x3xf32>
    %32 = vector.shape_cast %31 : vector<16x16x3xf32> to vector<256x3xf32>
    %33 = tpu.concatenate %16, %18, %20, %22, %24, %26, %28, %30, %32 in 1 : vector<256x3xf32>, vector<256x3xf32>, vector<256x3xf32>, vector<256x3xf32>, vector<256x3xf32>, vector<256x3xf32>, vector<256x3xf32>, vector<256x3xf32>, vector<256x3xf32> -> vector<256x27xf32>
    %c0_47 = arith.constant 0 : index
    %c0_48 = arith.constant 0 : index
    %34 = vector.load %arg5[%c0_47, %c0_48] : memref<27x8xf32, #tpu.memory_space<vmem>>, vector<27x8xf32>
    %cst_49 = arith.constant dense<0.000000e+00> : vector<256x8xf32>
    %35 = tpu.matmul %33, %34, %cst_49 {dimension_numbers = #tpu.dot_dimension_numbers<[1], [0], [0], [1], [0, 0, 1, 1], [], []>} : vector<256x27xf32>, vector<27x8xf32>, vector<256x8xf32> -> vector<256x8xf32>
    %c0_50 = arith.constant 0 : index
    %c0_51 = arith.constant 0 : index
    %36 = vector.load %arg9[%c0_50, %c0_51] : memref<256x8xf32, #tpu.memory_space<vmem>>, vector<256x8xf32>
    tpu.vector_store %arg9[%c0_50, %c0_51], %35 {strides = array<i32>} : memref<256x8xf32, #tpu.memory_space<vmem>>, vector<256x8xf32>,
    %c0_52 = arith.constant 0 : index
    %c0_53 = arith.constant 0 : index
    %37 = vector.load %arg9[%c0_52, %c0_53] : memref<256x8xf32, #tpu.memory_space<vmem>>, vector<256x8xf32>
    %c0_54 = arith.constant 0 : index
    %c0_55 = arith.constant 0 : index
    %38 = vector.load %arg6[%c0_54, %c0_55] : memref<1x8xf32, #tpu.memory_space<vmem>>, vector<1x8xf32>
    %39 = vector.broadcast %38 : vector<1x8xf32> to vector<256x8xf32>
    %40 = arith.addf %37, %39 : vector<256x8xf32>
    %cst_56 = arith.constant 0.000000e+00 : f32
    %41 = vector.broadcast %cst_56 : f32 to vector<256x8xf32>
    %42 = arith.maximumf %40, %41 : vector<256x8xf32>
    %43 = vector.shape_cast %42 : vector<256x8xf32> to vector<8x2x8x2x8xf32>
    %cst_57 = arith.constant dense<0xFF800000> : vector<8x2x8x8xf32>
    %44 = vector.multi_reduction <maximumf>, %43, %cst_57 [3] : vector<8x2x8x2x8xf32> to vector<8x2x8x8xf32>
    %cst_58 = arith.constant dense<0xFF800000> : vector<8x8x8xf32>
    %45 = vector.multi_reduction <maximumf>, %44, %cst_58 [1] : vector<8x2x8x8xf32> to vector<8x8x8xf32>
    %c0_59 = arith.constant 0 : index
    %c0_60 = arith.constant 0 : index
    %c0_61 = arith.constant 0 : index
    %c0_62 = arith.constant 0 : index
    %46 = vector.load %arg7[%c0_59, %c0_60, %c0_61, %c0_62] : memref<1x8x8x8xf32, #tpu.memory_space<vmem>>, vector<1x8x8x8xf32>
    %47 = vector.shape_cast %46 : vector<1x8x8x8xf32> to vector<8x8x8xf32>
    %48 = vector.shape_cast %45 : vector<8x8x8xf32> to vector<1x8x8x8xf32>
    tpu.vector_store %arg7[%c0_59, %c0_60, %c0_61, %c0_62], %48 {strides = array<i32>} : memref<1x8x8x8xf32, #tpu.memory_space<vmem>>, vector<1x8x8x8xf32>,
    return
  }
  func.func @transform_0(%arg0: i32, %arg1: i32) -> (i32, i32, i32, i32) {
    %c0_i32 = arith.constant 0 : i32
    %c0_i32_0 = arith.constant 0 : i32
    %c0_i32_1 = arith.constant 0 : i32
    return %arg0, %arg1, %c0_i32, %c0_i32_0 : i32, i32, i32, i32
  }
  func.func @transform_1(%arg0: i32, %arg1: i32) -> (i32, i32, i32, i32) {
    %c0_i32 = arith.constant 0 : i32
    %c0_i32_0 = arith.constant 0 : i32
    %c0_i32_1 = arith.constant 0 : i32
    return %arg0, %arg1, %c0_i32, %c0_i32_0 : i32, i32, i32, i32
  }
  func.func @transform_2(%arg0: i32, %arg1: i32) -> (i32, i32, i32, i32) {
    %c0_i32 = arith.constant 0 : i32
    %c0_i32_0 = arith.constant 0 : i32
    %c0_i32_1 = arith.constant 0 : i32
    return %arg0, %arg1, %c0_i32, %c0_i32_0 : i32, i32, i32, i32
  }
  func.func @transform_3(%arg0: i32, %arg1: i32) -> (i32, i32) {
    %c0_i32 = arith.constant 0 : i32
    %c0_i32_0 = arith.constant 0 : i32
    %c0_i32_1 = arith.constant 0 : i32
    return %c0_i32, %c0_i32_0 : i32, i32
  }
  func.func @transform_4(%arg0: i32, %arg1: i32) -> (i32, i32) {
    %c0_i32 = arith.constant 0 : i32
    %c0_i32_0 = arith.constant 0 : i32
    %c0_i32_1 = arith.constant 0 : i32
    return %c0_i32, %c0_i32_0 : i32, i32
  }
  func.func @transform_5(%arg0: i32, %arg1: i32) -> (i32, i32, i32, i32) {
    %c0_i32 = arith.constant 0 : i32
    %c0_i32_0 = arith.constant 0 : i32
    %c0_i32_1 = arith.constant 0 : i32
    return %arg0, %arg1, %c0_i32, %c0_i32_0 : i32, i32, i32, i32
  }
}

</mosaic_0001>

<bundles_post_ra>
// kernel: tpu_custom_call.1
= control target key start
LH: loop header
LB: loop body
LE: loop exit
PB: predicated region body
PF: predicated region fallthrough
CT: control target
= control target key end

     0   :  { %10 = vsyncpa [#allocation5], 0  ;;  %s7503_s0 = inlined_call_operand.vmem [shape: f32[2,16,16,3], index: 0, kind: input, shape index: {}]   ;;  %s7504_s1 = inlined_call_operand.vmem [shape: f32[2,1,16,3], index: 1, kind: input, shape index: {}]   ;;  %s7505_s2 = inlined_call_operand.vmem [shape: f32[2,1,16,3], index: 2, kind: input, shape index: {}]   ;;  %s7506_s3 = inlined_call_operand.vmem [shape: f32[27,8], index: 3, kind: input, shape index: {}]   ;;  %s7507_s4 = inlined_call_operand.vmem [shape: f32[1,8], index: 4, kind: input, shape index: {}]   ;;  %s7508_s5 = inlined_call_operand.hbm [shape: f32[2,8,8,8], index: 5, kind: output, shape index: {}]  }
   0x1   :  { %12 = vsyncpa [#allocation5 + $0x1], 0  ;;  %s4934_s18 = smov 0   ;;  %s4936_s19 = smov 0  }
   0x2   :  { %s4938_s20 = smov 0   ;;  %s4940_s21 = smov 0  }
   0x3   :  { %s4942_s22 = smov 0   ;;  %s4944_s23 = smov 0  }
   0x4 LB: > { %s4573_s24 = sadd.s32 4294967295, %s4889_s23   ;;  %s4574_s25 = sadd.s32 4294967294, %s4889_s23   ;;  %s4889_s23 = sphi %s4944_s23, %s18_s23   ;;  %s4885_s22 = sphi %s4942_s22, %s7765_s22   ;;  %s4881_s21 = sphi %s4940_s21, %s7764_s21   ;;  %s4877_s20 = sphi %s4938_s20, %s7763_s20   ;;  %s4873_s19 = sphi %s4936_s19, %s7762_s19   ;;  %s4869_s18 = sphi %s4934_s18, %s7761_s18  }
   0x5   : > { %s30_s26 = sadd.s32 1, %s4885_s22  ;;  %s165_s27 = sadd.s32 1, %s4877_s20 }
   0x6   : > { %p32_p0 = scmp.ge.s32.totalorder %s30_s26, 2  ;;  %p175_p1 = scmp.ne.s32.totalorder %s4877_s20, %s4873_s19 }
   0x7   : > { %p176_p2 = scmp.eq.s32.totalorder %s4573_s24, 1  ;;  %p181_p3 = scmp.ne.s32.totalorder %s4873_s19, %s4869_s18 }
   0x8   : > { %s7767_s26 = smov (%p32_p0, %s30_s26), 0  ;;  %p182_p5 = scmp.eq.s32.totalorder %s4574_s25, 1 }
   0x9   : > { %p4974_p4 = por %p176_p2, %p175_p1  ;;  %s160_s29 = ssub.s32 %s4885_s22, %s7767_s26 }
   0xa   : > { %p4577_p6 = scmp.ge.s32.totalorder %s4889_s23, 1  ;;  %p163_p7 = scmp.eq.s32.totalorder %s160_s29, 0 }
   0xb   : > { %p4981_p8 = por %p182_p5, %p181_p3  ;;  %p244_p9 = scmp.lt.s32.totalorder %s4889_s23, 3 }
   0xc   : > { %s4987_s6 = scalar_select %p163_p7, %s4877_s20, %s165_s27  }
   0xd   : > { %p245_p10 = pnand %p4577_p6, %p244_p9 }
   0xf   : > { %248 = sbr.rel (%p245_p10) target bundleno = 989 (0x3dd), region = 40 }
  0x14   : > { %p296_p11 = scmp.lt.s32.totalorder %s4881_s21, 1  ;;  %vm325_vm0 = vcmask 23552   ;;  %vm328_vm1 = vcmask 17408   ;;  %v4891_v0 = vmov 0.0   ;;  %s4892_s16 = smov 3   ;;  %vm1800_vm2 = vcmask 48128  }
  0x15   : > { %326 = vst.msk [vmem:[#allocation2] sm:$0xff] %vm325_vm0, %v4891_v0  ;;  %327 = vst.msk [vmem:[#allocation2 + $0x8] sm:$0xff] %vm325_vm0, %v4891_v0  ;;  %s4893_s17 = smov 6   ;;  %s4894_s24 = smov 9   ;;  %vm2132_vm3 = vcmask 1042432   ;;  %vm1833_vm4 = vcmask 72704  }
  0x16   : > { %330 = vst.msk [vmem:[#allocation2 + $0x18] sm:$0xff] %vm325_vm0, %v4891_v0  ;;  %331 = vst.msk [vmem:[#allocation2 + $0x20] sm:$0xff] %vm325_vm0, %v4891_v0  ;;  %s5047_s7 = scalar_select %p296_p11, %s4881_s21, 1  ;;  %vm1866_vm5 = vcmask 97280   ;;  %vm1899_vm6 = vcmask 121856   ;;  %vm1932_vm7 = vcmask 146432  }
  0x17   : > { %333 = vst.msk [vmem:[#allocation2 + $0x30] sm:$0xff] %vm325_vm0, %v4891_v0  ;;  %334 = vst.msk [vmem:[#allocation2 + $0x38] sm:$0xff] %vm325_vm0, %v4891_v0  ;;  %s4895_s25 = smov 12   ;;  %s4896_s27 = smov 15   ;;  %vm1965_vm8 = vcmask 171008   ;;  %vm1998_vm9 = vcmask 195584  }
  0x18   : > { %336 = vst.msk [vmem:[#allocation2 + $0x48] sm:$0xff] %vm325_vm0, %v4891_v0  ;;  %337 = vst.msk [vmem:[#allocation2 + $0x50] sm:$0xff] %vm325_vm0, %v4891_v0  ;;  %s4625_s8 = sshll.u32 %s5047_s7, 4  ;;  %s4624_s9 = sshll.u32 %s5047_s7, 8  ;;  %vm2035_vm10 = vcmask 220160   ;;  %vm2361_vm11 = vcmask 64512  }
  0x19   : > { %339 = vst.msk [vmem:[#allocation2 + $0x60] sm:$0xff] %vm325_vm0, %v4891_v0  ;;  %340 = vst.msk [vmem:[#allocation2 + $0x68] sm:$0xff] %vm325_vm0, %v4891_v0  ;;  %s314_s12 = scalar_lea.vmem %s7504_s1, %s4625_s8  ;;  %s5059_s15 = scalar_lea.vmem %s7503_s0, %s4624_s9  ;;  %vm3201_vm12 = vcmask 58368   ;;  %vm4354_vm13 = vcmask 1041409   ;;  %vm4356_vm14 = vcmask 1042434   ;;  %vm4358_vm15 = vcmask 1043459  }
  0x1a   : > { %342 = vst.msk [vmem:[#allocation2 + $0x78] sm:$0xff] %vm325_vm0, %v4891_v0  ;;  %343 = vst.msk [vmem:[#allocation2 + $0x80] sm:$0xff] %vm325_vm0, %v4891_v0  ;;  %v381_v1 = vld [vmem:[%s314_s12] sm:$0xff]  ;;  %v382_v2 = vld [vmem:[%s314_s12 + $0x8] sm:$0xff]  ;;  %s4897_s29 = smov 18   ;;  %s4898_s9 = smov 21  }
  0x1b   : > { %345 = vst.msk [vmem:[#allocation2 + $0x90] sm:$0xff] %vm325_vm0, %v4891_v0  ;;  %346 = vst.msk [vmem:[#allocation2 + $0x98] sm:$0xff] %vm325_vm0, %v4891_v0  ;;  %v390_v3 = vld [vmem:[%s5059_s15] sm:$0xff]  ;;  %v391_v4 = vld [vmem:[%s5059_s15 + $0x8] sm:$0xff]  ;;  %s4899_s11 = smov 24   ;;  %s323_s13 = scalar_lea.vmem %s7505_s2, %s4625_s8 }
  0x1c   : > { %348 = vst.msk [vmem:[#allocation2 + $0xa8] sm:$0xff] %vm325_vm0, %v4891_v0  ;;  %349 = vst.msk [vmem:[#allocation2 + $0xb0] sm:$0xff] %vm325_vm0, %v4891_v0  ;;  %v392_v5 = vld [vmem:[%s5059_s15 + $0x10] sm:$0xff]  ;;  %v393_v6 = vld [vmem:[%s5059_s15 + $0x18] sm:$0xff]  ;;  %s4901_s7 = smov [#allocation4]  }
  0x1d   : > { %351 = vst.msk [vmem:[#allocation2 + $0xc0] sm:$0xff] %vm325_vm0, %v4891_v0  ;;  %352 = vst.msk [vmem:[#allocation2 + $0xc8] sm:$0xff] %vm325_vm0, %v4891_v0  ;;  %v394_v7 = vld [vmem:[%s5059_s15 + $0x20] sm:$0xff]  ;;  %v395_v8 = vld [vmem:[%s5059_s15 + $0x28] sm:$0xff]  ;;  %s4817_s8 = sshll.u32 %s4901_s7, 4  ;;  %s4818_s8 = int_to_ptr.vmem [resolvable:$false] %s4817_s8 }
  0x1e   : > { %354 = vst.msk [vmem:[#allocation2 + $0xd8] sm:$0xff] %vm325_vm0, %v4891_v0  ;;  %355 = vst.msk [vmem:[#allocation2 + $0xe0] sm:$0xff] %vm325_vm0, %v4891_v0  ;;  %v396_v9 = vld [vmem:[%s5059_s15 + $0x30] sm:$0xff]  ;;  %v397_v10 = vld [vmem:[%s5059_s15 + $0x38] sm:$0xff] }
  0x1f   : > { %357 = vst.msk [vmem:[#allocation2 + $0xf0] sm:$0xff] %vm325_vm0, %v4891_v0  ;;  %358 = vst.msk [vmem:[#allocation2 + $0xf8] sm:$0xff] %vm325_vm0, %v4891_v0  ;;  %v398_v11 = vld [vmem:[%s5059_s15 + $0x40] sm:$0xff]  ;;  %v399_v12 = vld [vmem:[%s5059_s15 + $0x48] sm:$0xff] }
  0x20   : > { %360 = vst.msk [vmem:[#allocation2 + $0x108] sm:$0xff] %vm325_vm0, %v4891_v0  ;;  %361 = vst.msk [vmem:[#allocation2 + $0x110] sm:$0xff] %vm325_vm0, %v4891_v0  ;;  %v400_v13 = vld [vmem:[%s5059_s15 + $0x50] sm:$0xff]  ;;  %v401_v14 = vld [vmem:[%s5059_s15 + $0x58] sm:$0xff] }
  0x21   : > { %363 = vst.msk [vmem:[#allocation2 + $0x120] sm:$0xff] %vm325_vm0, %v4891_v0  ;;  %364 = vst.msk [vmem:[#allocation2 + $0x128] sm:$0xff] %vm325_vm0, %v4891_v0  ;;  %v402_v15 = vld [vmem:[%s5059_s15 + $0x60] sm:$0xff]  ;;  %v403_v16 = vld [vmem:[%s5059_s15 + $0x68] sm:$0xff] }
  0x22   : > { %366 = vst.msk [vmem:[#allocation2 + $0x138] sm:$0xff] %vm325_vm0, %v4891_v0  ;;  %367 = vst.msk [vmem:[#allocation2 + $0x140] sm:$0xff] %vm325_vm0, %v4891_v0  ;;  %v404_v17 = vld [vmem:[%s5059_s15 + $0x70] sm:$0xff]  ;;  %v405_v18 = vld [vmem:[%s5059_s15 + $0x78] sm:$0xff] }
  0x23   : > { %369 = vst.msk [vmem:[#allocation2 + $0x150] sm:$0xff] %vm325_vm0, %v4891_v0  ;;  %370 = vst.msk [vmem:[#allocation2 + $0x158] sm:$0xff] %vm325_vm0, %v4891_v0  ;;  %v406_v19 = vld [vmem:[%s5059_s15 + $0x80] sm:$0xff]  ;;  %v407_v20 = vld [vmem:[%s5059_s15 + $0x88] sm:$0xff] }
  0x24   : > { %372 = vst.msk [vmem:[#allocation2 + $0x168] sm:$0xff] %vm325_vm0, %v4891_v0  ;;  %373 = vst.msk [vmem:[#allocation2 + $0x170] sm:$0xff] %vm325_vm0, %v4891_v0  ;;  %v408_v21 = vld [vmem:[%s5059_s15 + $0x90] sm:$0xff]  ;;  %v409_v22 = vld [vmem:[%s5059_s15 + $0x98] sm:$0xff] }
  0x25   : > { %375 = vst.msk [vmem:[#allocation2 + $0x180] sm:$0xff] %vm325_vm0, %v4891_v0  ;;  %376 = vst.msk [vmem:[#allocation2 + $0x188] sm:$0xff] %vm325_vm0, %v4891_v0  ;;  %v410_v23 = vld [vmem:[%s5059_s15 + $0xa0] sm:$0xff]  ;;  %v411_v25 = vld [vmem:[%s5059_s15 + $0xa8] sm:$0xff] }
  0x26   : > { %378 = vst.msk [vmem:[#allocation2 + $0x198] sm:$0xff] %vm325_vm0, %v4891_v0  ;;  %379 = vst.msk [vmem:[#allocation2 + $0x1a0] sm:$0xff] %vm325_vm0, %v4891_v0  ;;  %v412_v32 = vld [vmem:[%s5059_s15 + $0xb0] sm:$0xff]  ;;  %v413_v33 = vld [vmem:[%s5059_s15 + $0xb8] sm:$0xff] }
  0x27   : > { %329 = vst.msk [vmem:[#allocation2 + $0x10] sm:$0x3] %vm328_vm1, %v4891_v0  ;;  %332 = vst.msk [vmem:[#allocation2 + $0x28] sm:$0x3] %vm328_vm1, %v4891_v0  ;;  %v414_v34 = vld [vmem:[%s5059_s15 + $0xc0] sm:$0xff]  ;;  %v415_v35 = vld [vmem:[%s5059_s15 + $0xc8] sm:$0xff] }
  0x28   : > { %335 = vst.msk [vmem:[#allocation2 + $0x40] sm:$0x3] %vm328_vm1, %v4891_v0  ;;  %338 = vst.msk [vmem:[#allocation2 + $0x58] sm:$0x3] %vm328_vm1, %v4891_v0  ;;  %v416_v36 = vld [vmem:[%s5059_s15 + $0xd0] sm:$0xff]  ;;  %v417_v37 = vld [vmem:[%s5059_s15 + $0xd8] sm:$0xff] }
  0x29   : > { %341 = vst.msk [vmem:[#allocation2 + $0x70] sm:$0x3] %vm328_vm1, %v4891_v0  ;;  %344 = vst.msk [vmem:[#allocation2 + $0x88] sm:$0x3] %vm328_vm1, %v4891_v0  ;;  %v418_v38 = vld [vmem:[%s5059_s15 + $0xe0] sm:$0xff]  ;;  %v419_v39 = vld [vmem:[%s5059_s15 + $0xe8] sm:$0xff] }
  0x2a   : > { %347 = vst.msk [vmem:[#allocation2 + $0xa0] sm:$0x3] %vm328_vm1, %v4891_v0  ;;  %350 = vst.msk [vmem:[#allocation2 + $0xb8] sm:$0x3] %vm328_vm1, %v4891_v0 }
  0x2b   : > { %353 = vst.msk [vmem:[#allocation2 + $0xd0] sm:$0x3] %vm328_vm1, %v4891_v0  ;;  %356 = vst.msk [vmem:[#allocation2 + $0xe8] sm:$0x3] %vm328_vm1, %v4891_v0 }
  0x2c   : > { %359 = vst.msk [vmem:[#allocation2 + $0x100] sm:$0x3] %vm328_vm1, %v4891_v0  ;;  %362 = vst.msk [vmem:[#allocation2 + $0x118] sm:$0x3] %vm328_vm1, %v4891_v0 }
  0x2d   : > { %365 = vst.msk [vmem:[#allocation2 + $0x130] sm:$0x3] %vm328_vm1, %v4891_v0  ;;  %368 = vst.msk [vmem:[#allocation2 + $0x148] sm:$0x3] %vm328_vm1, %v4891_v0 }
  0x2e   : > { %371 = vst.msk [vmem:[#allocation2 + $0x160] sm:$0x3] %vm328_vm1, %v4891_v0  ;;  %374 = vst.msk [vmem:[#allocation2 + $0x178] sm:$0x3] %vm328_vm1, %v4891_v0 }
  0x2f   : > { %377 = vst.msk [vmem:[#allocation2 + $0x190] sm:$0x3] %vm328_vm1, %v4891_v0  ;;  %380 = vst.msk [vmem:[#allocation2 + $0x1a8] sm:$0x3] %vm328_vm1, %v4891_v0  ;;  %vm4362_vm1 = vcmask 1045509  }
  0x30   : > { %383 = vst.msk [vmem:[#allocation2 + $0x1] sm:$0xff] %vm325_vm0, %v381_v1  ;;  %384 = vst.msk [vmem:[#allocation2 + $0x9] sm:$0xff] %vm325_vm0, %v382_v2 }
  0x31   : > { %423 = vst.msk [vmem:[#allocation2 + $0x19] sm:$0xff] %vm325_vm0, %v390_v3  ;;  %424 = vst.msk [vmem:[#allocation2 + $0x21] sm:$0xff] %vm325_vm0, %v391_v4 }
  0x32   : > { %425 = vst.msk [vmem:[#allocation2 + $0x31] sm:$0xff] %vm325_vm0, %v392_v5  ;;  %426 = vst.msk [vmem:[#allocation2 + $0x39] sm:$0xff] %vm325_vm0, %v393_v6 }
  0x33   : > { %427 = vst.msk [vmem:[#allocation2 + $0x49] sm:$0xff] %vm325_vm0, %v394_v7  ;;  %428 = vst.msk [vmem:[#allocation2 + $0x51] sm:$0xff] %vm325_vm0, %v395_v8 }
  0x34   : > { %429 = vst.msk [vmem:[#allocation2 + $0x61] sm:$0xff] %vm325_vm0, %v396_v9  ;;  %430 = vst.msk [vmem:[#allocation2 + $0x69] sm:$0xff] %vm325_vm0, %v397_v10 }
  0x35   : > { %431 = vst.msk [vmem:[#allocation2 + $0x79] sm:$0xff] %vm325_vm0, %v398_v11  ;;  %432 = vst.msk [vmem:[#allocation2 + $0x81] sm:$0xff] %vm325_vm0, %v399_v12 }
  0x36   : > { %433 = vst.msk [vmem:[#allocation2 + $0x91] sm:$0xff] %vm325_vm0, %v400_v13  ;;  %434 = vst.msk [vmem:[#allocation2 + $0x99] sm:$0xff] %vm325_vm0, %v401_v14 }
  0x37   : > { %435 = vst.msk [vmem:[#allocation2 + $0xa9] sm:$0xff] %vm325_vm0, %v402_v15  ;;  %436 = vst.msk [vmem:[#allocation2 + $0xb1] sm:$0xff] %vm325_vm0, %v403_v16  ;;  %v487_v24 = vld [vmem:[#allocation2 + $0x1] sm:$0xff]  ;;  %v488_v27 = vld [vmem:[#allocation2 + $0x9] sm:$0xff] }
  0x38   : > { %437 = vst.msk [vmem:[#allocation2 + $0xc1] sm:$0xff] %vm325_vm0, %v404_v17  ;;  %438 = vst.msk [vmem:[#allocation2 + $0xc9] sm:$0xff] %vm325_vm0, %v405_v18  ;;  %776 = vrot.lane.b32.xlu0 %v487_v24, %s4892_s16  ;;  %v5107_v26 = vld [vmem:[#allocation2 + $0x19] sm:$0xff]  ;;  %v5112_v28 = vld [vmem:[#allocation2 + $0x21] sm:$0xff] }
  0x39   : > { %439 = vst.msk [vmem:[#allocation2 + $0xd9] sm:$0xff] %vm325_vm0, %v406_v19  ;;  %440 = vst.msk [vmem:[#allocation2 + $0xe1] sm:$0xff] %vm325_vm0, %v407_v20  ;;  %780 = vrot.lane.b32.xlu1 %v5107_v26, %s4892_s16  ;;  %v5117_v29 = vld [vmem:[#allocation2 + $0x31] sm:$0xff]  ;;  %v5119_v30 = vld [vmem:[#allocation2 + $0x39] sm:$0xff] }
  0x3a   : > { %441 = vst.msk [vmem:[#allocation2 + $0xf1] sm:$0xff] %vm325_vm0, %v408_v21  ;;  %442 = vst.msk [vmem:[#allocation2 + $0xf9] sm:$0xff] %vm325_vm0, %v409_v22  ;;  %v5121_v31 = vld [vmem:[#allocation2 + $0x49] sm:$0xff]  ;;  %v5140_v40 = vld [vmem:[#allocation2 + $0x51] sm:$0xff] }
  0x3b   : > { %443 = vst.msk [vmem:[#allocation2 + $0x109] sm:$0xff] %vm325_vm0, %v410_v23  ;;  %444 = vst.msk [vmem:[#allocation2 + $0x111] sm:$0xff] %vm325_vm0, %v411_v25  ;;  %v495_v41 = vld [vmem:[#allocation2 + $0x61] sm:$0xff]  ;;  %v496_v42 = vld [vmem:[#allocation2 + $0x69] sm:$0xff] }
  0x3c   : > { %778 = vrot.lane.b32.xlu0 %v488_v27, %s4892_s16  ;;  %445 = vst.msk [vmem:[#allocation2 + $0x121] sm:$0xff] %vm325_vm0, %v412_v32  ;;  %446 = vst.msk [vmem:[#allocation2 + $0x129] sm:$0xff] %vm325_vm0, %v413_v33  ;;  %v497_v43 = vld [vmem:[#allocation2 + $0x79] sm:$0xff]  ;;  %v498_v44 = vld [vmem:[#allocation2 + $0x81] sm:$0xff] }
  0x3d   : > { %782 = vrot.lane.b32.xlu1 %v5112_v28, %s4892_s16  ;;  %447 = vst.msk [vmem:[#allocation2 + $0x139] sm:$0xff] %vm325_vm0, %v414_v34  ;;  %448 = vst.msk [vmem:[#allocation2 + $0x141] sm:$0xff] %vm325_vm0, %v415_v35  ;;  %v499_v45 = vld [vmem:[#allocation2 + $0x91] sm:$0xff]  ;;  %v500_v46 = vld [vmem:[#allocation2 + $0x99] sm:$0xff] }
  0x3e   : > { %449 = vst.msk [vmem:[#allocation2 + $0x151] sm:$0xff] %vm325_vm0, %v416_v36  ;;  %450 = vst.msk [vmem:[#allocation2 + $0x159] sm:$0xff] %vm325_vm0, %v417_v37  ;;  %v501_v47 = vld [vmem:[#allocation2 + $0xa9] sm:$0xff]  ;;  %v502_v48 = vld [vmem:[#allocation2 + $0xb1] sm:$0xff] }
  0x3f   : > { %451 = vst.msk [vmem:[#allocation2 + $0x169] sm:$0xff] %vm325_vm0, %v418_v38  ;;  %452 = vst.msk [vmem:[#allocation2 + $0x171] sm:$0xff] %vm325_vm0, %v419_v39  ;;  %v503_v49 = vld [vmem:[#allocation2 + $0xc1] sm:$0xff]  ;;  %v504_v50 = vld [vmem:[#allocation2 + $0xc9] sm:$0xff] }
  0x40   : > { %784 = vrot.lane.b32.xlu0 %v5117_v29, %s4892_s16  ;;  %v5159_v51 = vld [vmem:[#allocation2 + $0xd9] sm:$0xff]  ;;  %v5161_v52 = vld [vmem:[#allocation2 + $0xe1] sm:$0xff]  ;;  %v520_v2 = vld [vmem:[#allocation2 + $0xa] sm:$0xff] }
  0x41   : > { %786 = vrot.lane.b32.xlu1 %v5119_v30, %s4892_s16  ;;  %v5167_v53 = vld [vmem:[#allocation2 + $0xf1] sm:$0xff]  ;;  %v5169_v54 = vld [vmem:[#allocation2 + $0xf9] sm:$0xff]  ;;  %v519_v1 = vld [vmem:[#allocation2 + $0x2] sm:$0xff] }
  0x42   : > { %v5175_v55 = vld [vmem:[#allocation2 + $0x109] sm:$0xff]  ;;  %v5177_v56 = vld [vmem:[#allocation2 + $0x111] sm:$0xff]  ;;  %v5199_v3 = vld [vmem:[#allocation2 + $0x1a] sm:$0xff] }
  0x43   : > { %v5183_v57 = vld [vmem:[#allocation2 + $0x121] sm:$0xff]  ;;  %v5185_v58 = vld [vmem:[#allocation2 + $0x129] sm:$0xff]  ;;  %v5207_v5 = vld [vmem:[#allocation2 + $0x32] sm:$0xff] }
  0x44   : > { %788 = vrot.lane.b32.xlu0 %v5121_v31, %s4892_s16  ;;  %v513_v59 = vld [vmem:[#allocation2 + $0x139] sm:$0xff]  ;;  %v514_v60 = vld [vmem:[#allocation2 + $0x141] sm:$0xff]  ;;  %v5215_v7 = vld [vmem:[#allocation2 + $0x4a] sm:$0xff] }
  0x45   : > { %790 = vrot.lane.b32.xlu1 %v5140_v40, %s4892_s16  ;;  %v515_v61 = vld [vmem:[#allocation2 + $0x151] sm:$0xff]  ;;  %v516_v62 = vld [vmem:[#allocation2 + $0x159] sm:$0xff]  ;;  %v5201_v4 = vld [vmem:[#allocation2 + $0x22] sm:$0xff] }
  0x46   : > { %v517_v63 = vld [vmem:[#allocation2 + $0x169] sm:$0xff]  ;;  %v518_v0 = vld [vmem:[#allocation2 + $0x171] sm:$0xff]  ;;  %v5209_v6 = vld [vmem:[#allocation2 + $0x3a] sm:$0xff] }
  0x47   : > { %v5217_v8 = vld [vmem:[#allocation2 + $0x52] sm:$0xff]  ;;  %v5223_v9 = vld [vmem:[#allocation2 + $0x62] sm:$0xff]  ;;  %v5225_v10 = vld [vmem:[#allocation2 + $0x6a] sm:$0xff] }
  0x48   : > { %792 = vrot.lane.b32.xlu0 %v495_v41, %s4892_s16  ;;  %v529_v11 = vld [vmem:[#allocation2 + $0x7a] sm:$0xff]  ;;  %v530_v12 = vld [vmem:[#allocation2 + $0x82] sm:$0xff]  ;;  %v531_v13 = vld [vmem:[#allocation2 + $0x92] sm:$0xff] }
  0x49   : > { %794 = vrot.lane.b32.xlu1 %v496_v42, %s4892_s16  ;;  %v532_v14 = vld [vmem:[#allocation2 + $0x9a] sm:$0xff]  ;;  %v533_v15 = vld [vmem:[#allocation2 + $0xaa] sm:$0xff]  ;;  %v534_v16 = vld [vmem:[#allocation2 + $0xb2] sm:$0xff] }
  0x4a   : > { %v535_v17 = vld [vmem:[#allocation2 + $0xc2] sm:$0xff]  ;;  %v536_v18 = vld [vmem:[#allocation2 + $0xca] sm:$0xff]  ;;  %v5239_v19 = vld [vmem:[#allocation2 + $0xda] sm:$0xff] }
  0x4b   : > { %v5241_v20 = vld [vmem:[#allocation2 + $0xe2] sm:$0xff]  ;;  %v5247_v21 = vld [vmem:[#allocation2 + $0xf2] sm:$0xff]  ;;  %v5249_v22 = vld [vmem:[#allocation2 + $0xfa] sm:$0xff] }
  0x4c   : > { %796 = vrot.lane.b32.xlu0 %v497_v43, %s4892_s16  ;;  %v5255_v23 = vld [vmem:[#allocation2 + $0x10a] sm:$0xff]  ;;  %v5257_v24 = vld [vmem:[#allocation2 + $0x112] sm:$0xff]  ;;  %v5263_v25 = vld [vmem:[#allocation2 + $0x122] sm:$0xff] }
  0x4d   : > { %798 = vrot.lane.b32.xlu1 %v498_v44, %s4892_s16  ;;  %v5265_v27 = vld [vmem:[#allocation2 + $0x12a] sm:$0xff]  ;;  %v5271_v32 = vld [vmem:[#allocation2 + $0x13a] sm:$0xff]  ;;  %v546_v34 = vld [vmem:[#allocation2 + $0x142] sm:$0xff] }
  0x4e   : > { %7546 = vst [vmem:[#allocation7_spill] sm:$0xff] %v5271_v32  ;;  %v547_v36 = vld [vmem:[#allocation2 + $0x152] sm:$0xff]  ;;  %v548_v38 = vld [vmem:[#allocation2 + $0x15a] sm:$0xff]  ;;  %v549_v41 = vld [vmem:[#allocation2 + $0x16a] sm:$0xff] }
  0x4f   : > { %v550_v43 = vld [vmem:[#allocation2 + $0x172] sm:$0xff] }
  0x50   : > { %800 = vrot.lane.b32.xlu0 %v499_v45, %s4892_s16 }
  0x51   : > { %802 = vrot.lane.b32.xlu1 %v500_v46, %s4892_s16  ;;  %v5294_v46 = vld [vmem:[#allocation2 + $0x18] sm:$0xff] }
  0x52   : > { %7552 = vst [vmem:[#allocation13_spill] sm:$0xff] %v5294_v46 }
  0x54   : > { %804 = vrot.lane.b32.xlu0 %v501_v47, %s4892_s16 }
  0x55   : > { %806 = vrot.lane.b32.xlu1 %v502_v48, %s4892_s16  ;;  %v5298_v48 = vld [vmem:[#allocation2 + $0x20] sm:$0xff] }
  0x56   : > { %7554 = vst [vmem:[#allocation15_spill] sm:$0xff] %v5298_v48 }
  0x58   : > { %808 = vrot.lane.b32.xlu0 %v503_v49, %s4892_s16 }
  0x59   : > { %810 = vrot.lane.b32.xlu1 %v504_v50, %s4892_s16  ;;  %v5306_v50 = vld [vmem:[#allocation2 + $0x30] sm:$0xff] }
  0x5c   : > { %812 = vrot.lane.b32.xlu0 %v5159_v51, %s4892_s16 }
  0x5d   : > { %814 = vrot.lane.b32.xlu1 %v5161_v52, %s4892_s16 }
  0x60   : > { %816 = vrot.lane.b32.xlu0 %v5167_v53, %s4892_s16 }
  0x61   : > { %818 = vrot.lane.b32.xlu1 %v5169_v54, %s4892_s16 }
  0x64   : > { %820 = vrot.lane.b32.xlu0 %v5175_v55, %s4892_s16 }
  0x65   : > { %822 = vrot.lane.b32.xlu1 %v5177_v56, %s4892_s16 }
  0x68   : > { %824 = vrot.lane.b32.xlu0 %v5183_v57, %s4892_s16 }
  0x69   : > { %826 = vrot.lane.b32.xlu1 %v5185_v58, %s4892_s16 }
  0x6c   : > { %828 = vrot.lane.b32.xlu0 %v513_v59, %s4892_s16 }
  0x6d   : > { %830 = vrot.lane.b32.xlu1 %v514_v60, %s4892_s16  ;;  %v5310_v60 = vld [vmem:[#allocation2 + $0x38] sm:$0xff] }
  0x70   : > { %832 = vrot.lane.b32.xlu0 %v515_v61, %s4892_s16 }
  0x71   : > { %834 = vrot.lane.b32.xlu1 %v516_v62, %s4892_s16  ;;  %v5318_v62 = vld [vmem:[#allocation2 + $0x48] sm:$0xff] }
  0x74   : > { %836 = vrot.lane.b32.xlu0 %v517_v63, %s4892_s16 }
  0x75   : > { %838 = vrot.lane.b32.xlu1 %v518_v0, %s4892_s16  ;;  %v5322_v0 = vld [vmem:[#allocation2 + $0x50] sm:$0xff] }
  0x78   : > { %904 = vrot.lane.b32.xlu0 %v519_v1, %s4893_s17 }
  0x79   : > { %906 = vrot.lane.b32.xlu1 %v520_v2, %s4893_s17  ;;  %v5330_v2 = vld [vmem:[#allocation2 + $0x60] sm:$0xff] }
  0x7c   : > { %908 = vrot.lane.b32.xlu0 %v5199_v3, %s4893_s17 }
  0x7d   : > { %910 = vrot.lane.b32.xlu1 %v5201_v4, %s4893_s17 }
  0x80   : > { %912 = vrot.lane.b32.xlu0 %v5207_v5, %s4893_s17 }
  0x81   : > { %914 = vrot.lane.b32.xlu1 %v5209_v6, %s4893_s17 }
  0x84   : > { %916 = vrot.lane.b32.xlu0 %v5215_v7, %s4893_s17 }
  0x85   : > { %918 = vrot.lane.b32.xlu1 %v5217_v8, %s4893_s17 }
  0x88   : > { %920 = vrot.lane.b32.xlu0 %v5223_v9, %s4893_s17 }
  0x89   : > { %922 = vrot.lane.b32.xlu1 %v5225_v10, %s4893_s17 }
  0x8c   : > { %924 = vrot.lane.b32.xlu0 %v529_v11, %s4893_s17 }
  0x8d   : > { %926 = vrot.lane.b32.xlu1 %v530_v12, %s4893_s17  ;;  %v5334_v12 = vld [vmem:[#allocation2 + $0x68] sm:$0xff] }
  0x90   : > { %928 = vrot.lane.b32.xlu0 %v531_v13, %s4893_s17 }
  0x91   : > { %930 = vrot.lane.b32.xlu1 %v532_v14, %s4893_s17  ;;  %v5342_v14 = vld [vmem:[#allocation2 + $0x78] sm:$0xff] }
  0x94   : > { %932 = vrot.lane.b32.xlu0 %v533_v15, %s4893_s17 }
  0x95   : > { %934 = vrot.lane.b32.xlu1 %v534_v16, %s4893_s17  ;;  %v5346_v16 = vld [vmem:[#allocation2 + $0x80] sm:$0xff] }
  0x98   : > { %936 = vrot.lane.b32.xlu0 %v535_v17, %s4893_s17 }
  0x99   : > { %938 = vrot.lane.b32.xlu1 %v536_v18, %s4893_s17  ;;  %v5354_v18 = vld [vmem:[#allocation2 + $0x90] sm:$0xff] }
  0x9a   : > { %7561 = vst [vmem:[#allocation22_spill] sm:$0xff] %v5354_v18 }
  0x9c   : > { %940 = vrot.lane.b32.xlu0 %v5239_v19, %s4893_s17 }
  0x9d   : > { %942 = vrot.lane.b32.xlu1 %v5241_v20, %s4893_s17 }
  0xa0   : > { %944 = vrot.lane.b32.xlu0 %v5247_v21, %s4893_s17 }
  0xa1   : > { %946 = vrot.lane.b32.xlu1 %v5249_v22, %s4893_s17 }
  0xa4   : > { %948 = vrot.lane.b32.xlu0 %v5255_v23, %s4893_s17 }
  0xa5   : > { %950 = vrot.lane.b32.xlu1 %v5257_v24, %s4893_s17 }
  0xa8   : > { %952 = vrot.lane.b32.xlu0 %v5263_v25, %s4893_s17 }
  0xa9   : > { %954 = vrot.lane.b32.xlu1 %v5265_v27, %s4893_s17 }
  0xaa   : > { %v5273_v33 = vpop.permute.xlu0 %776 }
  0xab   : > { %v5275_v35 = vpop.permute.xlu1 %780 }
  0xac   : > { %7547 = vst [vmem:[#allocation8_spill] sm:$0xff] %v5275_v35  ;;  %956 = vrot.lane.b32.xlu0 %v5271_v32, %s4893_s17  ;;  %v5454_v32 = vld [vmem:[#allocation2 + $0x158] sm:$0xff] }
  0xad   : > { %958 = vrot.lane.b32.xlu1 %v546_v34, %s4893_s17 }
  0xae   : > { %v5280_v37 = vpop.permute.xlu0 %778 }
  0xaf   : > { %v5282_v39 = vpop.permute.xlu1 %782 }
  0xb0   : > { %7548 = vst [vmem:[#allocation9_spill] sm:$0xff] %v5282_v39  ;;  %960 = vrot.lane.b32.xlu0 %v547_v36, %s4893_s17  ;;  %v5358_v36 = vld [vmem:[#allocation2 + $0x98] sm:$0xff] }
  0xb1   : > { %962 = vrot.lane.b32.xlu1 %v548_v38, %s4893_s17  ;;  %7563 = vst [vmem:[#allocation24_spill] sm:$0xff] %v5358_v36  ;;  %v5406_v39 = vld [vmem:[#allocation2 + $0xf8] sm:$0xff] }
  0xb2   : > { %v5286_v42 = vpop.permute.xlu0 %784 }
  0xb3   : > { %7549 = vst [vmem:[#allocation10_spill] sm:$0xff] %v5286_v42  ;;  %v5288_v44 = vpop.permute.xlu1 %786 }
  0xb4   : > { %7550 = vst [vmem:[#allocation11_spill] sm:$0xff] %v5288_v44  ;;  %964 = vrot.lane.b32.xlu0 %v549_v41, %s4893_s17  ;;  %v5366_v41 = vld [vmem:[#allocation2 + $0xa8] sm:$0xff]  ;;  %v5394_v44 = vld [vmem:[#allocation2 + $0xe0] sm:$0xff] }
  0xb5   : > { %966 = vrot.lane.b32.xlu1 %v550_v43, %s4893_s17  ;;  %7570 = vst [vmem:[#allocation31_spill] sm:$0xff] %v5394_v44  ;;  %s4627_s17 = sshll.u32 %s4881_s21, 10 }
  0xb6   : > { %v5292_v45 = vpop.permute.xlu0 %788  ;;  %s7448_s12 = scalar_lea.hbm %s7508_s5, %s4627_s17 }
  0xb7   : > { %7551 = vst [vmem:[#allocation12_spill] sm:$0xff] %v5292_v45  ;;  %v5296_v47 = vpop.permute.xlu1 %790 }
  0xb8   : > { %7553 = vst [vmem:[#allocation14_spill] sm:$0xff] %v5296_v47  ;;  %1032 = vrot.lane.b32.xlu0 %v5294_v46, %s4894_s24  ;;  %v5390_v47 = vld [vmem:[#allocation2 + $0xd8] sm:$0xff]  ;;  %v5430_v46 = vld [vmem:[#allocation2 + $0x128] sm:$0xff] }
  0xb9   : > { %1034 = vrot.lane.b32.xlu1 %v5298_v48, %s4894_s24  ;;  %7568 = vst [vmem:[#allocation29_spill] sm:$0xff] %v5390_v47 }
  0xba   : > { %v5304_v49 = vpop.permute.xlu0 %792 }
  0xbb   : > { %7555 = vst [vmem:[#allocation16_spill] sm:$0xff] %v5304_v49  ;;  %v5308_v59 = vpop.permute.xlu1 %794 }
  0xbc   : > { %7556 = vst [vmem:[#allocation17_spill] sm:$0xff] %v5308_v59  ;;  %1036 = vrot.lane.b32.xlu0 %v5306_v50, %s4894_s24  ;;  %v5382_v59 = vld [vmem:[#allocation2 + $0xc8] sm:$0xff] }
  0xbd   : > { %1038 = vrot.lane.b32.xlu1 %v5310_v60, %s4894_s24  ;;  %7566 = vst [vmem:[#allocation27_spill] sm:$0xff] %v5382_v59 }
  0xbe   : > { %v5316_v61 = vpop.permute.xlu0 %796 }
  0xbf   : > { %7557 = vst [vmem:[#allocation18_spill] sm:$0xff] %v5316_v61  ;;  %v5320_v63 = vpop.permute.xlu1 %798 }
  0xc0   : > { %7558 = vst [vmem:[#allocation19_spill] sm:$0xff] %v5320_v63  ;;  %1040 = vrot.lane.b32.xlu0 %v5318_v62, %s4894_s24 }
  0xc1   : > { %1042 = vrot.lane.b32.xlu1 %v5322_v0, %s4894_s24 }
  0xc2   : > { %v5328_v1 = vpop.permute.xlu0 %800 }
  0xc3   : > { %7559 = vst [vmem:[#allocation20_spill] sm:$0xff] %v5328_v1  ;;  %v5332_v11 = vpop.permute.xlu1 %802  ;;  %v5370_v1 = vld [vmem:[#allocation2 + $0xb0] sm:$0xff] }
  0xc4   : > { %7560 = vst [vmem:[#allocation21_spill] sm:$0xff] %v5332_v11  ;;  %1044 = vrot.lane.b32.xlu0 %v5330_v2, %s4894_s24  ;;  %v5378_v11 = vld [vmem:[#allocation2 + $0xc0] sm:$0xff] }
  0xc5   : > { %1046 = vrot.lane.b32.xlu1 %v5334_v12, %s4894_s24 }
  0xc6   : > { %v5340_v13 = vpop.permute.xlu0 %804 }
  0xc7   : > { %v5344_v15 = vpop.permute.xlu1 %806 }
  0xc8   : > { %1048 = vrot.lane.b32.xlu0 %v5342_v14, %s4894_s24 }
  0xc9   : > { %1050 = vrot.lane.b32.xlu1 %v5346_v16, %s4894_s24 }
  0xca   : > { %v5352_v17 = vpop.permute.xlu0 %808 }
  0xcb   : > { %v5356_v34 = vpop.permute.xlu1 %810 }
  0xcc   : > { %7562 = vst [vmem:[#allocation23_spill] sm:$0xff] %v5356_v34  ;;  %1052 = vrot.lane.b32.xlu0 %v5354_v18, %s4894_s24 }
  0xcd   : > { %1054 = vrot.lane.b32.xlu1 %v5358_v36, %s4894_s24  ;;  %v5442_v36 = vld [vmem:[#allocation2 + $0x140] sm:$0xff] }
  0xce   : > { %v5364_v38 = vpop.permute.xlu0 %812 }
  0xcf   : > { %7564 = vst [vmem:[#allocation25_spill] sm:$0xff] %v5364_v38  ;;  %v5368_v43 = vpop.permute.xlu1 %814 }
  0xd0   : > { %7565 = vst [vmem:[#allocation26_spill] sm:$0xff] %v5368_v43  ;;  %1056 = vrot.lane.b32.xlu0 %v5366_v41, %s4894_s24  ;;  %v5402_v43 = vld [vmem:[#allocation2 + $0xf0] sm:$0xff] }
  0xd1   : > { %1058 = vrot.lane.b32.xlu1 %v5370_v1, %s4894_s24 }
  0xd2   : > { %v5376_v63 = vpop.permute.xlu0 %816 }
  0xd3   : > { %v5380_v61 = vpop.permute.xlu1 %818 }
  0xd4   : > { %1060 = vrot.lane.b32.xlu0 %v5378_v11, %s4894_s24 }
  0xd5   : > { %1062 = vrot.lane.b32.xlu1 %v5382_v59, %s4894_s24 }
  0xd6   : > { %v5388_v49 = vpop.permute.xlu0 %820 }
  0xd7   : > { %7567 = vst [vmem:[#allocation28_spill] sm:$0xff] %v5388_v49  ;;  %v5392_v45 = vpop.permute.xlu1 %822  ;;  %v5414_v49 = vld [vmem:[#allocation2 + $0x108] sm:$0xff] }
  0xd8   : > { %7569 = vst [vmem:[#allocation30_spill] sm:$0xff] %v5392_v45  ;;  %1064 = vrot.lane.b32.xlu0 %v5390_v47, %s4894_s24 }
  0xd9   : > { %1066 = vrot.lane.b32.xlu1 %v5394_v44, %s4894_s24  ;;  %v5418_v44 = vld [vmem:[#allocation2 + $0x110] sm:$0xff] }
  0xda   : > { %v5400_v42 = vpop.permute.xlu0 %824 }
  0xdb   : > { %7571 = vst [vmem:[#allocation32_spill] sm:$0xff] %v5400_v42  ;;  %v5404_v48 = vpop.permute.xlu1 %826  ;;  %v5426_v42 = vld [vmem:[#allocation2 + $0x120] sm:$0xff] }
  0xdc   : > { %7572 = vst [vmem:[#allocation33_spill] sm:$0xff] %v5404_v48  ;;  %1068 = vrot.lane.b32.xlu0 %v5402_v43, %s4894_s24 }
  0xdd   : > { %1070 = vrot.lane.b32.xlu1 %v5406_v39, %s4894_s24 }
  0xde   : > { %v5412_v45 = vpop.permute.xlu0 %828 }
  0xdf   : > { %7573 = vst [vmem:[#allocation34_spill] sm:$0xff] %v5412_v45  ;;  %v5416_v47 = vpop.permute.xlu1 %830  ;;  %v5438_v45 = vld [vmem:[#allocation2 + $0x138] sm:$0xff] }
  0xe0   : > { %7574 = vst [vmem:[#allocation35_spill] sm:$0xff] %v5416_v47  ;;  %1072 = vrot.lane.b32.xlu0 %v5414_v49, %s4894_s24 }
  0xe1   : > { %1074 = vrot.lane.b32.xlu1 %v5418_v44, %s4894_s24 }
  0xe2   : > { %v5424_v48 = vpop.permute.xlu0 %832 }
  0xe3   : > { %7575 = vst [vmem:[#allocation36_spill] sm:$0xff] %v5424_v48  ;;  %v5428_v38 = vpop.permute.xlu1 %834 }
  0xe4   : > { %7576 = vst [vmem:[#allocation37_spill] sm:$0xff] %v5428_v38  ;;  %1076 = vrot.lane.b32.xlu0 %v5426_v42, %s4894_s24  ;;  %v5450_v38 = vld [vmem:[#allocation2 + $0x150] sm:$0xff] }
  0xe5   : > { %1078 = vrot.lane.b32.xlu1 %v5430_v46, %s4894_s24 }
  0xe6   : > { %v5436_v47 = vpop.permute.xlu0 %836 }
  0xe7   : > { %7577 = vst [vmem:[#allocation38_spill] sm:$0xff] %v5436_v47  ;;  %v5440_v35 = vpop.permute.xlu1 %838  ;;  %v5462_v47 = vld [vmem:[#allocation2 + $0x168] sm:$0xff] }
  0xe8   : > { %7578 = vst [vmem:[#allocation39_spill] sm:$0xff] %v5440_v35  ;;  %1080 = vrot.lane.b32.xlu0 %v5438_v45, %s4894_s24 }
  0xe9   : > { %1082 = vrot.lane.b32.xlu1 %v5442_v36, %s4894_s24 }
  0xea   : > { %v5448_v48 = vpop.permute.xlu0 %904 }
  0xeb   : > { %v5452_v18 = vpop.permute.xlu1 %906 }
  0xec   : > { %7579 = vst [vmem:[#allocation40_spill] sm:$0xff] %v5452_v18  ;;  %1084 = vrot.lane.b32.xlu0 %v5450_v38, %s4894_s24 }
  0xed   : > { %1086 = vrot.lane.b32.xlu1 %v5454_v32, %s4894_s24 }
  0xee   : > { %v5460_v35 = vpop.permute.xlu0 %908 }
  0xef   : > { %7580 = vst [vmem:[#allocation41_spill] sm:$0xff] %v5460_v35  ;;  %v5464_v59 = vpop.permute.xlu1 %910 }
  0xf0   : > { %7581 = vst [vmem:[#allocation42_spill] sm:$0xff] %v5464_v59  ;;  %1088 = vrot.lane.b32.xlu0 %v5462_v47, %s4894_s24 }
  0xf1   : > { %1160 = vrot.lane.b32.xlu1 %v5107_v26, %s4895_s25 }
  0xf2   : > { %v5470_v34 = vpop.permute.xlu0 %912 }
  0xf3   : > { %v5472_v18 = vpop.permute.xlu1 %914 }
  0xf4   : > { %7582 = vst [vmem:[#allocation43_spill] sm:$0xff] %v5472_v18  ;;  %1192 = vrot.lane.b32.xlu0 %v5159_v51, %s4895_s25 }
  0xf5   : > { %1162 = vrot.lane.b32.xlu1 %v5112_v28, %s4895_s25 }
  0xf6   : > { %v5478_v35 = vpop.permute.xlu0 %916 }
  0xf7   : > { %v5480_v59 = vpop.permute.xlu1 %918 }
  0xf8   : > { %1194 = vrot.lane.b32.xlu0 %v5161_v52, %s4895_s25 }
  0xf9   : > { %1288 = vrot.lane.b32.xlu1 %v5199_v3, %s4896_s27 }
  0xfa   : > { %v5486_v26 = vpop.permute.xlu0 %920 }
  0xfb   : > { %v5488_v18 = vpop.permute.xlu1 %922 }
  0xfc   : > { %7583 = vst [vmem:[#allocation44_spill] sm:$0xff] %v5488_v18  ;;  %1320 = vrot.lane.b32.xlu0 %v5239_v19, %s4896_s27 }
  0xfd   : > { %1290 = vrot.lane.b32.xlu1 %v5201_v4, %s4896_s27  ;;  %v1782_v4 = vsel %vm325_vm0, %v5366_v41, %v5340_v13 }
  0xfe   : > { %v5494_v28 = vpop.permute.xlu0 %924 }
  0xff   : > { %7584 = vst [vmem:[#allocation45_spill] sm:$0xff] %v5494_v28  ;;  %v5496_v51 = vpop.permute.xlu1 %926 }
 0x100   : > { %7585 = vst [vmem:[#allocation46_spill] sm:$0xff] %v5496_v51  ;;  %1322 = vrot.lane.b32.xlu0 %v5241_v20, %s4896_s27  ;;  %v1783_v20 = vsel %vm325_vm0, %v5370_v1, %v5344_v15  ;;  %v2034_v1 = vld [vmem:[%s7506_s3 + $0x18] sm:$0x7]  ;;  %v2033_v15 = vld [vmem:[%s7506_s3 + $0x10] sm:$0xff] }
 0x101   : > { %1416 = vrot.lane.b32.xlu1 %v5306_v50, %s4897_s29  ;;  %4664 = vmatprep.subr.msk.mxu0 %vm2132_vm3, %v2034_v1 }
 0x102   : > { %v5502_v52 = vpop.permute.xlu0 %928  ;;  %4665 = vmatpush3.msk.msra.mxu0 %vm2132_vm3, %v2034_v1  ;;  %4720 = vmatprep.subr.msk.mxu1 %vm2132_vm3, %v2034_v1 }
 0x103   : > { %7586 = vst [vmem:[#allocation47_spill] sm:$0xff] %v5502_v52  ;;  %v5504_v3 = vpop.permute.xlu1 %930  ;;  %4666 = vmatprep.subr.mxu0 %v2033_v15  ;;  %4724 = vmatpush3.msk.msra.mxu1 %vm2132_vm3, %v2034_v1  ;;  %vm4366_vm3 = vcmask 1047559  }
 0x104   : > { %7587 = vst [vmem:[#allocation48_spill] sm:$0xff] %v5504_v3  ;;  %1448 = vrot.lane.b32.xlu0 %v5402_v43, %s4897_s29  ;;  %4667 = vmatpush3.msra.mxu0 %v2033_v15 }
 0x105   : > { %1418 = vrot.lane.b32.xlu1 %v5310_v60, %s4897_s29  ;;  %4721 = vmatprep.subr.mxu1 %v2033_v15 }
 0x106   : > { %v933_v19 = vpop.permute.xlu0 %932  ;;  %4725 = vmatpush3.msra.mxu1 %v2033_v15 }
 0x107   : > { %v5517_v52 = vsel %vm1800_vm2, %v1782_v4, %v933_v19  ;;  %v935_v51 = vpop.permute.xlu1 %934  ;;  %v2031_v19 = vld [vmem:[%s7506_s3] sm:$0xff] }
 0x108   : > { %7588 = vst [vmem:[#allocation49_spill] sm:$0xff] %v5517_v52  ;;  %v5520_v3 = vsel %vm1800_vm2, %v1783_v20, %v935_v51  ;;  %1450 = vrot.lane.b32.xlu0 %v5406_v39, %s4897_s29  ;;  %v1788_v20 = vsel %vm325_vm0, %v5402_v43, %v5376_v63 }
 0x109   : > { %7589 = vst [vmem:[#allocation50_spill] sm:$0xff] %v5520_v3  ;;  %1544 = vrot.lane.b32.xlu1 %v5117_v29, %s4898_s9 }
 0x10a   : > { %v5526_v13 = vpop.permute.xlu0 %936 }
 0x10b   : > { %v5528_v41 = vpop.permute.xlu1 %938 }
 0x10c   : > { %1576 = vrot.lane.b32.xlu0 %v5167_v53, %s4898_s9 }
 0x10d   : > { %1164 = vrot.lane.b32.xlu1 %v5117_v29, %s4895_s25  ;;  %v2032_v29 = vld [vmem:[%s7506_s3 + $0x8] sm:$0xff] }
 0x10e   : > { %v5540_v51 = vpop.permute.xlu0 %940  ;;  %4668 = vmatprep.subr.mxu0 %v2032_v29  ;;  %4722 = vmatprep.subr.mxu1 %v2032_v29 }
 0x10f   : > { %v5542_v4 = vpop.permute.xlu1 %942  ;;  %4669 = vmatpush3.msra.mxu0 %v2032_v29  ;;  %4726 = vmatpush3.msra.mxu1 %v2032_v29 }
 0x110   : > { %1196 = vrot.lane.b32.xlu0 %v5167_v53, %s4895_s25  ;;  %v1789_v53 = vsel %vm325_vm0, %v5406_v39, %v5380_v61  ;;  %4670 = vmatprep.subr.mxu0 %v2031_v19 }
 0x111   : > { %1546 = vrot.lane.b32.xlu1 %v5119_v30, %s4898_s9  ;;  %4671 = vmatpush3.msra.mxu0 %v2031_v19 }
 0x112   : > { %v945_v1 = vpop.permute.xlu0 %944  ;;  %4723 = vmatprep.subr.mxu1 %v2031_v19 }
 0x113   : > { %v5561_v3 = vsel %vm1800_vm2, %v1788_v20, %v945_v1  ;;  %v947_v52 = vpop.permute.xlu1 %946  ;;  %4727 = vmatpush3.msra.mxu1 %v2031_v19 }
 0x114   : > { %v5564_v28 = vsel %vm1800_vm2, %v1789_v53, %v947_v52  ;;  %1578 = vrot.lane.b32.xlu0 %v5169_v54, %s4898_s9 }
 0x115   : > { %1672 = vrot.lane.b32.xlu1 %v5207_v5, %s4899_s11 }
 0x116   : > { %v5570_v63 = vpop.permute.xlu0 %948 }
 0x117   : > { %v5572_v39 = vpop.permute.xlu1 %950 }
 0x118   : > { %1704 = vrot.lane.b32.xlu0 %v5247_v21, %s4899_s11 }
 0x119   : > { %1166 = vrot.lane.b32.xlu1 %v5119_v30, %s4895_s25 }
 0x11a   : > { %v5578_v61 = vpop.permute.xlu0 %952 }
 0x11b   : > { %7590 = vst [vmem:[#allocation51_spill] sm:$0xff] %v5578_v61  ;;  %v5580_v43 = vpop.permute.xlu1 %954 }
 0x11c   : > { %7591 = vst [vmem:[#allocation52_spill] sm:$0xff] %v5580_v43  ;;  %1198 = vrot.lane.b32.xlu0 %v5169_v54, %s4895_s25 }
 0x11d   : > { %1292 = vrot.lane.b32.xlu1 %v5207_v5, %s4896_s27 }
 0x11e   : > { %v5586_v52 = vpop.permute.xlu0 %956 }
 0x11f   : > { %7592 = vst [vmem:[#allocation53_spill] sm:$0xff] %v5586_v52  ;;  %v5588_v15 = vpop.permute.xlu1 %958 }
 0x120   : > { %7593 = vst [vmem:[#allocation54_spill] sm:$0xff] %v5588_v15  ;;  %1324 = vrot.lane.b32.xlu0 %v5247_v21, %s4896_s27 }
 0x121   : > { %1674 = vrot.lane.b32.xlu1 %v5209_v6, %s4899_s11 }
 0x122   : > { %v5594_v30 = vpop.permute.xlu0 %960 }
 0x123   : > { %7594 = vst [vmem:[#allocation55_spill] sm:$0xff] %v5594_v30  ;;  %v5596_v29 = vpop.permute.xlu1 %962 }
 0x124   : > { %7595 = vst [vmem:[#allocation56_spill] sm:$0xff] %v5596_v29  ;;  %1706 = vrot.lane.b32.xlu0 %v5249_v22, %s4899_s11 }
 0x125   : > { %1294 = vrot.lane.b32.xlu1 %v5209_v6, %s4896_s27 }
 0x126   : > { %v5602_v54 = vpop.permute.xlu0 %964 }
 0x127   : > { %7596 = vst [vmem:[#allocation57_spill] sm:$0xff] %v5602_v54  ;;  %v5604_v5 = vpop.permute.xlu1 %966 }
 0x128   : > { %7597 = vst [vmem:[#allocation58_spill] sm:$0xff] %v5604_v5  ;;  %1326 = vrot.lane.b32.xlu0 %v5249_v22, %s4896_s27 }
 0x129   : > { %1420 = vrot.lane.b32.xlu1 %v5318_v62, %s4897_s29 }
 0x12a   : > { %v5610_v21 = vpop.permute.xlu0 %1032 }
 0x12b   : > { %v5612_v19 = vpop.permute.xlu1 %1034 }
 0x12c   : > { %1452 = vrot.lane.b32.xlu0 %v5414_v49, %s4897_s29 }
 0x12d   : > { %1422 = vrot.lane.b32.xlu1 %v5322_v0, %s4897_s29 }
 0x12e   : > { %v5618_v6 = vpop.permute.xlu0 %1036 }
 0x12f   : > { %v5620_v20 = vpop.permute.xlu1 %1038 }
 0x130   : > { %1454 = vrot.lane.b32.xlu0 %v5418_v44, %s4897_s29 }
 0x131   : > { %1548 = vrot.lane.b32.xlu1 %v5121_v31, %s4898_s9 }
 0x132   : > { %v5626_v22 = vpop.permute.xlu0 %1040 }
 0x133   : > { %v5628_v62 = vpop.permute.xlu1 %1042 }
 0x134   : > { %1580 = vrot.lane.b32.xlu0 %v5175_v55, %s4898_s9 }
 0x135   : > { %1168 = vrot.lane.b32.xlu1 %v5121_v31, %s4895_s25 }
 0x136   : > { %v5634_v0 = vpop.permute.xlu0 %1044 }
 0x137   : > { %v5636_v1 = vpop.permute.xlu1 %1046 }
 0x138   : > { %1200 = vrot.lane.b32.xlu0 %v5175_v55, %s4895_s25 }
 0x139   : > { %1550 = vrot.lane.b32.xlu1 %v5140_v40, %s4898_s9 }
 0x13a   : > { %v5642_v44 = vpop.permute.xlu0 %1048 }
 0x13b   : > { %v5644_v53 = vpop.permute.xlu1 %1050 }
 0x13c   : > { %7598 = vst [vmem:[#allocation59_spill] sm:$0xff] %v5644_v53  ;;  %1582 = vrot.lane.b32.xlu0 %v5177_v56, %s4898_s9  ;;  %v686_v53 = vld [vmem:[#allocation2 + $0x79] sm:$0xff] }
 0x13d   : > { %1676 = vrot.lane.b32.xlu1 %v5215_v7, %s4899_s11 }
 0x13e   : > { %v5650_v31 = vpop.permute.xlu0 %1052 }
 0x13f   : > { %7599 = vst [vmem:[#allocation60_spill] sm:$0xff] %v5650_v31  ;;  %v5652_v5 = vpop.permute.xlu1 %1054 }
 0x140   : > { %7600 = vst [vmem:[#allocation61_spill] sm:$0xff] %v5652_v5  ;;  %1708 = vrot.lane.b32.xlu0 %v5255_v23, %s4899_s11 }
 0x141   : > { %1170 = vrot.lane.b32.xlu1 %v5140_v40, %s4895_s25 }
 0x142   : > { %v5658_v55 = vpop.permute.xlu0 %1056 }
 0x143   : > { %7601 = vst [vmem:[#allocation62_spill] sm:$0xff] %v5658_v55  ;;  %v5660_v54 = vpop.permute.xlu1 %1058 }
 0x144   : > { %7602 = vst [vmem:[#allocation63_spill] sm:$0xff] %v5660_v54  ;;  %1202 = vrot.lane.b32.xlu0 %v5177_v56, %s4895_s25 }
 0x145   : > { %1296 = vrot.lane.b32.xlu1 %v5215_v7, %s4896_s27 }
 0x146   : > { %v5666_v30 = vpop.permute.xlu0 %1060 }
 0x147   : > { %7603 = vst [vmem:[#allocation64_spill] sm:$0xff] %v5666_v30  ;;  %v5668_v15 = vpop.permute.xlu1 %1062  ;;  %v684_v30 = vld [vmem:[#allocation2 + $0x61] sm:$0xff] }
 0x148   : > { %7604 = vst [vmem:[#allocation65_spill] sm:$0xff] %v5668_v15  ;;  %1328 = vrot.lane.b32.xlu0 %v5255_v23, %s4896_s27 }
 0x149   : > { %1678 = vrot.lane.b32.xlu1 %v5217_v8, %s4899_s11 }
 0x14a   : > { %v5674_v40 = vpop.permute.xlu0 %1064 }
 0x14b   : > { %v5676_v55 = vpop.permute.xlu1 %1066 }
 0x14c   : > { %1710 = vrot.lane.b32.xlu0 %v5257_v24, %s4899_s11 }
 0x14d   : > { %1298 = vrot.lane.b32.xlu1 %v5217_v8, %s4896_s27 }
 0x14e   : > { %v5682_v56 = vpop.permute.xlu0 %1068 }
 0x14f   : > { %v5684_v7 = vpop.permute.xlu1 %1070 }
 0x150   : > { %1330 = vrot.lane.b32.xlu0 %v5257_v24, %s4896_s27 }
 0x151   : > { %1424 = vrot.lane.b32.xlu1 %v5330_v2, %s4897_s29 }
 0x152   : > { %v5690_v23 = vpop.permute.xlu0 %1072 }
 0x153   : > { %v5692_v15 = vpop.permute.xlu1 %1074 }
 0x154   : > { %1456 = vrot.lane.b32.xlu0 %v5426_v42, %s4897_s29 }
 0x155   : > { %1426 = vrot.lane.b32.xlu1 %v5334_v12, %s4897_s29  ;;  %v685_v12 = vld [vmem:[#allocation2 + $0x69] sm:$0xff] }
 0x156   : > { %v5698_v8 = vpop.permute.xlu0 %1076 }
 0x157   : > { %v5700_v5 = vpop.permute.xlu1 %1078 }
 0x158   : > { %1458 = vrot.lane.b32.xlu0 %v5430_v46, %s4897_s29 }
 0x159   : > { %1552 = vrot.lane.b32.xlu1 %v684_v30, %s4898_s9 }
 0x15a   : > { %v5705_v24 = vpop.permute.xlu0 %1080 }
 0x15b   : > { %7605 = vst [vmem:[#allocation66_spill] sm:$0xff] %v5705_v24  ;;  %v5707_v2 = vpop.permute.xlu1 %1082 }
 0x15c   : > { %7606 = vst [vmem:[#allocation67_spill] sm:$0xff] %v5707_v2  ;;  %1584 = vrot.lane.b32.xlu0 %v5183_v57, %s4898_s9 }
 0x15d   : > { %1172 = vrot.lane.b32.xlu1 %v684_v30, %s4895_s25 }
 0x15e   : > { %v5712_v42 = vpop.permute.xlu0 %1084 }
 0x15f   : > { %7607 = vst [vmem:[#allocation68_spill] sm:$0xff] %v5712_v42  ;;  %v5714_v54 = vpop.permute.xlu1 %1086 }
 0x160   : > { %7608 = vst [vmem:[#allocation69_spill] sm:$0xff] %v5714_v54  ;;  %1204 = vrot.lane.b32.xlu0 %v5183_v57, %s4895_s25 }
 0x161   : > { %1554 = vrot.lane.b32.xlu1 %v685_v12, %s4898_s9 }
 0x162   : > { %v5719_v46 = vpop.permute.xlu0 %1088 }
 0x163   : > { %7609 = vst [vmem:[#allocation70_spill] sm:$0xff] %v5719_v46  ;;  %v1161_v31 = vpop.permute.xlu1 %1160  ;;  %v420_v46 = vld [vmem:[%s5059_s15 + $0xf0] sm:$0xff] }
 0x164   : > { %1586 = vrot.lane.b32.xlu0 %v5185_v58, %s4898_s9  ;;  %453 = vst.msk [vmem:[#allocation2 + $0x181] sm:$0xff] %vm325_vm0, %v420_v46 }
 0x165   : > { %1680 = vrot.lane.b32.xlu1 %v5223_v9, %s4899_s11 }
 0x166   : > { %v1193_v30 = vpop.permute.xlu0 %1192 }
 0x167   : > { %v5725_v42 = vpop.permute.xlu1 %1162 }
 0x168   : > { %1712 = vrot.lane.b32.xlu0 %v5263_v25, %s4899_s11 }
 0x169   : > { %1174 = vrot.lane.b32.xlu1 %v685_v12, %s4895_s25 }
 0x16a   : > { %v5730_v57 = vpop.permute.xlu0 %1194 }
 0x16b   : > { %v1289_v54 = vpop.permute.xlu1 %1288 }
 0x16c   : > { %1206 = vrot.lane.b32.xlu0 %v5185_v58, %s4895_s25  ;;  %v421_v58 = vld [vmem:[%s5059_s15 + $0xf8] sm:$0xff] }
 0x16d   : > { %1300 = vrot.lane.b32.xlu1 %v5223_v9, %s4896_s27  ;;  %454 = vst.msk [vmem:[#allocation2 + $0x189] sm:$0xff] %vm325_vm0, %v421_v58 }
 0x16e   : > { %v1321_v52 = vpop.permute.xlu0 %1320 }
 0x16f   : > { %v5738_v29 = vpop.permute.xlu1 %1290 }
 0x170   : > { %1332 = vrot.lane.b32.xlu0 %v5263_v25, %s4896_s27 }
 0x171   : > { %1682 = vrot.lane.b32.xlu1 %v5225_v10, %s4899_s11 }
 0x172   : > { %v5744_v12 = vpop.permute.xlu0 %1322 }
 0x173   : > { %v1417_v2 = vpop.permute.xlu1 %1416 }
 0x174   : > { %1714 = vrot.lane.b32.xlu0 %v5265_v27, %s4899_s11 }
 0x175   : > { %1302 = vrot.lane.b32.xlu1 %v5225_v10, %s4896_s27  ;;  %v455_v10 = vld [vmem:[#allocation2] sm:$0xff] }
 0x176   : > { %v1449_v9 = vpop.permute.xlu0 %1448 }
 0x177   : > { %v5752_v46 = vpop.permute.xlu1 %1418 }
 0x178   : > { %1334 = vrot.lane.b32.xlu0 %v5265_v27, %s4896_s27  ;;  %v1768_v27 = vsel %vm325_vm0, %v455_v10, %v5273_v33 }
 0x179   : > { %1428 = vrot.lane.b32.xlu1 %v5342_v14, %s4897_s29  ;;  %v702_v14 = vld [vmem:[#allocation2 + $0x139] sm:$0xff] }
 0x17a   : > { %v5758_v25 = vpop.permute.xlu0 %1450 }
 0x17b   : > { %v1545_v43 = vpop.permute.xlu1 %1544 }
 0x17c   : > { %1460 = vrot.lane.b32.xlu0 %v5438_v45, %s4897_s29  ;;  %v1801_v45 = vsel %vm1800_vm2, %v1768_v27, %v5448_v48 }
 0x17d   : > { %1430 = vrot.lane.b32.xlu1 %v5346_v16, %s4897_s29  ;;  %v1834_v24 = vsel %vm1833_vm4, %v1801_v45, %v5610_v21 }
 0x17e   : > { %v1577_v58 = vpop.permute.xlu0 %1576  ;;  %v1867_v33 = vsel %vm1866_vm5, %v1834_v24, %v1161_v31 }
 0x17f   : > { %v5764_v18 = vpop.permute.xlu1 %1164  ;;  %v1900_v10 = vsel %vm1899_vm6, %v1867_v33, %v1289_v54  ;;  %v718_v33 = vld [vmem:[#allocation2 + $0x7a] sm:$0xff] }
 0x180   : > { %1462 = vrot.lane.b32.xlu0 %v5442_v36, %s4897_s29  ;;  %v1784_v36 = vsel %vm325_vm0, %v5378_v11, %v5352_v17  ;;  %v1933_v27 = vsel %vm1932_vm7, %v1900_v10, %v1417_v2  ;;  %v687_v11 = vld [vmem:[#allocation2 + $0x81] sm:$0xff] }
 0x181   : > { %1556 = vrot.lane.b32.xlu1 %v686_v53, %s4898_s9  ;;  %v1817_v48 = vsel %vm1800_vm2, %v1784_v36, %v5526_v13  ;;  %v1966_v31 = vsel %vm1965_vm8, %v1933_v27, %v1545_v43  ;;  %v456_v2 = vld [vmem:[#allocation2 + $0x8] sm:$0xff]  ;;  %v7611_v27 = vld [vmem:[#allocation23_spill] sm:$0xff] }
 0x182   : > { %v5773_v16 = vpop.permute.xlu0 %1196  ;;  %v1850_v21 = vsel %vm1833_vm4, %v1817_v48, %v5674_v40  ;;  %v703_v40 = vld [vmem:[#allocation2 + $0x141] sm:$0xff] }
 0x183   : > { %v1547_v61 = vpop.permute.xlu1 %1546  ;;  %v1883_v17 = vsel %vm1866_vm5, %v1850_v21, %v1193_v30 }
 0x184   : > { %1588 = vrot.lane.b32.xlu0 %v702_v14, %s4898_s9  ;;  %v1916_v13 = vsel %vm1899_vm6, %v1883_v17, %v1321_v52  ;;  %v7612_v17 = vld [vmem:[#allocation27_spill] sm:$0xff] }
 0x185   : > { %1176 = vrot.lane.b32.xlu1 %v686_v53, %s4895_s25  ;;  %v1949_v53 = vsel %vm1932_vm7, %v1916_v13, %v1449_v9  ;;  %v1769_v9 = vsel %vm325_vm0, %v456_v2, %v5280_v37  ;;  %v7613_v37 = vld [vmem:[#allocation7_spill] sm:$0xff] }
 0x186   : > { %v1579_v45 = vpop.permute.xlu0 %1578  ;;  %v1982_v36 = vsel %vm1965_vm8, %v1949_v53, %v1577_v58 }
 0x187   : > { %v1673_v24 = vpop.permute.xlu1 %1672 }
 0x188   : > { %1208 = vrot.lane.b32.xlu0 %v702_v14, %s4895_s25  ;;  %v1999_v54 = vsel %vm1998_vm9, %v1966_v31, %v1673_v24  ;;  %v7610_v14 = vld [vmem:[#allocation40_spill] sm:$0xff]  ;;  %v1785_v31 = vsel %vm325_vm0, %v7612_v17, %v7611_v27 }
 0x189   : > { %1558 = vrot.lane.b32.xlu1 %v687_v11, %s4898_s9  ;;  %4672 = vmatprep.mubr.msk.f32.mxu0 %vm2035_vm10, %v1999_v54  ;;  %v1802_v48 = vsel %vm1800_vm2, %v1769_v9, %v7610_v14  ;;  %v1818_v13 = vsel %vm1800_vm2, %v1785_v31, %v5528_v41  ;;  %v7615_v31 = vld [vmem:[#allocation24_spill] sm:$0xff] }
 0x18a   : > { %v1705_v30 = vpop.permute.xlu0 %1704  ;;  %v1835_v58 = vsel %vm1833_vm4, %v1802_v48, %v5612_v19  ;;  %v1851_v19 = vsel %vm1833_vm4, %v1818_v13, %v5676_v55 }
 0x18b   : > { %v5798_v43 = vpop.permute.xlu1 %1166  ;;  %v2015_v52 = vsel %vm1998_vm9, %v1982_v36, %v1705_v30  ;;  %v1868_v24 = vsel %vm1866_vm5, %v1835_v58, %v5725_v42  ;;  %v1884_v42 = vsel %vm1866_vm5, %v1851_v19, %v5730_v57  ;;  %v7614_v58 = vld [vmem:[#allocation22_spill] sm:$0xff]  ;;  %v7617_v19 = vld [vmem:[#allocation13_spill] sm:$0xff] }
 0x18c   : > { %1590 = vrot.lane.b32.xlu0 %v703_v40, %s4898_s9  ;;  %4696 = vmatprep.mubr.msk.f32.mxu1 %vm2035_vm10, %v2015_v52  ;;  %v1901_v54 = vsel %vm1899_vm6, %v1868_v24, %v5738_v29  ;;  %v1917_v41 = vsel %vm1899_vm6, %v1884_v42, %v5744_v12  ;;  %v385_v52 = vld [vmem:[%s323_s13] sm:$0xff]  ;;  %v704_v42 = vld [vmem:[#allocation2 + $0x151] sm:$0xff] }
 0x18d   : > { %1684 = vrot.lane.b32.xlu1 %v718_v33, %s4899_s11  ;;  %v1934_v53 = vsel %vm1932_vm7, %v1901_v54, %v5752_v46  ;;  %v1950_v55 = vsel %vm1932_vm7, %v1917_v41, %v5758_v25  ;;  %v719_v46 = vld [vmem:[#allocation2 + $0x82] sm:$0xff]  ;;  %388 = vst.msk [vmem:[#allocation2 + $0x199] sm:$0xff] %vm325_vm0, %v385_v52  ;;  %v7616_v54 = vld [vmem:[#allocation8_spill] sm:$0xff] }
 0x18e   : > { %v5808_v10 = vpop.permute.xlu0 %1198  ;;  %v1967_v36 = vsel %vm1965_vm8, %v1934_v53, %v1547_v61  ;;  %v639_v61 = vld [vmem:[#allocation2 + $0x13a] sm:$0xff]  ;;  %v1983_v57 = vsel %vm1965_vm8, %v1950_v55, %v1579_v45  ;;  %v735_v25 = vld [vmem:[#allocation2 + $0x142] sm:$0xff]  ;;  %v1770_v53 = vsel %vm325_vm0, %v7617_v19, %v7616_v54  ;;  %v7622_v19 = vld [vmem:[#allocation15_spill] sm:$0xff] }
 0x18f   : > { %v1293_v21 = vpop.permute.xlu1 %1292  ;;  %v386_v45 = vld [vmem:[%s323_s13 + $0x8] sm:$0xff]  ;;  %v7619_v55 = vld [vmem:[#allocation25_spill] sm:$0xff] }
 0x190   : > { %1716 = vrot.lane.b32.xlu0 %v7613_v37, %s4899_s11  ;;  %389 = vst.msk [vmem:[#allocation2 + $0x1a1] sm:$0xff] %vm325_vm0, %v386_v45  ;;  %v688_v37 = vld [vmem:[#allocation2 + $0x91] sm:$0xff] }
 0x191   : > { %1178 = vrot.lane.b32.xlu1 %v687_v11, %s4895_s25 }
 0x192   : > { %v1325_v2 = vpop.permute.xlu0 %1324 }
 0x193   : > { %v1675_v30 = vpop.permute.xlu1 %1674 }
 0x194   : > { %v2000_v29 = vsel %vm1998_vm9, %v1967_v36, %v1675_v30  ;;  %1210 = vrot.lane.b32.xlu0 %v703_v40, %s4895_s25  ;;  %v7618_v36 = vld [vmem:[#allocation41_spill] sm:$0xff] }
 0x195   : > { %1304 = vrot.lane.b32.xlu1 %v718_v33, %s4896_s27  ;;  %4673 = vmatmul.mubr.msk.f32.vlgmr.msra.gmra.mxu0 %vm2035_vm10, %v2000_v29 }
 0x196   : > { %v1707_v12 = vpop.permute.xlu0 %1706 }
 0x197   : > { %v2016_v11 = vsel %vm1998_vm9, %v1983_v57, %v1707_v12  ;;  %v5846_v40 = vpop.permute.xlu1 %1294 }
 0x198   : > { %1336 = vrot.lane.b32.xlu0 %v639_v61, %s4896_s27  ;;  %4697 = vmatmul.mubr.msk.f32.vlgmr.msra.gmra.mxu1 %vm2035_vm10, %v2016_v11  ;;  %v7620_v61 = vld [vmem:[#allocation29_spill] sm:$0xff] }
 0x199   : > { %1686 = vrot.lane.b32.xlu1 %v719_v46, %s4899_s11 }
 0x19a   : > { %v5852_v33 = vpop.permute.xlu0 %1326 }
 0x19b   : > { %v1421_v9 = vpop.permute.xlu1 %1420 }
 0x19c   : > { %1718 = vrot.lane.b32.xlu0 %v735_v25, %s4899_s11 }
 0x19d   : > { %1306 = vrot.lane.b32.xlu1 %v719_v46, %s4896_s27 }
 0x19e   : > { %v1453_v14 = vpop.permute.xlu0 %1452 }
 0x19f   : > { %v1423_v48 = vpop.permute.xlu1 %1422 }
 0x1a0   : > { %1338 = vrot.lane.b32.xlu0 %v735_v25, %s4896_s27  ;;  %v689_v25 = vld [vmem:[#allocation2 + $0x99] sm:$0xff] }
 0x1a1   : > { %1432 = vrot.lane.b32.xlu1 %v7614_v58, %s4897_s29 }
 0x1a2   : > { %v5860_v27 = vpop.permute.xlu0 %1454 }
 0x1a3   : > { %v1549_v17 = vpop.permute.xlu1 %1548 }
 0x1a4   : > { %1464 = vrot.lane.b32.xlu0 %v5450_v38, %s4897_s29  ;;  %v1803_v38 = vsel %vm1800_vm2, %v1770_v53, %v7618_v36  ;;  %v736_v53 = vld [vmem:[#allocation2 + $0x152] sm:$0xff] }
 0x1a5   : > { %1434 = vrot.lane.b32.xlu1 %v7615_v31, %s4897_s29  ;;  %v1836_v41 = vsel %vm1833_vm4, %v1803_v38, %v5618_v6 }
 0x1a6   : > { %v1581_v24 = vpop.permute.xlu0 %1580  ;;  %v1869_v57 = vsel %vm1866_vm5, %v1836_v41, %v5764_v18 }
 0x1a7   : > { %v5866_v13 = vpop.permute.xlu1 %1168  ;;  %v1902_v46 = vsel %vm1899_vm6, %v1869_v57, %v1293_v21 }
 0x1a8   : > { %1466 = vrot.lane.b32.xlu0 %v5454_v32, %s4897_s29  ;;  %v1786_v32 = vsel %vm325_vm0, %v7620_v61, %v7619_v55  ;;  %v1935_v11 = vsel %vm1932_vm7, %v1902_v46, %v1421_v9  ;;  %v7624_v55 = vld [vmem:[#allocation26_spill] sm:$0xff]  ;;  %v7625_v61 = vld [vmem:[#allocation31_spill] sm:$0xff] }
 0x1a9   : > { %1560 = vrot.lane.b32.xlu1 %v688_v37, %s4898_s9  ;;  %v1819_v12 = vsel %vm1800_vm2, %v1786_v32, %v5540_v51  ;;  %v1968_v18 = vsel %vm1965_vm8, %v1935_v11, %v1549_v17  ;;  %v1787_v32 = vsel %vm325_vm0, %v7625_v61, %v7624_v55 }
 0x1aa   : > { %v5876_v30 = vpop.permute.xlu0 %1200  ;;  %v1852_v6 = vsel %vm1833_vm4, %v1819_v12, %v5682_v56  ;;  %v705_v56 = vld [vmem:[#allocation2 + $0x159] sm:$0xff]  ;;  %v1820_v12 = vsel %vm1800_vm2, %v1787_v32, %v5542_v4 }
 0x1ab   : > { %v1551_v29 = vpop.permute.xlu1 %1550  ;;  %v1885_v45 = vsel %vm1866_vm5, %v1852_v6, %v5773_v16  ;;  %v720_v16 = vld [vmem:[#allocation2 + $0x92] sm:$0xff] }
 0x1ac   : > { %1592 = vrot.lane.b32.xlu0 %v704_v42, %s4898_s9  ;;  %v1918_v31 = vsel %vm1899_vm6, %v1885_v45, %v1325_v2  ;;  %v7621_v2 = vld [vmem:[#allocation9_spill] sm:$0xff] }
 0x1ad   : > { %1180 = vrot.lane.b32.xlu1 %v688_v37, %s4895_s25  ;;  %v1951_v21 = vsel %vm1932_vm7, %v1918_v31, %v1453_v14  ;;  %v1771_v14 = vsel %vm325_vm0, %v7622_v19, %v7621_v2  ;;  %v5961_v2 = vld [vmem:[#allocation2 + $0x170] sm:$0xff] }
 0x1ae   : > { %v1583_v52 = vpop.permute.xlu0 %1582  ;;  %v1984_v9 = vsel %vm1965_vm8, %v1951_v21, %v1581_v24 }
 0x1af   : > { %v1677_v58 = vpop.permute.xlu1 %1676 }
 0x1b0   : > { %v2001_v51 = vsel %vm1998_vm9, %v1968_v18, %v1677_v58  ;;  %1212 = vrot.lane.b32.xlu0 %v704_v42, %s4895_s25  ;;  %v7623_v42 = vld [vmem:[#allocation42_spill] sm:$0xff] }
 0x1b1   : > { %1562 = vrot.lane.b32.xlu1 %v689_v25, %s4898_s9  ;;  %4675 = vmatprep.mubr.msk.f32.mxu0 %vm2035_vm10, %v2001_v51  ;;  %v1804_v24 = vsel %vm1800_vm2, %v1771_v14, %v7623_v42  ;;  %v658_v51 = vld [vmem:[#allocation2 + $0xa8] sm:$0xff] }
 0x1b2   : > { %v1709_v37 = vpop.permute.xlu0 %1708  ;;  %v1837_v38 = vsel %vm1833_vm4, %v1804_v24, %v5620_v20  ;;  %v1853_v20 = vsel %vm1833_vm4, %v1820_v12, %v5684_v7  ;;  %v7626_v14 = vld [vmem:[#allocation10_spill] sm:$0xff] }
 0x1b3   : > { %v2017_v17 = vsel %vm1998_vm9, %v1984_v9, %v1709_v37  ;;  %v5904_v54 = vpop.permute.xlu1 %1170  ;;  %v1870_v57 = vsel %vm1866_vm5, %v1837_v38, %v5798_v43  ;;  %v1886_v45 = vsel %vm1866_vm5, %v1853_v20, %v5808_v10  ;;  %v659_v9 = vld [vmem:[#allocation2 + $0xb0] sm:$0xff] }
 0x1b4   : > { %1594 = vrot.lane.b32.xlu0 %v705_v56, %s4898_s9  ;;  %4699 = vmatprep.mubr.msk.f32.mxu1 %vm2035_vm10, %v2017_v17  ;;  %v1903_v46 = vsel %vm1899_vm6, %v1870_v57, %v5846_v40  ;;  %v1919_v4 = vsel %vm1899_vm6, %v1886_v45, %v5852_v33  ;;  %v737_v33 = vld [vmem:[#allocation2 + $0x15a] sm:$0xff]  ;;  %v690_v17 = vld [vmem:[#allocation2 + $0xa9] sm:$0xff] }
 0x1b5   : > { %1688 = vrot.lane.b32.xlu1 %v720_v16, %s4899_s11  ;;  %v1936_v6 = vsel %vm1932_vm7, %v1903_v46, %v1423_v48  ;;  %v1952_v40 = vsel %vm1932_vm7, %v1919_v4, %v5860_v27  ;;  %v721_v48 = vld [vmem:[#allocation2 + $0x9a] sm:$0xff]  ;;  %v706_v42 = vld [vmem:[#allocation2 + $0x169] sm:$0xff] }
 0x1b6   : > { %v5914_v36 = vpop.permute.xlu0 %1202  ;;  %v1969_v43 = vsel %vm1965_vm8, %v1936_v6, %v1551_v29  ;;  %v1985_v7 = vsel %vm1965_vm8, %v1952_v40, %v1583_v52  ;;  %v580_v38 = vld [vmem:[#allocation2 + $0x170] sm:$0xff] }
 0x1b7   : > { %v1297_v41 = vpop.permute.xlu1 %1296  ;;  %v7628_v40 = vld [vmem:[#allocation43_spill] sm:$0xff] }
 0x1b8   : > { %1720 = vrot.lane.b32.xlu0 %v736_v53, %s4899_s11 }
 0x1b9   : > { %1182 = vrot.lane.b32.xlu1 %v689_v25, %s4895_s25 }
 0x1ba   : > { %v1329_v11 = vpop.permute.xlu0 %1328 }
 0x1bb   : > { %v1679_v18 = vpop.permute.xlu1 %1678 }
 0x1bc   : > { %v2002_v58 = vsel %vm1998_vm9, %v1969_v43, %v1679_v18  ;;  %1214 = vrot.lane.b32.xlu0 %v705_v56, %s4895_s25 }
 0x1bd   : > { %1308 = vrot.lane.b32.xlu1 %v720_v16, %s4896_s27  ;;  %4676 = vmatmul.mubr.msk.f32.gmra.mxu0 %vm2035_vm10, %v2002_v58  ;;  %v722_v58 = vld [vmem:[#allocation2 + $0xaa] sm:$0xff] }
 0x1be   : > { %v1711_v10 = vpop.permute.xlu0 %1710 }
 0x1bf   : > { %v2018_v29 = vsel %vm1998_vm9, %v1985_v7, %v1711_v10  ;;  %v5945_v25 = vpop.permute.xlu1 %1298 }
 0x1c0   : > { %1340 = vrot.lane.b32.xlu0 %v736_v53, %s4896_s27  ;;  %4700 = vmatmul.mubr.msk.f32.gmra.mxu1 %vm2035_vm10, %v2018_v29  ;;  %v1772_v53 = vsel %vm325_vm0, %v5306_v50, %v7626_v14 }
 0x1c1   : > { %1690 = vrot.lane.b32.xlu1 %v721_v48, %s4899_s11 }
 0x1c2   : > { %v5950_v27 = vpop.permute.xlu0 %1330 }
 0x1c3   : > { %v1425_v31 = vpop.permute.xlu1 %1424 }
 0x1c4   : > { %1722 = vrot.lane.b32.xlu0 %v737_v33, %s4899_s11 }
 0x1c5   : > { %1310 = vrot.lane.b32.xlu1 %v721_v48, %s4896_s27  ;;  %v738_v48 = vld [vmem:[#allocation2 + $0x16a] sm:$0xff] }
 0x1c6   : > { %v1457_v52 = vpop.permute.xlu0 %1456 }
 0x1c7   : > { %v1427_v21 = vpop.permute.xlu1 %1426 }
 0x1c8   : > { %1342 = vrot.lane.b32.xlu0 %v737_v33, %s4896_s27 }
 0x1c9   : > { %1436 = vrot.lane.b32.xlu1 %v658_v51, %s4897_s29 }
 0x1ca   : > { %v5956_v56 = vpop.permute.xlu0 %1458 }
 0x1cb   : > { %v1553_v37 = vpop.permute.xlu1 %1552 }
 0x1cc   : > { %1468 = vrot.lane.b32.xlu0 %v5462_v47, %s4897_s29  ;;  %v1805_v47 = vsel %vm1800_vm2, %v1772_v53, %v5470_v34  ;;  %v1854_v34 = vsel %vm1833_vm4, %v5561_v3, %v5690_v23  ;;  %v691_v3 = vld [vmem:[#allocation2 + $0xb1] sm:$0xff] }
 0x1cd   : > { %1438 = vrot.lane.b32.xlu1 %v659_v9, %s4897_s29  ;;  %v1838_v55 = vsel %vm1833_vm4, %v1805_v47, %v5626_v22  ;;  %v1887_v22 = vsel %vm1866_vm5, %v1854_v34, %v5876_v30  ;;  %v707_v30 = vld [vmem:[#allocation2 + $0x171] sm:$0xff]  ;;  %v661_v34 = vld [vmem:[#allocation2 + $0xc8] sm:$0xff] }
 0x1ce   : > { %v1585_v16 = vpop.permute.xlu0 %1584  ;;  %v1871_v32 = vsel %vm1866_vm5, %v1838_v55, %v5866_v13  ;;  %v1920_v13 = vsel %vm1899_vm6, %v1887_v22, %v1329_v11  ;;  %v7627_v11 = vld [vmem:[#allocation11_spill] sm:$0xff]  ;;  %v7629_v22 = vld [vmem:[#allocation12_spill] sm:$0xff] }
 0x1cf   : > { %v5963_v19 = vpop.permute.xlu1 %1172  ;;  %v1904_v50 = vsel %vm1899_vm6, %v1871_v32, %v1297_v41  ;;  %v1953_v41 = vsel %vm1932_vm7, %v1920_v13, %v1457_v52  ;;  %v1773_v4 = vsel %vm325_vm0, %v5310_v60, %v7627_v11  ;;  %v1855_v52 = vsel %vm1833_vm4, %v5564_v28, %v5692_v15 }
 0x1d0   : > { %1470 = vrot.lane.b32.xlu0 %v5961_v2, %s4897_s29  ;;  %v1937_v57 = vsel %vm1932_vm7, %v1904_v50, %v1425_v31  ;;  %v1986_v23 = vsel %vm1965_vm8, %v1953_v41, %v1585_v16  ;;  %v1806_v7 = vsel %vm1800_vm2, %v1773_v4, %v7628_v40  ;;  %v692_v41 = vld [vmem:[#allocation2 + $0xc1] sm:$0xff] }
 0x1d1   : > { %1564 = vrot.lane.b32.xlu1 %v690_v17, %s4898_s9  ;;  %v1970_v46 = vsel %vm1965_vm8, %v1937_v57, %v1553_v37  ;;  %v1839_v29 = vsel %vm1833_vm4, %v1806_v7, %v5628_v62  ;;  %v1888_v62 = vsel %vm1866_vm5, %v1855_v52, %v5914_v36  ;;  %v708_v4 = vld [vmem:[#allocation2 + $0x181] sm:$0xff] }
 0x1d2   : > { %v5973_v24 = vpop.permute.xlu0 %1204  ;;  %v1872_v31 = vsel %vm1866_vm5, %v1839_v29, %v5904_v54  ;;  %v1921_v16 = vsel %vm1899_vm6, %v1888_v62, %v5950_v27  ;;  %v723_v27 = vld [vmem:[#allocation2 + $0xb2] sm:$0xff]  ;;  %v7631_v52 = vld [vmem:[#allocation14_spill] sm:$0xff] }
 0x1d3   : > { %v1555_v61 = vpop.permute.xlu1 %1554  ;;  %v1905_v60 = vsel %vm1899_vm6, %v1872_v31, %v5945_v25 }
 0x1d4   : > { %1596 = vrot.lane.b32.xlu0 %v706_v42, %s4898_s9  ;;  %v1938_v51 = vsel %vm1932_vm7, %v1905_v60, %v1427_v21  ;;  %v4796_v60 = vld [vmem:[#allocation2 + $0x50] sm:$0xff] }
 0x1d5   : > { %1090 = vrot.lane.b32.xlu1 %v580_v38, %s4894_s24  ;;  %v1971_v37 = vsel %vm1965_vm8, %v1938_v51, %v1555_v61  ;;  %v660_v38 = vld [vmem:[#allocation2 + $0xc0] sm:$0xff]  ;;  %v1775_v51 = vsel %vm325_vm0, %v4796_v60, %v7631_v52 }
 0x1d6   : > { %v1587_v12 = vpop.permute.xlu0 %1586  ;;  %v676_v61 = vld [vmem:[#allocation2 + $0x180] sm:$0xff]  ;;  %v1808_v62 = vsel %vm1800_vm2, %v1775_v51, %v5480_v59 }
 0x1d7   : > { %v1681_v20 = vpop.permute.xlu1 %1680 }
 0x1d8   : > { %v2003_v6 = vsel %vm1998_vm9, %v1970_v46, %v1681_v20  ;;  %1184 = vrot.lane.b32.xlu0 %v690_v17, %s4895_s25  ;;  %v1954_v17 = vsel %vm1932_vm7, %v1921_v16, %v5956_v56  ;;  %v739_v56 = vld [vmem:[#allocation2 + $0x172] sm:$0xff]  ;;  %v677_v20 = vld [vmem:[#allocation2 + $0x188] sm:$0xff]  ;;  %v1841_v16 = vsel %vm1833_vm4, %v1808_v62, %v5636_v1 }
 0x1d9   : > { %1216 = vrot.lane.b32.xlu1 %v706_v42, %s4895_s25  ;;  %4678 = vmatprep.mubr.msk.f32.mxu0 %vm2035_vm10, %v2003_v6  ;;  %v1987_v28 = vsel %vm1965_vm8, %v1954_v17, %v1587_v12  ;;  %v4795_v12 = vld [vmem:[#allocation2 + $0x48] sm:$0xff]  ;;  %v4797_v17 = vld [vmem:[#allocation2 + $0x110] sm:$0xff] }
 0x1da   : > { %v1713_v45 = vpop.permute.xlu0 %1712  ;;  %v1774_v46 = vsel %vm325_vm0, %v4795_v12, %v7629_v22  ;;  %v724_v1 = vld [vmem:[#allocation2 + $0xc2] sm:$0xff]  ;;  %v725_v12 = vld [vmem:[#allocation2 + $0xca] sm:$0xff] }
 0x1db   : > { %v2019_v43 = vsel %vm1998_vm9, %v1986_v23, %v1713_v45  ;;  %v5997_v18 = vpop.permute.xlu1 %1174  ;;  %v1807_v13 = vsel %vm1800_vm2, %v1774_v46, %v5478_v35  ;;  %v7630_v45 = vld [vmem:[#allocation28_spill] sm:$0xff]  ;;  %v741_v46 = vld [vmem:[#allocation2 + $0x18a] sm:$0xff] }
 0x1dc   : > { %1566 = vrot.lane.b32.xlu0 %v691_v3, %s4898_s9  ;;  %4702 = vmatprep.mubr.msk.f32.mxu1 %vm2035_vm10, %v2019_v43 }
 0x1dd   : > { %1598 = vrot.lane.b32.xlu1 %v707_v30, %s4898_s9 }
 0x1de   : > { %v6007_v10 = vpop.permute.xlu0 %1206 }
 0x1df   : > { %v1301_v33 = vpop.permute.xlu1 %1300 }
 0x1e0   : > { %1692 = vrot.lane.b32.xlu0 %v722_v58, %s4899_s11 }
 0x1e1   : > { %1724 = vrot.lane.b32.xlu1 %v738_v48, %s4899_s11 }
 0x1e2   : > { %v1333_v9 = vpop.permute.xlu0 %1332 }
 0x1e3   : > { %v1683_v54 = vpop.permute.xlu1 %1682 }
 0x1e4   : > { %v2004_v25 = vsel %vm1998_vm9, %v1971_v37, %v1683_v54  ;;  %1186 = vrot.lane.b32.xlu0 %v691_v3, %s4895_s25  ;;  %v1840_v3 = vsel %vm1833_vm4, %v1807_v13, %v5634_v0  ;;  %v709_v54 = vld [vmem:[#allocation2 + $0x189] sm:$0xff] }
 0x1e5   : > { %1218 = vrot.lane.b32.xlu1 %v707_v30, %s4895_s25  ;;  %4679 = vmatmul.mubr.msk.f32.gmra.mxu0 %vm2035_vm10, %v2004_v25  ;;  %v1790_v30 = vsel %vm325_vm0, %v5414_v49, %v7630_v45  ;;  %v1873_v43 = vsel %vm1866_vm5, %v1840_v3, %v5963_v19  ;;  %v662_v3 = vld [vmem:[#allocation2 + $0xd8] sm:$0xff] }
 0x1e6   : > { %v1715_v15 = vpop.permute.xlu0 %1714  ;;  %v1823_v11 = vsel %vm1800_vm2, %v1790_v30, %v5570_v63  ;;  %v1906_v35 = vsel %vm1899_vm6, %v1873_v43, %v1301_v33  ;;  %v678_v45 = vld [vmem:[#allocation2 + $0x198] sm:$0xff]  ;;  %v4798_v43 = vld [vmem:[#allocation2 + $0x60] sm:$0xff] }
 0x1e7   : > { %v2020_v36 = vsel %vm1998_vm9, %v1987_v28, %v1715_v15  ;;  %v6034_v21 = vpop.permute.xlu1 %1302  ;;  %v1856_v0 = vsel %vm1833_vm4, %v1823_v11, %v5698_v8  ;;  %v7632_v28 = vld [vmem:[#allocation30_spill] sm:$0xff]  ;;  %v7633_v11 = vld [vmem:[#allocation16_spill] sm:$0xff] }
 0x1e8   : > { %1312 = vrot.lane.b32.xlu0 %v722_v58, %s4896_s27  ;;  %4703 = vmatmul.mubr.msk.f32.gmra.mxu1 %vm2035_vm10, %v2020_v36  ;;  %v1889_v49 = vsel %vm1866_vm5, %v1856_v0, %v5973_v24  ;;  %v1791_v15 = vsel %vm325_vm0, %v4797_v17, %v7632_v28  ;;  %v1874_v36 = vsel %vm1866_vm5, %v1841_v16, %v5997_v18  ;;  %v695_v28 = vld [vmem:[#allocation2 + $0xe1] sm:$0xff] }
 0x1e9   : > { %1344 = vrot.lane.b32.xlu1 %v738_v48, %s4896_s27  ;;  %v1922_v48 = vsel %vm1899_vm6, %v1889_v49, %v1333_v9  ;;  %v693_v9 = vld [vmem:[#allocation2 + $0xc9] sm:$0xff]  ;;  %v1824_v59 = vsel %vm1800_vm2, %v1791_v15, %v5572_v39 }
 0x1ea   : > { %v6039_v14 = vpop.permute.xlu0 %1334 }
 0x1eb   : > { %v1429_v53 = vpop.permute.xlu1 %1428 }
 0x1ec   : > { %1694 = vrot.lane.b32.xlu0 %v723_v27, %s4899_s11  ;;  %v1939_v58 = vsel %vm1932_vm7, %v1906_v35, %v1429_v53  ;;  %v1776_v35 = vsel %vm325_vm0, %v4798_v43, %v7633_v11  ;;  %v743_v11 = vld [vmem:[#allocation2 + $0x1a2] sm:$0xff] }
 0x1ed   : > { %1726 = vrot.lane.b32.xlu1 %v739_v56, %s4899_s11  ;;  %v1809_v0 = vsel %vm1800_vm2, %v1776_v35, %v5486_v26 }
 0x1ee   : > { %v1461_v42 = vpop.permute.xlu0 %1460  ;;  %v1842_v49 = vsel %vm1833_vm4, %v1809_v0, %v5642_v44  ;;  %v7636_v44 = vld [vmem:[#allocation66_spill] sm:$0xff] }
 0x1ef   : > { %v6043_v47 = vpop.permute.xlu1 %1430  ;;  %v1955_v29 = vsel %vm1932_vm7, %v1922_v48, %v1461_v42  ;;  %v7634_v48 = vld [vmem:[#allocation32_spill] sm:$0xff] }
 0x1f0   : > { %1314 = vrot.lane.b32.xlu0 %v723_v27, %s4896_s27  ;;  %v1907_v27 = vsel %vm1899_vm6, %v1874_v36, %v6034_v21 }
 0x1f1   : > { %1346 = vrot.lane.b32.xlu1 %v739_v56, %s4896_s27  ;;  %v1857_v56 = vsel %vm1833_vm4, %v1824_v59, %v5700_v5  ;;  %v1940_v53 = vsel %vm1932_vm7, %v1907_v27, %v6043_v47 }
 0x1f2   : > { %v6047_v55 = vpop.permute.xlu0 %1462  ;;  %v1890_v18 = vsel %vm1866_vm5, %v1857_v56, %v6007_v10  ;;  %v7637_v56 = vld [vmem:[#allocation17_spill] sm:$0xff] }
 0x1f3   : > { %v1557_v32 = vpop.permute.xlu1 %1556  ;;  %v1923_v21 = vsel %vm1899_vm6, %v1890_v18, %v6039_v14 }
 0x1f4   : > { %1440 = vrot.lane.b32.xlu0 %v660_v38, %s4897_s29  ;;  %v1972_v19 = vsel %vm1965_vm8, %v1939_v58, %v1557_v32  ;;  %v740_v38 = vld [vmem:[#allocation2 + $0x182] sm:$0xff]  ;;  %v1956_v5 = vsel %vm1932_vm7, %v1923_v21, %v6047_v55  ;;  %v7639_v21 = vld [vmem:[#allocation59_spill] sm:$0xff] }
 0x1f5   : > { %1472 = vrot.lane.b32.xlu1 %v676_v61, %s4897_s29 }
 0x1f6   : > { %v1589_v50 = vpop.permute.xlu0 %1588 }
 0x1f7   : > { %v6051_v57 = vpop.permute.xlu1 %1176  ;;  %v1988_v8 = vsel %vm1965_vm8, %v1955_v29, %v1589_v50 }
 0x1f8   : > { %1092 = vrot.lane.b32.xlu0 %v676_v61, %s4894_s24  ;;  %v1875_v29 = vsel %vm1866_vm5, %v1842_v49, %v6051_v57 }
 0x1f9   : > { %1442 = vrot.lane.b32.xlu1 %v661_v34, %s4897_s29 }
 0x1fa   : > { %v6059_v6 = vpop.permute.xlu0 %1208 }
 0x1fb   : > { %v1559_v23 = vpop.permute.xlu1 %1558 }
 0x1fc   : > { %1474 = vrot.lane.b32.xlu0 %v677_v20, %s4897_s29  ;;  %v1973_v61 = vsel %vm1965_vm8, %v1940_v53, %v1559_v23 }
 0x1fd   : > { %1568 = vrot.lane.b32.xlu1 %v692_v41, %s4898_s9 }
 0x1fe   : > { %v1591_v40 = vpop.permute.xlu0 %1590 }
 0x1ff   : > { %v1685_v7 = vpop.permute.xlu1 %1684  ;;  %v1989_v47 = vsel %vm1965_vm8, %v1956_v5, %v1591_v40  ;;  %v679_v40 = vld [vmem:[#allocation2 + $0x1a0] sm:$0xff] }
 0x200   : > { %v2005_v63 = vsel %vm1998_vm9, %v1972_v19, %v1685_v7  ;;  %1600 = vrot.lane.b32.xlu0 %v708_v4, %s4898_s9  ;;  %v4799_v7 = vld [vmem:[#allocation2 + $0x120] sm:$0xff] }
 0x201   : > { %1094 = vrot.lane.b32.xlu1 %v677_v20, %s4894_s24  ;;  %4681 = vmatprep.mubr.msk.f32.mxu0 %vm2035_vm10, %v2005_v63  ;;  %v1792_v63 = vsel %vm325_vm0, %v4799_v7, %v7634_v48  ;;  %s4819_s24 = scalar_lea.vmem %s4818_s8, 2048 }
 0x202   : > { %v1717_v33 = vpop.permute.xlu0 %1716 }
 0x203   : > { %v2021_v24 = vsel %vm1998_vm9, %v1988_v8, %v1717_v33  ;;  %v6087_v31 = vpop.permute.xlu1 %1178  ;;  %v7635_v8 = vld [vmem:[#allocation51_spill] sm:$0xff] }
 0x204   : > { %1188 = vrot.lane.b32.xlu0 %v692_v41, %s4895_s25  ;;  %4705 = vmatprep.mubr.msk.f32.mxu1 %vm2035_vm10, %v2021_v24  ;;  %v1825_v33 = vsel %vm1800_vm2, %v1792_v63, %v7635_v8  ;;  %v694_v24 = vld [vmem:[#allocation2 + $0xd9] sm:$0xff] }
 0x205   : > { %1220 = vrot.lane.b32.xlu1 %v708_v4, %s4895_s25  ;;  %v663_v4 = vld [vmem:[#allocation2 + $0xe0] sm:$0xff]  ;;  %v1858_v60 = vsel %vm1833_vm4, %v1825_v33, %v7636_v44  ;;  %v4802_v8 = vld [vmem:[#allocation2 + $0x158] sm:$0xff] }
 0x206   : > { %v6096_v37 = vpop.permute.xlu0 %1210  ;;  %v1891_v57 = vsel %vm1866_vm5, %v1858_v60, %v6059_v6  ;;  %v711_v6 = vld [vmem:[#allocation2 + $0x1a1] sm:$0xff]  ;;  %v7644_v44 = vld [vmem:[#allocation56_spill] sm:$0xff] }
 0x207   : > { %v6100_v25 = vpop.permute.xlu1 %1304  ;;  %v7643_v33 = vld [vmem:[#allocation37_spill] sm:$0xff] }
 0x208   : > { %1570 = vrot.lane.b32.xlu0 %v693_v9, %s4898_s9  ;;  %v1908_v26 = vsel %vm1899_vm6, %v1875_v29, %v6100_v25 }
 0x209   : > { %1602 = vrot.lane.b32.xlu1 %v709_v54, %s4898_s9 }
 0x20a   : > { %v1337_v42 = vpop.permute.xlu0 %1336 }
 0x20b   : > { %v1687_v39 = vpop.permute.xlu1 %1686  ;;  %v1924_v16 = vsel %vm1899_vm6, %v1891_v57, %v1337_v42  ;;  %v726_v42 = vld [vmem:[#allocation2 + $0xda] sm:$0xff] }
 0x20c   : > { %v2006_v32 = vsel %vm1998_vm9, %v1973_v61, %v1687_v39  ;;  %1696 = vrot.lane.b32.xlu0 %v724_v1, %s4899_s11  ;;  %v742_v39 = vld [vmem:[#allocation2 + $0x19a] sm:$0xff] }
 0x20d   : > { %1728 = vrot.lane.b32.xlu1 %v740_v38, %s4899_s11  ;;  %4682 = vmatmul.mubr.msk.f32.gmra.mxu0 %vm2035_vm10, %v2006_v32 }
 0x20e   : > { %v1719_v10 = vpop.permute.xlu0 %1718 }
 0x20f   : > { %v2022_v50 = vsel %vm1998_vm9, %v1989_v47, %v1719_v10  ;;  %v6129_v34 = vpop.permute.xlu1 %1306  ;;  %v4801_v47 = vld [vmem:[#allocation2 + $0x128] sm:$0xff]  ;;  %v7640_v10 = vld [vmem:[#allocation33_spill] sm:$0xff] }
 0x210   : > { %1190 = vrot.lane.b32.xlu0 %v693_v9, %s4895_s25  ;;  %4706 = vmatmul.mubr.msk.f32.gmra.mxu1 %vm2035_vm10, %v2022_v50  ;;  %v710_v9 = vld [vmem:[#allocation2 + $0x199] sm:$0xff]  ;;  %v1793_v50 = vsel %vm325_vm0, %v4801_v47, %v7640_v10 }
 0x211   : > { %1222 = vrot.lane.b32.xlu1 %v709_v54, %s4895_s25 }
 0x212   : > { %v6134_v14 = vpop.permute.xlu0 %1338 }
 0x213   : > { %v1433_v55 = vpop.permute.xlu1 %1432 }
 0x214   : > { %1316 = vrot.lane.b32.xlu0 %v724_v1, %s4896_s27  ;;  %v1941_v52 = vsel %vm1932_vm7, %v1908_v26, %v1433_v55  ;;  %v4800_v1 = vld [vmem:[#allocation2 + $0x68] sm:$0xff]  ;;  %v1797_v26 = vsel %vm325_vm0, %v4802_v8, %v7643_v33  ;;  %v4807_v33 = vld [vmem:[#allocation2 + $0x140] sm:$0xff] }
 0x215   : > { %1348 = vrot.lane.b32.xlu1 %v740_v38, %s4896_s27  ;;  %v1777_v53 = vsel %vm325_vm0, %v4800_v1, %v7637_v56  ;;  %v7638_v38 = vld [vmem:[#allocation44_spill] sm:$0xff]  ;;  %v1830_v60 = vsel %vm1800_vm2, %v1797_v26, %v7644_v44  ;;  %v7655_v26 = vld [vmem:[#allocation35_spill] sm:$0xff]  ;;  %v7656_v44 = vld [vmem:[#allocation46_spill] sm:$0xff] }
 0x216   : > { %v1465_v22 = vpop.permute.xlu0 %1464  ;;  %v1810_v18 = vsel %vm1800_vm2, %v1777_v53, %v7638_v38  ;;  %v7649_v1 = vld [vmem:[#allocation60_spill] sm:$0xff] }
 0x217   : > { %v6138_v20 = vpop.permute.xlu1 %1434  ;;  %v1957_v17 = vsel %vm1932_vm7, %v1924_v16, %v1465_v22  ;;  %v1843_v32 = vsel %vm1833_vm4, %v1810_v18, %v7639_v21 }
 0x218   : > { %1698 = vrot.lane.b32.xlu0 %v725_v12, %s4899_s11  ;;  %v1876_v55 = vsel %vm1866_vm5, %v1843_v32, %v6087_v31 }
 0x219   : > { %1730 = vrot.lane.b32.xlu1 %v741_v46, %s4899_s11 }
 0x21a   : > { %v6142_v13 = vpop.permute.xlu0 %1466 }
 0x21b   : > { %v1561_v41 = vpop.permute.xlu1 %1560 }
 0x21c   : > { %1318 = vrot.lane.b32.xlu0 %v725_v12, %s4896_s27  ;;  %v1974_v62 = vsel %vm1965_vm8, %v1941_v52, %v1561_v41  ;;  %v7641_v12 = vld [vmem:[#allocation52_spill] sm:$0xff]  ;;  %v727_v41 = vld [vmem:[#allocation2 + $0xe2] sm:$0xff] }
 0x21d   : > { %1350 = vrot.lane.b32.xlu1 %v741_v46, %s4896_s27  ;;  %v1826_v22 = vsel %vm1800_vm2, %v1793_v50, %v7641_v12  ;;  %v1909_v46 = vsel %vm1899_vm6, %v1876_v55, %v6129_v34  ;;  %s292_s27 = sand.u32 1, %s4873_s19  }
 0x21e   : > { %v1593_v23 = vpop.permute.xlu0 %1592  ;;  %s7458_s21 = scalar_lea.sflag [#allocation5], %s292_s27 }
 0x21f   : > { %v6146_v30 = vpop.permute.xlu1 %1180  ;;  %v1990_v15 = vsel %vm1965_vm8, %v1957_v17, %v1593_v23  ;;  %v7646_v17 = vld [vmem:[#allocation34_spill] sm:$0xff] }
 0x220   : > { %1444 = vrot.lane.b32.xlu0 %v662_v3, %s4897_s29  ;;  %v7642_v3 = vld [vmem:[#allocation67_spill] sm:$0xff] }
 0x221   : > { %1476 = vrot.lane.b32.xlu1 %v678_v45, %s4897_s29  ;;  %v1859_v23 = vsel %vm1833_vm4, %v1826_v22, %v7642_v3  ;;  %v1942_v45 = vsel %vm1932_vm7, %v1909_v46, %v6138_v20  ;;  %v7651_v3 = vld [vmem:[#allocation21_spill] sm:$0xff] }
 0x222   : > { %v6154_v58 = vpop.permute.xlu0 %1212  ;;  %v1892_v31 = vsel %vm1866_vm5, %v1859_v23, %v6096_v37  ;;  %v7652_v23 = vld [vmem:[#allocation48_spill] sm:$0xff] }
 0x223   : > { %v1563_v19 = vpop.permute.xlu1 %1562  ;;  %v1925_v34 = vsel %vm1899_vm6, %v1892_v31, %v6134_v14 }
 0x224   : > { %1446 = vrot.lane.b32.xlu0 %v663_v4, %s4897_s29  ;;  %v1975_v35 = vsel %vm1965_vm8, %v1942_v45, %v1563_v19 }
 0x225   : > { %1478 = vrot.lane.b32.xlu1 %v679_v40, %s4897_s29  ;;  %v1958_v40 = vsel %vm1932_vm7, %v1925_v34, %v6142_v13  ;;  %v2533_v34 = vlaneseq  ;;  %s4578_s29 = sshll.u32 %s292_s27, 6 }
 0x226   : > { %v1595_v51 = vpop.permute.xlu0 %1594 }
 0x227   : > { %v1689_v54 = vpop.permute.xlu1 %1688  ;;  %v1991_v20 = vsel %vm1965_vm8, %v1958_v40, %v1595_v51 }
 0x228   : > { %v2007_v25 = vsel %vm1998_vm9, %v1974_v62, %v1689_v54  ;;  %1572 = vrot.lane.b32.xlu0 %v694_v24, %s4898_s9  ;;  %v4803_v62 = vld [vmem:[#allocation2 + $0x78] sm:$0xff]  ;;  %v7645_v54 = vld [vmem:[#allocation18_spill] sm:$0xff] }
 0x229   : > { %1604 = vrot.lane.b32.xlu1 %v710_v9, %s4898_s9  ;;  %4684 = vmatprep.mubr.msk.f32.mxu0 %vm2035_vm10, %v2007_v25  ;;  %v1778_v16 = vsel %vm325_vm0, %v4803_v62, %v7645_v54  ;;  %v4804_v25 = vld [vmem:[#allocation2 + $0x138] sm:$0xff]  ;;  %v7658_v54 = vld [vmem:[#allocation61_spill] sm:$0xff] }
 0x22a   : > { %v1721_v36 = vpop.permute.xlu0 %1720 }
 0x22b   : > { %v2023_v59 = vsel %vm1998_vm9, %v1990_v15, %v1721_v36  ;;  %v6182_v27 = vpop.permute.xlu1 %1182  ;;  %v7647_v15 = vld [vmem:[#allocation45_spill] sm:$0xff] }
 0x22c   : > { %1574 = vrot.lane.b32.xlu0 %v695_v28, %s4898_s9  ;;  %4708 = vmatprep.mubr.msk.f32.mxu1 %vm2035_vm10, %v2023_v59  ;;  %v1794_v28 = vsel %vm325_vm0, %v4804_v25, %v7646_v17  ;;  %v1811_v36 = vsel %vm1800_vm2, %v1778_v16, %v7647_v15  ;;  %v2534_v17 = vshrl.u32 %v2533_v34, 7  ;;  %v7659_v15 = vld [vmem:[#allocation69_spill] sm:$0xff] }
 0x22d   : > { %1606 = vrot.lane.b32.xlu1 %v711_v6, %s4898_s9  ;;  %v7648_v6 = vld [vmem:[#allocation53_spill] sm:$0xff]  ;;  %v1844_v56 = vsel %vm1833_vm4, %v1811_v36, %v7649_v1  ;;  %s7136_s9 = scalar_lea.vmem [#allocation4], %s4578_s29 }
 0x22e   : > { %v6191_v61 = vpop.permute.xlu0 %1214  ;;  %v1827_v59 = vsel %vm1800_vm2, %v1794_v28, %v7648_v6  ;;  %v1877_v18 = vsel %vm1866_vm5, %v1844_v56, %v6146_v30  ;;  %s4449_s10 = sshll.u32 %s7136_s9, 4  ;;  %s7450_s10 = int_to_ptr.vmem [resolvable:$true] %s4449_s10 }
 0x22f   : > { %v1309_v5 = vpop.permute.xlu1 %1308  ;;  %s4813_s13 = scalar_lea.vmem %s7450_s10, 1024  ;;  %p4820_p1 = scmp.lt.s32.totalorder %s7450_s10, %s4818_s8 }
 0x230   : > { %1700 = vrot.lane.b32.xlu0 %v726_v42, %s4899_s11  ;;  %v7650_v42 = vld [vmem:[#allocation68_spill] sm:$0xff]  ;;  %v1910_v32 = vsel %vm1899_vm6, %v1877_v18, %v1309_v5  ;;  %p4814_p12 = scmp.ne.s32.totalorder %s7450_s10, %s4813_s13  ;;  %p4821_p2 = scmp.lt.s32.totalorder %s4819_s24, %s4813_s13 }
 0x231   : > { %1732 = vrot.lane.b32.xlu1 %v742_v39, %s4899_s11  ;;  %v1860_v38 = vsel %vm1833_vm4, %v1827_v59, %v7650_v42  ;;  %v6302_v59 = vld [vmem:[%s7507_s4] ss:$0 sm:$0xff]  ;;  %v7660_v18 = vld [vmem:[#allocation20_spill] sm:$0xff] }
 0x232   : > { %v1341_v43 = vpop.permute.xlu0 %1340  ;;  %v1893_v21 = vsel %vm1866_vm5, %v1860_v38, %v6154_v58  ;;  %v4808_v38 = vld [vmem:[#allocation2 + $0x90] sm:$0xff]  ;;  %p4815_p13 = pnand %p4814_p12, %p4974_p4  ;;  %p4822_p3 = por %p4821_p2, %p4820_p1 }
 0x233   : > { %v1691_v4 = vpop.permute.xlu1 %1690  ;;  %v1926_v47 = vsel %vm1899_vm6, %v1893_v21, %v1341_v43  ;;  %v1780_v21 = vsel %vm325_vm0, %v4808_v38, %v7660_v18 }
 0x234   : > { %v2008_v0 = vsel %vm1998_vm9, %v1975_v35, %v1691_v4  ;;  %1702 = vrot.lane.b32.xlu0 %v727_v41, %s4899_s11  ;;  %v4805_v41 = vld [vmem:[#allocation2 + $0x98] sm:$0xff]  ;;  %v4900_v35 = vmov 1983009808   ;;  %p4816_p0 = pneg %p4815_p13 }
 0x235   : > { %1734 = vrot.lane.b32.xlu1 %v743_v11, %s4899_s11  ;;  %4685 = vmatmul.mubr.msk.f32.gmra.mxu0 %vm2035_vm10, %v2008_v0  ;;  %v1781_v58 = vsel %vm325_vm0, %v4805_v41, %v7651_v3  ;;  %v7653_v11 = vld [vmem:[#allocation63_spill] sm:$0xff]  ;;  %v2531_v4 = vunpack.c.l.s4 %v4900_v35 }
 0x236   : > { %v1723_v37 = vpop.permute.xlu0 %1722  ;;  %v1814_v45 = vsel %vm1800_vm2, %v1781_v58, %v7652_v23  ;;  %v7664_v58 = vld [vmem:[#allocation39_spill] sm:$0xff]  ;;  %p4823_p5 = pnand %p4822_p3, %p4816_p0 }
 0x237   : > { %v2024_v49 = vsel %vm1998_vm9, %v1991_v20, %v1723_v37  ;;  %v6222_v19 = vpop.permute.xlu1 %1310  ;;  %v1847_v31 = vsel %vm1833_vm4, %v1814_v45, %v7653_v11  ;;  %v2532_v25 = vunpack.c.0.s8 %v2531_v4 }
 0x238   : > { %4709 = vmatmul.mubr.msk.f32.gmra.mxu1 %vm2035_vm10, %v2024_v49  ;;  %v4806_v49 = vld [vmem:[#allocation2 + $0x80] sm:$0xff] }
 0x23a   : > { %v6225_v14 = vpop.permute.xlu0 %1342 }
 0x23b   : > { %v1437_v7 = vpop.permute.xlu1 %1436 }
 0x23c   : > { %v1943_v10 = vsel %vm1932_vm7, %v1910_v32, %v1437_v7  ;;  %v7654_v7 = vld [vmem:[#allocation19_spill] sm:$0xff] }
 0x23e   : > { %v1469_v48 = vpop.permute.xlu0 %1468 }
 0x23f   : > { %v6227_v63 = vpop.permute.xlu1 %1438  ;;  %v1959_v50 = vsel %vm1932_vm7, %v1926_v47, %v1469_v48  ;;  %v1779_v48 = vsel %vm325_vm0, %v4806_v49, %v7654_v7 }
 0x242   : > { %v6229_v13 = vpop.permute.xlu0 %1470 }
 0x243   : > { %v1565_v29 = vpop.permute.xlu1 %1564 }
 0x244   : > { %v1976_v55 = vsel %vm1965_vm8, %v1943_v10, %v1565_v29 }
 0x246   : > { %v1597_v24 = vpop.permute.xlu0 %1596 }
 0x247   : > { %v1091_v52 = vpop.permute.xlu1 %1090  ;;  %v1992_v22 = vsel %vm1965_vm8, %v1959_v50, %v1597_v24  ;;  %v1795_v24 = vsel %vm325_vm0, %v4807_v33, %v7655_v26  ;;  %v7669_v33 = vld [vmem:[#allocation62_spill] sm:$0xff] }
 0x248   : > { %v1863_v51 = vsel %vm1833_vm4, %v1830_v60, %v1091_v52  ;;  %v1812_v60 = vsel %vm1800_vm2, %v1779_v48, %v7656_v44  ;;  %v7657_v52 = vld [vmem:[#allocation54_spill] sm:$0xff]  ;;  %v7671_v44 = vld [vmem:[#allocation49_spill] sm:$0xff] }
 0x249   : > { %v1828_v62 = vsel %vm1800_vm2, %v1795_v24, %v7657_v52  ;;  %v1845_v16 = vsel %vm1833_vm4, %v1812_v60, %v7658_v54  ;;  %v7668_v48 = vld [vmem:[#allocation58_spill] sm:$0xff]  ;;  %v7670_v24 = vld [vmem:[#allocation64_spill] sm:$0xff]  ;;  %v7672_v52 = vld [vmem:[#allocation65_spill] sm:$0xff] }
 0x24a   : > { %v6236_v9 = vpop.permute.xlu0 %1184  ;;  %v1861_v36 = vsel %vm1833_vm4, %v1828_v62, %v7659_v15  ;;  %v1878_v6 = vsel %vm1866_vm5, %v1845_v16, %v6182_v27  ;;  %v6360_v60 = vsel %vm1833_vm4, %v7671_v44, %v7670_v24  ;;  %v7673_v62 = vld [vmem:[#allocation50_spill] sm:$0xff] }
 0x24b   : > { %v6238_v57 = vpop.permute.xlu1 %1216  ;;  %v1894_v56 = vsel %vm1866_vm5, %v1861_v36, %v6191_v61  ;;  %v1911_v42 = vsel %vm1899_vm6, %v1878_v6, %v6222_v19  ;;  %v6365_v54 = vsel %vm1833_vm4, %v7673_v62, %v7672_v52  ;;  %v7674_v36 = vld [vmem:[#allocation70_spill] sm:$0xff] }
 0x24c   : > { %v1927_v27 = vsel %vm1899_vm6, %v1894_v56, %v6225_v14  ;;  %v1944_v32 = vsel %vm1932_vm7, %v1911_v42, %v6227_v63  ;;  %v7663_v14 = vld [vmem:[#allocation38_spill] sm:$0xff] }
 0x24d   : > { %v1960_v10 = vsel %vm1932_vm7, %v1927_v27, %v6229_v13 }
 0x24e   : > { %v1567_v53 = vpop.permute.xlu0 %1566 }
 0x24f   : > { %v6254_v39 = vpop.permute.xlu1 %1598  ;;  %v1977_v50 = vsel %vm1965_vm8, %v1944_v32, %v1567_v53 }
 0x250   : > { %v1993_v63 = vsel %vm1965_vm8, %v1960_v10, %v6254_v39  ;;  %v7666_v39 = vld [vmem:[#allocation55_spill] sm:$0xff] }
 0x252   : > { %v1693_v12 = vpop.permute.xlu0 %1692 }
 0x253   : > { %v2009_v30 = vsel %vm1998_vm9, %v1976_v55, %v1693_v12  ;;  %v1725_v46 = vpop.permute.xlu1 %1724  ;;  %v6321_v55 = vsub.s32 %v2532_v25, %v2534_v17  ;;  %v4809_v12 = vld [vmem:[#allocation2 + $0x150] sm:$0xff] }
 0x254   : > { %v2025_v5 = vsel %vm1998_vm9, %v1992_v22, %v1725_v46  ;;  %4687 = vmatprep.mubr.msk.f32.mxu0 %vm2035_vm10, %v2009_v30  ;;  %v7662_v22 = vld [vmem:[#allocation36_spill] sm:$0xff]  ;;  %v4810_v46 = vld [vmem:[#allocation2 + $0x168] sm:$0xff] }
 0x255   : > { %v4674_v43 = vpop.f32.mrf.mxu0  ;;  %4711 = vmatprep.mubr.msk.f32.mxu1 %vm2035_vm10, %v2025_v5  ;;  %7661 = vst [vmem:[#allocation40_spill] sm:$0xff] %v6321_v55  ;;  %v1796_v30 = vsel %vm325_vm0, %v4809_v12, %v7662_v22  ;;  %v1798_v41 = vsel %vm325_vm0, %v4810_v46, %v7663_v14  ;;  %v1799_v5 = vsel %vm325_vm0, %v5961_v2, %v7664_v58  ;;  %v7667_v2 = vld [vmem:[#allocation57_spill] sm:$0xff]  ;;  %vm4360_vm0 = vcmask 1044484  }
 0x256   : > { %2363 = vst.msk [vmem:[#allocation3 + $0x8] sm:$0xff] %vm2361_vm11, %v4674_v43  ;;  %v1187_v0 = vpop.permute.xlu0 %1186  ;;  %v1829_v4 = vsel %vm1800_vm2, %v1796_v30, %v7666_v39 }
 0x257   : > { %v6276_v40 = vsel %vm1866_vm5, %v1847_v31, %v1187_v0  ;;  %v2202_v20 = vpop.f32.mrf.mxu0  ;;  %v1219_v37 = vpop.permute.xlu1 %1218  ;;  %v7665_v31 = vld [vmem:[#allocation47_spill] sm:$0xff]  ;;  %v6344_v0 = vsel %vm1800_vm2, %v1798_v41, %v7667_v2  ;;  %v1862_v6 = vsel %vm1833_vm4, %v1829_v4, %v7674_v36 }
 0x258   : > { %2362 = vst.msk [vmem:[#allocation3] sm:$0xff] %vm2361_vm11, %v2202_v20  ;;  %v6282_v29 = vsel %vm1866_vm5, %v1863_v51, %v1219_v37  ;;  %v4698_v8 = vpop.f32.mrf.mxu1  ;;  %v1813_v35 = vsel %vm1800_vm2, %v1780_v21, %v7665_v31 }
 0x259   : > { %2379 = vst.msk [vmem:[#allocation3 + $0x88] sm:$0xff] %vm2361_vm11, %v4698_v8  ;;  %v6351_v8 = vsel %vm1800_vm2, %v1799_v5, %v7668_v48  ;;  %v6355_v26 = vsel %vm1833_vm4, %v1813_v35, %v7669_v33  ;;  %vm4364_vm2 = vcmask 1046534  }
 0x25a   : > { %v6293_v51 = vpop.permute.xlu0 %1312  ;;  %v2282_v28 = vpop.f32.mrf.mxu1 }
 0x25b   : > { %2378 = vst.msk [vmem:[#allocation3 + $0x80] sm:$0xff] %vm2361_vm11, %v2282_v28  ;;  %v6305_v1 = vpop.permute.xlu1 %1344 }
 0x25d   : > { %v2395_v47 = vld [vmem:[#allocation3 + $0x8] sm:$0xff] }
 0x25e   : > { %v2434_v61 = vadd.f32 %v6302_v59, %v2395_v47  ;;  %v1695_v19 = vpop.permute.xlu0 %1694 }
 0x25f   : > { %v2394_v3 = vld [vmem:[#allocation3] sm:$0xff]  ;;  %v2010_v13 = vsel %vm1998_vm9, %v1977_v50, %v1695_v19  ;;  %v1727_v53 = vpop.permute.xlu1 %1726 }
 0x260   : > { %v2466_v23 = vmax.f32 %v2434_v61, 0.0  ;;  %v2433_v45 = vadd.f32 %v6302_v59, %v2394_v3  ;;  %v2411_v43 = vld [vmem:[#allocation3 + $0x88] sm:$0xff]  ;;  %v2026_v11 = vsel %vm1998_vm9, %v1993_v63, %v1727_v53  ;;  %4688 = vmatmul.mubr.msk.f32.gmra.mxu0 %vm2035_vm10, %v2010_v13 }
 0x261   : > { %v2450_v34 = vadd.f32 %v6302_v59, %v2411_v43  ;;  %4712 = vmatmul.mubr.msk.f32.gmra.mxu1 %vm2035_vm10, %v2026_v11 }
 0x262   : > { %v2546_v20 = vcombine.high %v2466_v23, %v2466_v23  ;;  %v2553_v37 = vrot.slane %v2466_v23, %v6321_v55  ;;  %v2465_v49 = vmax.f32 %v2433_v45, 0.0  ;;  %v6347_v7 = vpop.permute.xlu0 %1314 }
 0x263   : > { %v6367_v16 = vpop.permute.xlu1 %1346  ;;  %v2482_v38 = vmax.f32 %v2450_v34, 0.0 }
 0x264   : > { %v2560_v25 = vrot.slane %v2546_v20, %v6321_v55  ;;  %v2561_v17 = vcombine.high %v2553_v37, %v2553_v37  ;;  %v3230_v28 = vsel %vm3201_vm12, %v2553_v37, -inf  ;;  %v2529_v15 = vcombine.high %v2465_v49, %v2465_v49 }
 0x265   : > { %v3231_v56 = vrot.slane %v3230_v28, 4  ;;  %v2536_v42 = vrot.slane %v2465_v49, %v6321_v55  ;;  %v2818_v36 = vcombine.high %v2482_v38, %v2482_v38 }
 0x266   : > { %v2562_v18 = vcombine.high %v2560_v25, %v2560_v25  ;;  %v3237_v21 = vsel %vm3201_vm12, %v2561_v17, -inf  ;;  %v3244_v27 = vsel %vm3201_vm12, %v2560_v25, -inf  ;;  %v2543_v32 = vrot.slane %v2529_v15, %v6321_v55  ;;  %v6377_v47 = vpop.permute.xlu0 %1440 }
 0x267   : > { %v3232_v10 = vmax.f32 %v3230_v28, %v3231_v56  ;;  %v3238_v50 = vrot.slane %v3237_v21, 4  ;;  %v3245_v61 = vrot.slane %v3244_v27, 4  ;;  %v2544_v19 = vcombine.high %v2536_v42, %v2536_v42  ;;  %v6379_v12 = vpop.permute.xlu1 %1472 }
 0x268   : > { %v3251_v22 = vsel %vm3201_vm12, %v2562_v18, -inf  ;;  %v2545_v30 = vcombine.high %v2543_v32, %v2543_v32  ;;  %v3202_v46 = vsel %vm3201_vm12, %v2536_v42, -inf  ;;  %v3216_v14 = vsel %vm3201_vm12, %v2543_v32, -inf  ;;  %v2410_v32 = vld [vmem:[#allocation3 + $0x80] sm:$0xff] }
 0x269   : > { %v3233_v41 = vrot.slane %v3232_v10, 2  ;;  %v3239_v63 = vmax.f32 %v3237_v21, %v3238_v50  ;;  %v3246_v3 = vmax.f32 %v3244_v27, %v3245_v61  ;;  %v3252_v13 = vrot.slane %v3251_v22, 4 }
 0x26a   : > { %v3203_v53 = vrot.slane %v3202_v46, 4  ;;  %v3209_v58 = vsel %vm3201_vm12, %v2544_v19, -inf  ;;  %v3217_v5 = vrot.slane %v3216_v14, 4  ;;  %v3223_v23 = vsel %vm3201_vm12, %v2545_v30, -inf  ;;  %v6386_v45 = vpop.permute.xlu0 %1092 }
 0x26b   : > { %v3234_v43 = vmax.f32 %v3232_v10, %v3233_v41  ;;  %v3240_v11 = vrot.slane %v3239_v63, 2  ;;  %v3247_v31 = vrot.slane %v3246_v3, 2  ;;  %v3253_v35 = vmax.f32 %v3251_v22, %v3252_v13  ;;  %v6388_v39 = vpop.permute.xlu1 %1442 }
 0x26c   : > { %v3204_v4 = vmax.f32 %v3202_v46, %v3203_v53  ;;  %v3210_v34 = vrot.slane %v3209_v58, 4  ;;  %v3218_v2 = vmax.f32 %v3216_v14, %v3217_v5  ;;  %v3224_v20 = vrot.slane %v3223_v23, 4 }
 0x26d   : > { %v3235_v37 = vrot.slane %v3234_v43, 1  ;;  %v3241_v49 = vmax.f32 %v3239_v63, %v3240_v11  ;;  %v3248_v48 = vmax.f32 %v3246_v3, %v3247_v31  ;;  %v3254_v33 = vrot.slane %v3253_v35, 2 }
 0x26e   : > { %v3205_v24 = vrot.slane %v3204_v4, 2  ;;  %v3211_v44 = vmax.f32 %v3209_v58, %v3210_v34  ;;  %v3219_v52 = vrot.slane %v3218_v2, 2  ;;  %v3225_v62 = vmax.f32 %v3223_v23, %v3224_v20  ;;  %v6390_v25 = vpop.permute.xlu0 %1474 }
 0x26f   : > { %v3242_v17 = vrot.slane %v3241_v49, 1  ;;  %v3249_v28 = vrot.slane %v3248_v48, 1  ;;  %v3255_v15 = vmax.f32 %v3253_v35, %v3254_v33  ;;  %v6392_v56 = vpop.permute.xlu1 %1568  ;;  %v3236_v42 = vmax.f32 %v3234_v43, %v3235_v37 }
 0x270   : > { %v3206_v18 = vmax.f32 %v3204_v4, %v3205_v24  ;;  %v3212_v21 = vrot.slane %v3211_v44, 2  ;;  %v3220_v27 = vmax.f32 %v3218_v2, %v3219_v52  ;;  %v1879_v10 = vsel %vm1866_vm5, %v6355_v26, %v6236_v9 }
 0x271   : > { %v1895_v50 = vsel %vm1866_vm5, %v1862_v6, %v6238_v57  ;;  %v3226_v61 = vrot.slane %v3225_v62, 2  ;;  %v2825_v19 = vrot.slane %v2482_v38, %v6321_v55  ;;  %v3243_v22 = vmax.f32 %v3241_v49, %v3242_v17 }
 0x272   : > { %v3250_v30 = vmax.f32 %v3248_v48, %v3249_v28  ;;  %v3256_v46 = vrot.slane %v3255_v15, 1  ;;  %v3207_v14 = vrot.slane %v3206_v18, 1  ;;  %v6400_v41 = vpop.permute.xlu0 %1600  ;;  %v2832_v63 = vrot.slane %v2818_v36, %v6321_v55 }
 0x273   : > { %v6405_v3 = vsel %vm1899_vm6, %v1879_v10, %v6293_v51  ;;  %v2449_v9 = vadd.f32 %v6302_v59, %v2410_v32  ;;  %v6410_v57 = vsel %vm1899_vm6, %v1895_v50, %v6305_v1  ;;  %v6412_v26 = vpop.permute.xlu1 %1094  ;;  %v6415_v6 = vsel %vm2361_vm11, %v3236_v42, -inf }
 0x274   : > { %v3213_v38 = vmax.f32 %v3211_v44, %v3212_v21  ;;  %v3221_v13 = vrot.slane %v3220_v27, 1  ;;  %v6420_v53 = vsel %vm1899_vm6, %v6276_v40, %v6347_v7  ;;  %v3227_v51 = vmax.f32 %v3225_v62, %v3226_v61 }
 0x275   : > { %v2833_v58 = vcombine.high %v2825_v19, %v2825_v19  ;;  %v2834_v5 = vcombine.high %v2832_v63, %v2832_v63  ;;  %v3678_v23 = vsel %vm3201_vm12, %v2825_v19, -inf  ;;  %v3257_v43 = vmax.f32 %v3255_v15, %v3256_v46 }
 0x276   : > { %v6424_v1 = vsel %vm2361_vm11, %v3243_v22, -inf  ;;  %v6427_v11 = vsel %vm2361_vm11, %v3250_v30, -inf  ;;  %v3208_v31 = vmax.f32 %v3206_v18, %v3207_v14  ;;  %v6429_v35 = vpop.permute.xlu0 %1188  ;;  %v3679_v4 = vrot.slane %v3678_v23, 4 }
 0x277   : > { %7675 = vst [vmem:[#allocation23_spill] sm:$0xff] %v6424_v1  ;;  %7676 = vst [vmem:[#allocation27_spill] sm:$0xff] %v6427_v11  ;;  %v3685_v34 = vsel %vm3201_vm12, %v2833_v58, -inf  ;;  %v3692_v40 = vsel %vm3201_vm12, %v2832_v63, -inf  ;;  %v3699_v7 = vsel %vm3201_vm12, %v2834_v5, -inf  ;;  %v6434_v2 = vpop.permute.xlu1 %1220  ;;  %v3214_v20 = vrot.slane %v3213_v38, 1 }
 0x278   : > { %v3222_v37 = vmax.f32 %v3220_v27, %v3221_v13  ;;  %v3686_v49 = vrot.slane %v3685_v34, 4  ;;  %v3693_v48 = vrot.slane %v3692_v40, 4  ;;  %v3680_v33 = vmax.f32 %v3678_v23, %v3679_v4 }
 0x279   : > { %v3700_v24 = vrot.slane %v3699_v7, 4  ;;  %v2481_v44 = vmax.f32 %v2449_v9, 0.0  ;;  %v6439_v52 = vsel %vm1899_vm6, %v6282_v29, %v6367_v16  ;;  %v6442_v62 = vsel %vm2361_vm11, %v3257_v43, -inf }
 0x27a   : > { %7677 = vst [vmem:[#allocation7_spill] sm:$0xff] %v6442_v62  ;;  %v3228_v17 = vrot.slane %v3227_v51, 1  ;;  %v3687_v28 = vmax.f32 %v3685_v34, %v3686_v49  ;;  %v3694_v15 = vmax.f32 %v3692_v40, %v3693_v48  ;;  %v6444_v36 = vpop.permute.xlu0 %1570  ;;  %v3681_v42 = vrot.slane %v3680_v33, 2 }
 0x27b   : > { %v3701_v18 = vmax.f32 %v3699_v7, %v3700_v24  ;;  %v2801_v21 = vcombine.high %v2481_v44, %v2481_v44  ;;  %v2808_v27 = vrot.slane %v2481_v44, %v6321_v55  ;;  %v6447_v32 = vpop.permute.xlu1 %1602  ;;  %v3215_v10 = vmax.f32 %v3213_v38, %v3214_v20 }
 0x27c   : > { %v3688_v50 = vrot.slane %v3687_v28, 2  ;;  %v3695_v61 = vrot.slane %v3694_v15, 2  ;;  %v6452_v29 = vsel %vm1833_vm4, %v6344_v0, %v6386_v45  ;;  %v3682_v16 = vmax.f32 %v3680_v33, %v3681_v42 }
 0x27d   : > { %v3702_v19 = vrot.slane %v3701_v18, 2  ;;  %v2815_v22 = vrot.slane %v2801_v21, %v6321_v55  ;;  %v2816_v30 = vcombine.high %v2808_v27, %v2808_v27  ;;  %v4677_v46 = vpop.f32.mrf.mxu0  ;;  %v3229_v14 = vmax.f32 %v3227_v51, %v3228_v17 }
 0x27e   : > { %v3689_v63 = vmax.f32 %v3687_v28, %v3688_v50  ;;  %v3696_v9 = vmax.f32 %v3694_v15, %v3695_v61  ;;  %v3650_v13 = vsel %vm3201_vm12, %v2808_v27, -inf  ;;  %2365 = vst.msk [vmem:[#allocation3 + $0x18] sm:$0xff] %vm2361_vm11, %v4677_v46  ;;  %v1697_v38 = vpop.permute.xlu0 %1696  ;;  %v3683_v58 = vrot.slane %v3682_v16, 1 }
 0x27f   : > { %v3703_v5 = vmax.f32 %v3701_v18, %v3702_v19  ;;  %v2817_v23 = vcombine.high %v2815_v22, %v2815_v22  ;;  %v3651_v43 = vrot.slane %v3650_v13, 4  ;;  %v1729_v0 = vpop.permute.xlu1 %1728  ;;  %v2212_v45 = vpop.f32.mrf.mxu0  ;;  %v3657_v40 = vsel %vm3201_vm12, %v2816_v30, -inf }
 0x280   : > { %v3690_v4 = vrot.slane %v3689_v63, 1  ;;  %v3697_v34 = vrot.slane %v3696_v9, 1  ;;  %v3664_v7 = vsel %vm3201_vm12, %v2815_v22, -inf  ;;  %2364 = vst.msk [vmem:[#allocation3 + $0x10] sm:$0xff] %vm2361_vm11, %v2212_v45  ;;  %v4701_v51 = vpop.f32.mrf.mxu1  ;;  %v6461_v20 = vsel %vm2361_vm11, %v3208_v31, -inf }
 0x281   : > { %v6464_v49 = vsel %vm2361_vm11, %v3222_v37, -inf  ;;  %v3652_v48 = vmax.f32 %v3650_v13, %v3651_v43  ;;  %v3658_v33 = vrot.slane %v3657_v40, 4  ;;  %2381 = vst.msk [vmem:[#allocation3 + $0x98] sm:$0xff] %vm2361_vm11, %v4701_v51  ;;  %v6468_v24 = vsel %vm2361_vm11, %v3215_v10, -inf }
 0x282   : > { %v3684_v44 = vmax.f32 %v3682_v16, %v3683_v58  ;;  %v3665_v17 = vrot.slane %v3664_v7, 4  ;;  %v3671_v28 = vsel %vm3201_vm12, %v2817_v23, -inf  ;;  %v6471_v15 = vpop.permute.xlu0 %1190  ;;  %v2292_v42 = vpop.f32.mrf.mxu1  ;;  %v3691_v18 = vmax.f32 %v3689_v63, %v3690_v4 }
 0x283   : > { %v3704_v31 = vrot.slane %v3703_v5, 1  ;;  %v3653_v21 = vrot.slane %v3652_v48, 2  ;;  %v3659_v27 = vmax.f32 %v3657_v40, %v3658_v33  ;;  %2380 = vst.msk [vmem:[#allocation3 + $0x90] sm:$0xff] %vm2361_vm11, %v2292_v42  ;;  %v6474_v37 = vpop.permute.xlu1 %1222  ;;  %v6477_v50 = vsel %vm2361_vm11, %v3229_v14, -inf }
 0x284   : > { %v3698_v10 = vmax.f32 %v3696_v9, %v3697_v34  ;;  %v3666_v61 = vmax.f32 %v3664_v7, %v3665_v17  ;;  %v3672_v16 = vrot.slane %v3671_v28, 4  ;;  %v1945_v30 = vsel %vm1932_vm7, %v6405_v3, %v6377_v47 }
 0x285   : > { %v3654_v19 = vmax.f32 %v3652_v48, %v3653_v21  ;;  %v3660_v22 = vrot.slane %v3659_v27, 2  ;;  %v1961_v46 = vsel %vm1932_vm7, %v6410_v57, %v6379_v12  ;;  %v1946_v14 = vsel %vm1932_vm7, %v6420_v53, %v6388_v39  ;;  %v2397_v58 = vld [vmem:[#allocation3 + $0x18] sm:$0xff] }
 0x286   : > { %v3667_v63 = vrot.slane %v3666_v61, 2  ;;  %v3673_v13 = vmax.f32 %v3671_v28, %v3672_v16  ;;  %v6491_v9 = vsel %vm1932_vm7, %v6439_v52, %v6390_v25  ;;  %v3705_v23 = vmax.f32 %v3703_v5, %v3704_v31  ;;  %v6499_v57 = vpop.permute.xlu0 %1316 }
 0x287   : > { %v6494_v43 = vsel %vm2361_vm11, %v3684_v44, -inf  ;;  %v6497_v47 = vsel %vm2361_vm11, %v3691_v18, -inf  ;;  %v3661_v12 = vmax.f32 %v3659_v27, %v3660_v22  ;;  %v2396_v3 = vld [vmem:[#allocation3 + $0x10] sm:$0xff]  ;;  %v6502_v45 = vsel %vm2361_vm11, %v3698_v10, -inf  ;;  %v6506_v52 = vpop.permute.xlu1 %1348 }
 0x288   : > { %7678 = vst [vmem:[#allocation22_spill] sm:$0xff] %v6494_v43  ;;  %7679 = vst [vmem:[#allocation24_spill] sm:$0xff] %v6497_v47  ;;  %v3668_v39 = vmax.f32 %v3666_v61, %v3667_v63  ;;  %v3674_v53 = vrot.slane %v3673_v13, 2  ;;  %v1978_v25 = vsel %vm1965_vm8, %v1945_v30, %v6392_v56  ;;  %v3655_v5 = vrot.slane %v3654_v19, 1  ;;  %v2413_v7 = vld [vmem:[#allocation3 + $0x98] sm:$0xff] }
 0x289   : > { %7680 = vst [vmem:[#allocation8_spill] sm:$0xff] %v6502_v45  ;;  %v1994_v4 = vsel %vm1965_vm8, %v1961_v46, %v6400_v41  ;;  %v2436_v34 = vadd.f32 %v6302_v59, %v2397_v58  ;;  %v2011_v40 = vsel %vm1998_vm9, %v1978_v25, %v1697_v38  ;;  %v3662_v51 = vrot.slane %v3661_v12, 1 }
 0x28a   : > { %v3669_v48 = vrot.slane %v3668_v39, 1  ;;  %v2027_v33 = vsel %vm1998_vm9, %v1994_v4, %v1729_v0  ;;  %v2435_v44 = vadd.f32 %v6302_v59, %v2396_v3  ;;  %4690 = vmatprep.mubr.msk.f32.mxu0 %vm2035_vm10, %v2011_v40  ;;  %v6516_v56 = vsel %vm2361_vm11, %v3705_v23, -inf  ;;  %v6544_v27 = vpop.permute.xlu0 %1698 }
 0x28b   : > { %7681 = vst [vmem:[#allocation13_spill] sm:$0xff] %v6516_v56  ;;  %v6518_v17 = vmax.f32 %v3673_v13, %v3674_v53  ;;  %v6523_v41 = vsel %vm1833_vm4, %v6351_v8, %v6412_v26  ;;  %v2468_v38 = vmax.f32 %v2436_v34, 0.0  ;;  %4714 = vmatprep.mubr.msk.f32.mxu1 %vm2035_vm10, %v2027_v33  ;;  %v6529_v0 = vsel %vm1866_vm5, %v6360_v60, %v6429_v35  ;;  %v6551_v10 = vpop.permute.xlu1 %1730 }
 0x28c   : > { %v6534_v28 = vsel %vm1866_vm5, %v6452_v29, %v6434_v2  ;;  %v2467_v42 = vmax.f32 %v2435_v44, 0.0  ;;  %v2452_v18 = vadd.f32 %v6302_v59, %v2413_v7  ;;  %v6537_v31 = vmax.f32 %v3654_v19, %v3655_v5 }
 0x28d   : > { %v6541_v8 = vsel %vm1965_vm8, %v1946_v14, %v6444_v36  ;;  %v2580_v26 = vcombine.high %v2468_v38, %v2468_v38  ;;  %v2587_v21 = vrot.slane %v2468_v38, %v6321_v55  ;;  %v6546_v60 = vmax.f32 %v3661_v12, %v3662_v51 }
 0x28e   : > { %v6548_v35 = vmax.f32 %v3668_v39, %v3669_v48  ;;  %v2563_v2 = vcombine.high %v2467_v42, %v2467_v42  ;;  %v2570_v29 = vrot.slane %v2467_v42, %v6321_v55  ;;  %v3676_v61 = vrot.slane %v6518_v17, 1  ;;  %v6565_v40 = vpop.permute.xlu0 %1318 }
 0x28f   : > { %v2594_v16 = vrot.slane %v2580_v26, %v6321_v55  ;;  %v2595_v36 = vcombine.high %v2587_v21, %v2587_v21  ;;  %v3286_v19 = vsel %vm3201_vm12, %v2587_v21, -inf  ;;  %v6557_v63 = vmax.f32 %v2452_v18, 0.0  ;;  %v6567_v44 = vpop.permute.xlu1 %1350 }
 0x290   : > { %v3287_v22 = vrot.slane %v3286_v19, 4  ;;  %v2577_v30 = vrot.slane %v2563_v2, %v6321_v55  ;;  %v2578_v46 = vcombine.high %v2570_v29, %v2570_v29  ;;  %v3258_v23 = vsel %vm3201_vm12, %v2570_v29, -inf }
 0x291   : > { %v2596_v13 = vcombine.high %v2594_v16, %v2594_v16  ;;  %v3293_v14 = vsel %vm3201_vm12, %v2595_v36, -inf  ;;  %v3300_v58 = vsel %vm3201_vm12, %v2594_v16, -inf  ;;  %v3259_v5 = vrot.slane %v3258_v23, 4 }
 0x292   : > { %v3288_v12 = vmax.f32 %v3286_v19, %v3287_v22  ;;  %v3294_v3 = vrot.slane %v3293_v14, 4  ;;  %v3301_v39 = vrot.slane %v3300_v58, 4  ;;  %v2579_v53 = vcombine.high %v2577_v30, %v2577_v30 }
 0x293   : > { %v3307_v25 = vsel %vm3201_vm12, %v2596_v13, -inf  ;;  %v3265_v4 = vsel %vm3201_vm12, %v2578_v46, -inf  ;;  %v3272_v34 = vsel %vm3201_vm12, %v2577_v30, -inf  ;;  %v3260_v38 = vmax.f32 %v3258_v23, %v3259_v5  ;;  %v6570_v5 = vpop.permute.xlu0 %1444  ;;  %v6572_v45 = vpop.permute.xlu1 %1476 }
 0x294   : > { %v3289_v7 = vrot.slane %v3288_v12, 2  ;;  %v3295_v51 = vmax.f32 %v3293_v14, %v3294_v3  ;;  %v3302_v48 = vmax.f32 %v3300_v58, %v3301_v39  ;;  %v3308_v33 = vrot.slane %v3307_v25, 4 }
 0x295   : > { %v3266_v42 = vrot.slane %v3265_v4, 4  ;;  %v3273_v18 = vrot.slane %v3272_v34, 4  ;;  %v3279_v26 = vsel %vm3201_vm12, %v2579_v53, -inf  ;;  %v3261_v36 = vrot.slane %v3260_v38, 2 }
 0x296   : > { %v3290_v21 = vmax.f32 %v3288_v12, %v3289_v7  ;;  %v3296_v2 = vrot.slane %v3295_v51, 2  ;;  %v3303_v29 = vrot.slane %v3302_v48, 2  ;;  %v3309_v16 = vmax.f32 %v3307_v25, %v3308_v33 }
 0x297   : > { %v3267_v19 = vmax.f32 %v3265_v4, %v3266_v42  ;;  %v3274_v22 = vmax.f32 %v3272_v34, %v3273_v18  ;;  %v3280_v30 = vrot.slane %v3279_v26, 4  ;;  %v3262_v3 = vmax.f32 %v3260_v38, %v3261_v36  ;;  %v6605_v36 = vpop.permute.xlu0 %1446 }
 0x298   : > { %v3291_v46 = vrot.slane %v3290_v21, 1  ;;  %v3297_v13 = vmax.f32 %v3295_v51, %v3296_v2  ;;  %v3304_v14 = vmax.f32 %v3302_v48, %v3303_v29  ;;  %v3310_v58 = vrot.slane %v3309_v16, 2 }
 0x299   : > { %v3268_v39 = vrot.slane %v3267_v19, 2  ;;  %v3275_v56 = vrot.slane %v3274_v22, 2  ;;  %v3281_v23 = vmax.f32 %v3279_v26, %v3280_v30  ;;  %v3263_v25 = vrot.slane %v3262_v3, 1  ;;  %v2412_v30 = vld [vmem:[#allocation3 + $0x90] sm:$0xff] }
 0x29a   : > { %v3292_v62 = vmax.f32 %v3290_v21, %v3291_v46  ;;  %v3298_v53 = vrot.slane %v3297_v13, 1  ;;  %v3305_v12 = vrot.slane %v3304_v14, 1  ;;  %v3311_v7 = vmax.f32 %v3309_v16, %v3310_v58 }
 0x29b   : > { %v3269_v4 = vmax.f32 %v3267_v19, %v3268_v39  ;;  %v3276_v34 = vmax.f32 %v3274_v22, %v3275_v56  ;;  %v3282_v33 = vrot.slane %v3281_v23, 2  ;;  %v3677_v51 = vmax.f32 %v6518_v17, %v3676_v61 }
 0x29c   : > { %v6578_v48 = vsel %vm1965_vm8, %v6491_v9, %v6447_v32  ;;  %v3299_v38 = vmax.f32 %v3297_v13, %v3298_v53  ;;  %v3312_v42 = vrot.slane %v3311_v7, 1  ;;  %v3306_v18 = vmax.f32 %v3304_v14, %v3305_v12 }
 0x29d   : > { %v6581_v26 = vsel %vm2361_vm11, %v3292_v62, -inf  ;;  %v3270_v21 = vrot.slane %v3269_v4, 1  ;;  %v2852_v2 = vcombine.high %v6557_v63, %v6557_v63  ;;  %v3264_v29 = vmax.f32 %v3262_v3, %v3263_v25 }
 0x29e   : > { %v6586_v56 = vsel %vm2361_vm11, %v3299_v38, -inf  ;;  %v3277_v17 = vrot.slane %v3276_v34, 1  ;;  %v3283_v61 = vmax.f32 %v3281_v23, %v3282_v33  ;;  %v6590_v32 = vsel %vm2361_vm11, %v6537_v31, -inf }
 0x29f   : > { %7682 = vst [vmem:[#allocation41_spill] sm:$0xff] %v6586_v56  ;;  %v6594_v9 = vsel %vm2361_vm11, %v6546_v60, -inf  ;;  %v6598_v62 = vsel %vm2361_vm11, %v6548_v35, -inf  ;;  %v6603_v16 = vsel %vm1866_vm5, %v6365_v54, %v6471_v15  ;;  %v6608_v19 = vsel %vm2361_vm11, %v3677_v51, -inf  ;;  %v6614_v35 = vpop.permute.xlu1 %1478 }
 0x2a0   : > { %7683 = vst [vmem:[#allocation25_spill] sm:$0xff] %v6608_v19  ;;  %v3313_v31 = vmax.f32 %v3311_v7, %v3312_v42  ;;  %v2859_v60 = vrot.slane %v6557_v63, %v6321_v55  ;;  %v6619_v54 = vsel %vm2361_vm11, %v3306_v18, -inf  ;;  %v3271_v15 = vmax.f32 %v3269_v4, %v3270_v21  ;;  %v6639_v18 = vpop.permute.xlu0 %1572 }
 0x2a1   : > { %7684 = vst [vmem:[#allocation29_spill] sm:$0xff] %v6619_v54  ;;  %v2866_v13 = vrot.slane %v2852_v2, %v6321_v55  ;;  %v3278_v14 = vmax.f32 %v3276_v34, %v3277_v17  ;;  %v3284_v58 = vrot.slane %v3283_v61, 1  ;;  %v6623_v3 = vsel %vm2361_vm11, %v3264_v29, -inf }
 0x2a2   : > { %v2867_v39 = vcombine.high %v2859_v60, %v2859_v60  ;;  %v3734_v63 = vsel %vm3201_vm12, %v2859_v60, -inf  ;;  %v2451_v12 = vadd.f32 %v6302_v59, %v2412_v30  ;;  %v6631_v25 = vsel %vm2361_vm11, %v3313_v31, -inf }
 0x2a3   : > { %v2868_v23 = vcombine.high %v2866_v13, %v2866_v13  ;;  %v3748_v53 = vsel %vm3201_vm12, %v2866_v13, -inf  ;;  %v3735_v4 = vrot.slane %v3734_v63, 4  ;;  %v6637_v51 = vsel %vm2361_vm11, %v3271_v15, -inf  ;;  %v6645_v60 = vpop.permute.xlu1 %1604 }
 0x2a4   : > { %v3741_v34 = vsel %vm3201_vm12, %v2867_v39, -inf  ;;  %v3749_v42 = vrot.slane %v3748_v53, 4  ;;  %v6642_v2 = vsel %vm2361_vm11, %v3278_v14, -inf  ;;  %v2483_v31 = vmax.f32 %v2451_v12, 0.0 }
 0x2a5   : > { %v3742_v38 = vrot.slane %v3741_v34, 4  ;;  %v4680_v21 = vpop.f32.mrf.mxu0  ;;  %v3736_v29 = vmax.f32 %v3734_v63, %v3735_v4  ;;  %v3755_v17 = vsel %vm3201_vm12, %v2868_v23, -inf  ;;  %v3285_v30 = vmax.f32 %v3283_v61, %v3284_v58 }
 0x2a6   : > { %2367 = vst.msk [vmem:[#allocation3 + $0x28] sm:$0xff] %vm2361_vm11, %v4680_v21  ;;  %v3750_v13 = vmax.f32 %v3748_v53, %v3749_v42  ;;  %v3756_v39 = vrot.slane %v3755_v17, 4  ;;  %v4103_v46 = vmax.f32 %v6468_v24, %v6637_v51  ;;  %v2835_v14 = vcombine.high %v2483_v31, %v2483_v31 }
 0x2a7   : > { %v3743_v15 = vmax.f32 %v3741_v34, %v3742_v38  ;;  %v2222_v7 = vpop.f32.mrf.mxu0  ;;  %v3737_v22 = vrot.slane %v3736_v29, 2  ;;  %v2842_v33 = vrot.slane %v2483_v31, %v6321_v55  ;;  %v2012_v61 = vsel %vm1998_vm9, %v6541_v8, %v6544_v27 }
 0x2a8   : > { %2366 = vst.msk [vmem:[#allocation3 + $0x20] sm:$0xff] %vm2361_vm11, %v2222_v7  ;;  %v4704_v23 = vpop.f32.mrf.mxu1  ;;  %v3751_v12 = vrot.slane %v3750_v13, 2  ;;  %v3757_v4 = vmax.f32 %v3755_v17, %v3756_v39  ;;  %v2849_v53 = vrot.slane %v2835_v14, %v6321_v55  ;;  %4691 = vmatmul.mubr.msk.f32.gmra.mxu0 %vm2035_vm10, %v2012_v61  ;;  %v1575_v17 = vpop.permute.xlu0 %1574  ;;  %v6663_v39 = vsel %vm2361_vm11, %v3285_v30, -inf }
 0x2a9   : > { %v3744_v63 = vrot.slane %v3743_v15, 2  ;;  %2383 = vst.msk [vmem:[#allocation3 + $0xa8] sm:$0xff] %vm2361_vm11, %v4704_v23  ;;  %v3738_v58 = vmax.f32 %v3736_v29, %v3737_v22  ;;  %v2850_v24 = vcombine.high %v2842_v33, %v2842_v33  ;;  %v3706_v34 = vsel %vm3201_vm12, %v2842_v33, -inf  ;;  %v1607_v29 = vpop.permute.xlu1 %1606 }
 0x2aa   : > { %v2302_v51 = vpop.f32.mrf.mxu1  ;;  %v3752_v38 = vmax.f32 %v3750_v13, %v3751_v12  ;;  %v3758_v42 = vrot.slane %v3757_v4, 2  ;;  %v3707_v21 = vrot.slane %v3706_v34, 4  ;;  %v2851_v8 = vcombine.high %v2849_v53, %v2849_v53 }
 0x2ab   : > { %v3745_v7 = vmax.f32 %v3743_v15, %v3744_v63  ;;  %2382 = vst.msk [vmem:[#allocation3 + $0xa0] sm:$0xff] %vm2361_vm11, %v2302_v51  ;;  %v3739_v31 = vrot.slane %v3738_v58, 1  ;;  %v3713_v27 = vsel %vm3201_vm12, %v2850_v24, -inf  ;;  %v3720_v22 = vsel %vm3201_vm12, %v2849_v53, -inf }
 0x2ac   : > { %v3759_v14 = vmax.f32 %v3757_v4, %v3758_v42  ;;  %v3708_v23 = vmax.f32 %v3706_v34, %v3707_v21  ;;  %v3753_v15 = vrot.slane %v3752_v38, 1  ;;  %v3714_v13 = vrot.slane %v3713_v27, 4 }
 0x2ad   : > { %v3746_v33 = vrot.slane %v3745_v7, 1  ;;  %v3721_v63 = vrot.slane %v3720_v22, 4  ;;  %v3727_v12 = vsel %vm3201_vm12, %v2851_v8, -inf  ;;  %v4106_v61 = vmax.f32 %v6464_v49, %v6642_v2 }
 0x2ae   : > { %v3740_v51 = vmax.f32 %v3738_v58, %v3739_v31  ;;  %v3709_v24 = vrot.slane %v3708_v23, 2  ;;  %v3760_v11 = vrot.slane %v3759_v14, 1  ;;  %v3715_v53 = vmax.f32 %v3713_v27, %v3714_v13 }
 0x2af   : > { %v3747_v54 = vmax.f32 %v3745_v7, %v3746_v33  ;;  %v3722_v56 = vmax.f32 %v3720_v22, %v3721_v63  ;;  %v3728_v1 = vrot.slane %v3727_v12, 4  ;;  %v7685_v4 = vmax.f32 %v6461_v20, %v6623_v3  ;;  %v1701_v7 = vpop.permute.xlu0 %1700  ;;  %v1733_v20 = vpop.permute.xlu1 %1732 }
 0x2b0   : > { %v1898_v42 = vsel %vm1866_vm5, %v6523_v41, %v6474_v37  ;;  %v1914_v58 = vsel %vm1899_vm6, %v6529_v0, %v6499_v57  ;;  %v3754_v21 = vmax.f32 %v3752_v38, %v3753_v15  ;;  %v3710_v31 = vmax.f32 %v3708_v23, %v3709_v24 }
 0x2b1   : > { %v4355_v34 = vsel %vm4354_vm13, %v4103_v46, %v7685_v4  ;;  %v3716_v8 = vrot.slane %v3715_v53, 2  ;;  %v1930_v27 = vsel %vm1899_vm6, %v6534_v28, %v6506_v52  ;;  %v6684_v46 = vsel %vm2361_vm11, %v3740_v51, -inf }
 0x2b2   : > { %7686 = vst [vmem:[#allocation9_spill] sm:$0xff] %v6684_v46  ;;  %v3723_v3 = vrot.slane %v3722_v56, 2  ;;  %v3729_v22 = vmax.f32 %v3727_v12, %v3728_v1  ;;  %v2028_v37 = vsel %vm1998_vm9, %v6578_v48, %v6551_v10  ;;  %v3761_v57 = vmax.f32 %v3759_v14, %v3760_v11 }
 0x2b3   : > { %v6690_v41 = vsel %vm2361_vm11, %v3747_v54, -inf  ;;  %v3711_v0 = vrot.slane %v3710_v31, 1  ;;  %v3717_v38 = vmax.f32 %v3715_v53, %v3716_v8  ;;  %4715 = vmatmul.mubr.msk.f32.gmra.mxu1 %vm2035_vm10, %v2028_v37  ;;  %v1915_v28 = vsel %vm1899_vm6, %v6603_v16, %v6565_v40  ;;  %v2399_v40 = vld [vmem:[#allocation3 + $0x28] sm:$0xff]  ;;  %v1703_v16 = vpop.permute.xlu0 %1702  ;;  %v2398_v53 = vld [vmem:[#allocation3 + $0x20] sm:$0xff] }
 0x2b4   : > { %7687 = vst [vmem:[#allocation15_spill] sm:$0xff] %v6690_v41  ;;  %v3724_v33 = vmax.f32 %v3722_v56, %v3723_v3  ;;  %v3730_v52 = vrot.slane %v3729_v22, 2  ;;  %v1931_v1 = vsel %vm1899_vm6, %v1898_v42, %v6567_v44  ;;  %v1947_v11 = vsel %vm1932_vm7, %v1914_v58, %v6570_v5 }
 0x2b5   : > { %v3712_v23 = vmax.f32 %v3710_v31, %v3711_v0  ;;  %v3718_v15 = vrot.slane %v3717_v38, 1  ;;  %v1963_v10 = vsel %vm1932_vm7, %v1930_v27, %v6572_v45  ;;  %v1948_v56 = vsel %vm1932_vm7, %v1915_v28, %v6605_v36  ;;  %v1735_v45 = vpop.permute.xlu1 %1734 }
 0x2b6   : > { %v3725_v48 = vrot.slane %v3724_v33, 1  ;;  %v3731_v54 = vmax.f32 %v3729_v22, %v3730_v52  ;;  %v1964_v14 = vsel %vm1932_vm7, %v1931_v1, %v6614_v35  ;;  %v1980_v44 = vsel %vm1965_vm8, %v1947_v11, %v6639_v18  ;;  %v2415_v35 = vld [vmem:[#allocation3 + $0xa8] sm:$0xff]  ;;  %v2414_v1 = vld [vmem:[#allocation3 + $0xa0] sm:$0xff] }
 0x2b7   : > { %v3719_v13 = vmax.f32 %v3717_v38, %v3718_v15  ;;  %v1996_v5 = vsel %vm1965_vm8, %v1963_v10, %v6645_v60  ;;  %v1981_v63 = vsel %vm1965_vm8, %v1948_v56, %v1575_v17  ;;  %v1997_v24 = vsel %vm1965_vm8, %v1964_v14, %v1607_v29 }
 0x2b8   : > { %v3726_v12 = vmax.f32 %v3724_v33, %v3725_v48  ;;  %v3732_v51 = vrot.slane %v3731_v54, 1  ;;  %v2013_v36 = vsel %vm1998_vm9, %v1980_v44, %v1701_v7  ;;  %v2029_v42 = vsel %vm1998_vm9, %v1996_v5, %v1733_v20 }
 0x2b9   : > { %v4198_v4 = vsel %vm2361_vm11, %v3719_v13, -inf  ;;  %v2438_v18 = vadd.f32 %v6302_v59, %v2399_v40  ;;  %4693 = vmatprep.mubr.msk.f32.mxu0 %vm2035_vm10, %v2013_v36  ;;  %v2014_v60 = vsel %vm1998_vm9, %v1981_v63, %v1703_v16  ;;  %v6719_v17 = vsel %vm2361_vm11, %v3754_v21, -inf  ;;  %4717 = vmatprep.mubr.msk.f32.mxu1 %vm2035_vm10, %v2029_v42 }
 0x2ba   : > { %7688 = vst [vmem:[#allocation42_spill] sm:$0xff] %v6719_v17  ;;  %v3733_v58 = vmax.f32 %v3731_v54, %v3732_v51  ;;  %v4195_v29 = vsel %vm2361_vm11, %v3712_v23, -inf  ;;  %v2030_v7 = vsel %vm1998_vm9, %v1997_v24, %v1735_v45  ;;  %4694 = vmatmul.mubr.msk.f32.gmra.mxu0 %vm2035_vm10, %v2014_v60  ;;  %v6726_v31 = vsel %vm2361_vm11, %v3726_v12, -inf }
 0x2bb   : > { %v2470_v8 = vmax.f32 %v2438_v18, 0.0  ;;  %v2437_v27 = vadd.f32 %v6302_v59, %v2398_v53  ;;  %v2454_v20 = vadd.f32 %v6302_v59, %v2415_v35  ;;  %4718 = vmatmul.mubr.msk.f32.gmra.mxu1 %vm2035_vm10, %v2030_v7  ;;  %v6735_v21 = vsel %vm4356_vm14, %v4106_v61, %v4355_v34 }
 0x2bc   : > { %v4199_v37 = vmax.f32 %v6594_v9, %v4198_v4  ;;  %v6745_v33 = vsel %vm2361_vm11, %v3761_v57, -inf  ;;  %v4196_v2 = vmax.f32 %v6590_v32, %v4195_v29  ;;  %v4202_v61 = vmax.f32 %v6598_v62, %v6726_v31 }
 0x2bd   : > { %7690 = vst [vmem:[#allocation26_spill] sm:$0xff] %v6745_v33  ;;  %v2614_v52 = vcombine.high %v2470_v8, %v2470_v8  ;;  %v2621_v49 = vrot.slane %v2470_v8, %v6321_v55  ;;  %v6752_v34 = vsel %vm2361_vm11, %v3733_v58, -inf  ;;  %v2469_v28 = vmax.f32 %v2437_v27, 0.0 }
 0x2be   : > { %7691 = vst [vmem:[#allocation31_spill] sm:$0xff] %v6752_v34  ;;  %v2486_v57 = vmax.f32 %v2454_v20, 0.0  ;;  %v4389_v11 = vsel %vm4354_vm13, %v4199_v37, %v4196_v2  ;;  %v2453_v40 = vadd.f32 %v6302_v59, %v2414_v1 }
 0x2bf   : > { %v2628_v9 = vrot.slane %v2614_v52, %v6321_v55  ;;  %v2629_v23 = vcombine.high %v2621_v49, %v2621_v49  ;;  %v3342_v15 = vsel %vm3201_vm12, %v2621_v49, -inf  ;;  %v2597_v48 = vcombine.high %v2469_v28, %v2469_v28 }
 0x2c0   : > { %v3343_v10 = vrot.slane %v3342_v15, 4  ;;  %v2604_v32 = vrot.slane %v2469_v28, %v6321_v55  ;;  %v2886_v51 = vcombine.high %v2486_v57, %v2486_v57 }
 0x2c1   : > { %v2630_v54 = vcombine.high %v2628_v9, %v2628_v9  ;;  %v3349_v56 = vsel %vm3201_vm12, %v2629_v23, -inf  ;;  %v3356_v14 = vsel %vm3201_vm12, %v2628_v9, -inf  ;;  %v2611_v5 = vrot.slane %v2597_v48, %v6321_v55 }
 0x2c2   : > { %v3344_v16 = vmax.f32 %v3342_v15, %v3343_v10  ;;  %v3350_v13 = vrot.slane %v3349_v56, 4  ;;  %v3357_v44 = vrot.slane %v3356_v14, 4  ;;  %v2612_v45 = vcombine.high %v2604_v32, %v2604_v32 }
 0x2c3   : > { %v3363_v63 = vsel %vm3201_vm12, %v2630_v54, -inf  ;;  %v3314_v12 = vsel %vm3201_vm12, %v2604_v32, -inf  ;;  %v2613_v4 = vcombine.high %v2611_v5, %v2611_v5  ;;  %v3328_v59 = vsel %vm3201_vm12, %v2611_v5, -inf }
 0x2c4   : > { %v3345_v24 = vrot.slane %v3344_v16, 2  ;;  %v3351_v36 = vmax.f32 %v3349_v56, %v3350_v13  ;;  %v3358_v53 = vmax.f32 %v3356_v14, %v3357_v44  ;;  %v3364_v35 = vrot.slane %v3363_v63, 4 }
 0x2c5   : > { %v3315_v42 = vrot.slane %v3314_v12, 4  ;;  %v3321_v18 = vsel %vm3201_vm12, %v2612_v45, -inf  ;;  %v3329_v20 = vrot.slane %v3328_v59, 4  ;;  %v3335_v37 = vsel %vm3201_vm12, %v2613_v4, -inf }
 0x2c6   : > { %v3346_v60 = vmax.f32 %v3344_v16, %v3345_v24  ;;  %v3352_v58 = vrot.slane %v3351_v36, 2  ;;  %v3359_v29 = vrot.slane %v3358_v53, 2  ;;  %v3365_v7 = vmax.f32 %v3363_v63, %v3364_v35 }
 0x2c7   : > { %v3316_v8 = vmax.f32 %v3314_v12, %v3315_v42  ;;  %v3322_v27 = vrot.slane %v3321_v18, 4  ;;  %v3330_v23 = vmax.f32 %v3328_v59, %v3329_v20  ;;  %v3336_v15 = vrot.slane %v3335_v37, 4  ;;  %v7692_v12 = vld [vmem:[#allocation7_spill] sm:$0xff] }
 0x2c8   : > { %v3347_v52 = vrot.slane %v3346_v60, 1  ;;  %v3353_v49 = vmax.f32 %v3351_v36, %v3352_v58  ;;  %v3360_v2 = vmax.f32 %v3358_v53, %v3359_v29  ;;  %v3366_v28 = vrot.slane %v3365_v7, 2 }
 0x2c9   : > { %v3317_v1 = vrot.slane %v3316_v8, 2  ;;  %v3323_v9 = vmax.f32 %v3321_v18, %v3322_v27  ;;  %v2893_v54 = vrot.slane %v2486_v57, %v6321_v55  ;;  %v3331_v16 = vrot.slane %v3330_v23, 2 }
 0x2ca   : > { %v3354_v10 = vrot.slane %v3353_v49, 1  ;;  %v3361_v48 = vrot.slane %v3360_v2, 1  ;;  %v3367_v32 = vmax.f32 %v3365_v7, %v3366_v28  ;;  %v3337_v13 = vmax.f32 %v3335_v37, %v3336_v15 }
 0x2cb   : > { %v3318_v56 = vmax.f32 %v3316_v8, %v3317_v1  ;;  %v3324_v14 = vrot.slane %v3323_v9, 2  ;;  %v3348_v44 = vmax.f32 %v3346_v60, %v3347_v52  ;;  %v2900_v63 = vrot.slane %v2886_v51, %v6321_v55 }
 0x2cc   : > { %v3368_v5 = vrot.slane %v3367_v32, 1  ;;  %v3355_v36 = vmax.f32 %v3353_v49, %v3354_v10  ;;  %v3362_v53 = vmax.f32 %v3360_v2, %v3361_v48  ;;  %v3338_v4 = vrot.slane %v3337_v13, 2 }
 0x2cd   : > { %v4683_v45 = vpop.f32.mrf.mxu0  ;;  %v3325_v35 = vmax.f32 %v3323_v9, %v3324_v14  ;;  %v6778_v42 = vsel %vm4356_vm14, %v4202_v61, %v4389_v11  ;;  %v2901_v51 = vcombine.high %v2893_v54, %v2893_v54  ;;  %v2485_v18 = vmax.f32 %v2453_v40, 0.0 }
 0x2ce   : > { %2369 = vst.msk [vmem:[#allocation3 + $0x38] sm:$0xff] %vm2361_vm11, %v4683_v45  ;;  %v3369_v60 = vmax.f32 %v3367_v32, %v3368_v5  ;;  %v3319_v58 = vrot.slane %v3318_v56, 1  ;;  %v3332_v29 = vmax.f32 %v3330_v23, %v3331_v16  ;;  %v6784_v20 = vsel %vm2361_vm11, %v3348_v44, -inf }
 0x2cf   : > { %v2232_v59 = vpop.f32.mrf.mxu0  ;;  %v2902_v37 = vcombine.high %v2900_v63, %v2900_v63  ;;  %v3790_v62 = vsel %vm3201_vm12, %v2893_v54, -inf  ;;  %v3797_v31 = vsel %vm3201_vm12, %v2901_v51, -inf  ;;  %v6790_v61 = vsel %vm2361_vm11, %v3355_v36, -inf }
 0x2d0   : > { %2368 = vst.msk [vmem:[#allocation3 + $0x30] sm:$0xff] %vm2361_vm11, %v2232_v59  ;;  %v4707_v7 = vpop.f32.mrf.mxu1  ;;  %v6793_v11 = vsel %vm2361_vm11, %v3362_v53, -inf  ;;  %v3326_v40 = vrot.slane %v3325_v35, 1  ;;  %v3339_v52 = vmax.f32 %v3337_v13, %v3338_v4  ;;  %v3791_v2 = vrot.slane %v3790_v62, 4 }
 0x2d1   : > { %2385 = vst.msk [vmem:[#allocation3 + $0xb8] sm:$0xff] %vm2361_vm11, %v4707_v7  ;;  %v3798_v28 = vrot.slane %v3797_v31, 4  ;;  %v3804_v1 = vsel %vm3201_vm12, %v2900_v63, -inf  ;;  %v3811_v9 = vsel %vm3201_vm12, %v2902_v37, -inf  ;;  %v6799_v23 = vsel %vm2361_vm11, %v3369_v60, -inf }
 0x2d2   : > { %v2312_v49 = vpop.f32.mrf.mxu1  ;;  %v3320_v15 = vmax.f32 %v3318_v56, %v3319_v58  ;;  %v3333_v10 = vrot.slane %v3332_v29, 1  ;;  %v3805_v48 = vrot.slane %v3804_v1, 4  ;;  %v3792_v32 = vmax.f32 %v3790_v62, %v3791_v2  ;;  %v6807_v58 = vld [vmem:[%s7507_s4] ss:$0 sm:$0xff] }
 0x2d3   : > { %2384 = vst.msk [vmem:[#allocation3 + $0xb0] sm:$0xff] %vm2361_vm11, %v2312_v49  ;;  %v3799_v54 = vmax.f32 %v3797_v31, %v3798_v28  ;;  %v3812_v14 = vrot.slane %v3811_v9, 4  ;;  %v2869_v16 = vcombine.high %v2485_v18, %v2485_v18  ;;  %v3327_v44 = vmax.f32 %v3325_v35, %v3326_v40 }
 0x2d4   : > { %v3340_v5 = vrot.slane %v3339_v52, 1  ;;  %v3806_v45 = vmax.f32 %v3804_v1, %v3805_v48  ;;  %v2876_v63 = vrot.slane %v2485_v18, %v6321_v55  ;;  %v3793_v36 = vrot.slane %v3792_v32, 2 }
 0x2d5   : > { %v2401_v13 = vld [vmem:[#allocation3 + $0x38] sm:$0xff]  ;;  %v3800_v53 = vrot.slane %v3799_v54, 2  ;;  %v3813_v4 = vmax.f32 %v3811_v9, %v3812_v14  ;;  %v2883_v51 = vrot.slane %v2869_v16, %v6321_v55  ;;  %v3334_v28 = vmax.f32 %v3332_v29, %v3333_v10 }
 0x2d6   : > { %v3807_v59 = vrot.slane %v3806_v45, 2  ;;  %v2884_v60 = vcombine.high %v2876_v63, %v2876_v63  ;;  %v3762_v56 = vsel %vm3201_vm12, %v2876_v63, -inf  ;;  %v2440_v35 = vadd.f32 %v6807_v58, %v2401_v13 }
 0x2d7   : > { %v3794_v7 = vmax.f32 %v3792_v32, %v3793_v36  ;;  %v3801_v37 = vmax.f32 %v3799_v54, %v3800_v53  ;;  %v3814_v62 = vrot.slane %v3813_v4, 2  ;;  %v2885_v18 = vcombine.high %v2883_v51, %v2883_v51 }
 0x2d8   : > { %v3808_v31 = vmax.f32 %v3806_v45, %v3807_v59  ;;  %v3763_v40 = vrot.slane %v3762_v56, 4  ;;  %v3769_v49 = vsel %vm3201_vm12, %v2884_v60, -inf  ;;  %v3776_v2 = vsel %vm3201_vm12, %v2883_v51, -inf }
 0x2d9   : > { %v3795_v1 = vrot.slane %v3794_v7, 1  ;;  %v3815_v9 = vmax.f32 %v3813_v4, %v3814_v62  ;;  %v3770_v48 = vrot.slane %v3769_v49, 4  ;;  %v3802_v14 = vrot.slane %v3801_v37, 1 }
 0x2da   : > { %v3764_v16 = vmax.f32 %v3762_v56, %v3763_v40  ;;  %v3777_v63 = vrot.slane %v3776_v2, 4  ;;  %v3783_v27 = vsel %vm3201_vm12, %v2885_v18, -inf  ;;  %v3341_v13 = vmax.f32 %v3339_v52, %v3340_v5  ;;  %v2416_v30 = vld [vmem:[#allocation3 + $0xb0] sm:$0xff] }
 0x2db   : > { %v3809_v32 = vrot.slane %v3808_v31, 1  ;;  %v3771_v54 = vmax.f32 %v3769_v49, %v3770_v48  ;;  %v2472_v36 = vmax.f32 %v2440_v35, 0.0  ;;  %v3816_v53 = vrot.slane %v3815_v9, 1  ;;  %v2400_v48 = vld [vmem:[#allocation3 + $0x30] sm:$0xff] }
 0x2dc   : > { %v3765_v45 = vrot.slane %v3764_v16, 2  ;;  %v3778_v59 = vmax.f32 %v3776_v2, %v3777_v63  ;;  %v3784_v38 = vrot.slane %v3783_v27, 4  ;;  %v6814_v60 = vsel %vm2361_vm11, %v3320_v15, -inf }
 0x2dd   : > { %v6817_v29 = vsel %vm2361_vm11, %v3327_v44, -inf  ;;  %v3796_v10 = vmax.f32 %v3794_v7, %v3795_v1  ;;  %v3772_v4 = vrot.slane %v3771_v54, 2  ;;  %v3803_v51 = vmax.f32 %v3801_v37, %v3802_v14 }
 0x2de   : > { %v3766_v56 = vmax.f32 %v3764_v16, %v3765_v45  ;;  %v3779_v62 = vrot.slane %v3778_v59, 2  ;;  %v3785_v18 = vmax.f32 %v3783_v27, %v3784_v38  ;;  %v6820_v52 = vsel %vm2361_vm11, %v3334_v28, -inf  ;;  %v2417_v45 = vld [vmem:[#allocation3 + $0xb8] sm:$0xff] }
 0x2df   : > { %v6823_v5 = vsel %vm2361_vm11, %v3341_v13, -inf  ;;  %v2648_v35 = vcombine.high %v2472_v36, %v2472_v36  ;;  %v2655_v40 = vrot.slane %v2472_v36, %v6321_v55  ;;  %v3810_v15 = vmax.f32 %v3808_v31, %v3809_v32 }
 0x2e0   : > { %v3817_v49 = vmax.f32 %v3815_v9, %v3816_v53  ;;  %v3773_v2 = vmax.f32 %v3771_v54, %v3772_v4  ;;  %v3786_v44 = vrot.slane %v3785_v18, 2  ;;  %v6827_v7 = vsel %vm2361_vm11, %v3796_v10, -inf }
 0x2e1   : > { %7694 = vst [vmem:[#allocation10_spill] sm:$0xff] %v6827_v7  ;;  %v2662_v37 = vrot.slane %v2648_v35, %v6321_v55  ;;  %v2663_v38 = vcombine.high %v2655_v40, %v2655_v40  ;;  %v3398_v27 = vsel %vm3201_vm12, %v2655_v40, -inf  ;;  %v6832_v28 = vsel %vm2361_vm11, %v3803_v51, -inf }
 0x2e2   : > { %7695 = vst [vmem:[#allocation11_spill] sm:$0xff] %v6832_v28  ;;  %v3767_v1 = vrot.slane %v3766_v56, 1  ;;  %v3780_v14 = vmax.f32 %v3778_v59, %v3779_v62  ;;  %v3399_v16 = vrot.slane %v3398_v27, 4  ;;  %v2439_v13 = vadd.f32 %v6807_v58, %v2400_v48 }
 0x2e3   : > { %v2664_v63 = vcombine.high %v2662_v37, %v2662_v37  ;;  %v3405_v31 = vsel %vm3201_vm12, %v2663_v38, -inf  ;;  %v3412_v9 = vsel %vm3201_vm12, %v2662_v37, -inf  ;;  %v6838_v32 = vsel %vm2361_vm11, %v3810_v15, -inf }
 0x2e4   : > { %7696 = vst [vmem:[#allocation43_spill] sm:$0xff] %v6838_v32  ;;  %v3774_v54 = vrot.slane %v3773_v2, 1  ;;  %v3787_v36 = vmax.f32 %v3785_v18, %v3786_v44  ;;  %v3400_v53 = vmax.f32 %v3398_v27, %v3399_v16  ;;  %v6841_v10 = vsel %vm2361_vm11, %v3817_v49, -inf }
 0x2e5   : > { %7697 = vst [vmem:[#allocation12_spill] sm:$0xff] %v6841_v10  ;;  %v3406_v4 = vrot.slane %v3405_v31, 4  ;;  %v3413_v59 = vrot.slane %v3412_v9, 4  ;;  %v3419_v51 = vsel %vm3201_vm12, %v2664_v63, -inf  ;;  %v3768_v62 = vmax.f32 %v3766_v56, %v3767_v1 }
 0x2e6   : > { %v3781_v35 = vrot.slane %v3780_v14, 1  ;;  %v3401_v40 = vrot.slane %v3400_v53, 2  ;;  %v3420_v37 = vrot.slane %v3419_v51, 4  ;;  %v2471_v22 = vmax.f32 %v2439_v13, 0.0 }
 0x2e7   : > { %v3407_v38 = vmax.f32 %v3405_v31, %v3406_v4  ;;  %v3414_v48 = vmax.f32 %v3412_v9, %v3413_v59  ;;  %v2456_v15 = vadd.f32 %v6807_v58, %v2417_v45  ;;  %v3775_v3 = vmax.f32 %v3773_v2, %v3774_v54 }
 0x2e8   : > { %v3788_v18 = vrot.slane %v3787_v36, 1  ;;  %v3402_v44 = vmax.f32 %v3400_v53, %v3401_v40  ;;  %v3421_v27 = vmax.f32 %v3419_v51, %v3420_v37  ;;  %v2631_v57 = vcombine.high %v2471_v22, %v2471_v22 }
 0x2e9   : > { %v3408_v16 = vrot.slane %v3407_v38, 2  ;;  %v3415_v49 = vrot.slane %v3414_v48, 2  ;;  %v2638_v24 = vrot.slane %v2471_v22, %v6321_v55  ;;  %v3782_v63 = vmax.f32 %v3780_v14, %v3781_v35 }
 0x2ea   : > { %v3403_v56 = vrot.slane %v3402_v44, 1  ;;  %v3422_v1 = vrot.slane %v3421_v27, 2  ;;  %v2488_v33 = vmax.f32 %v2456_v15, 0.0  ;;  %v2645_v9 = vrot.slane %v2631_v57, %v6321_v55 }
 0x2eb   : > { %v3409_v8 = vmax.f32 %v3407_v38, %v3408_v16  ;;  %v3416_v31 = vmax.f32 %v3414_v48, %v3415_v49  ;;  %v2646_v13 = vcombine.high %v2638_v24, %v2638_v24  ;;  %v3789_v45 = vmax.f32 %v3787_v36, %v3788_v18 }
 0x2ec   : > { %v6848_v2 = vsel %vm2361_vm11, %v3768_v62, -inf  ;;  %v3370_v54 = vsel %vm3201_vm12, %v2638_v24, -inf  ;;  %v2455_v53 = vadd.f32 %v6807_v58, %v2416_v30  ;;  %v3404_v4 = vmax.f32 %v3402_v44, %v3403_v56 }
 0x2ed   : > { %v3410_v22 = vrot.slane %v3409_v8, 1  ;;  %v2647_v59 = vcombine.high %v2645_v9, %v2645_v9  ;;  %v3371_v14 = vrot.slane %v3370_v54, 4  ;;  %v3417_v51 = vrot.slane %v3416_v31, 1 }
 0x2ee   : > { %v6852_v35 = vmax.f32 %v3421_v27, %v3422_v1  ;;  %v3377_v40 = vsel %vm3201_vm12, %v2646_v13, -inf  ;;  %v3384_v57 = vsel %vm3201_vm12, %v2645_v9, -inf  ;;  %v6857_v36 = vsel %vm2361_vm11, %v3775_v3, -inf }
 0x2ef   : > { %v6860_v62 = vsel %vm2361_vm11, %v3782_v63, -inf  ;;  %v3372_v24 = vmax.f32 %v3370_v54, %v3371_v14  ;;  %v2920_v37 = vcombine.high %v2488_v33, %v2488_v33  ;;  %v3411_v30 = vmax.f32 %v3409_v8, %v3410_v22 }
 0x2f0   : > { %v3378_v38 = vrot.slane %v3377_v40, 4  ;;  %v3385_v48 = vrot.slane %v3384_v57, 4  ;;  %v3391_v15 = vsel %vm3201_vm12, %v2647_v59, -inf  ;;  %v6864_v18 = vsel %vm2361_vm11, %v3789_v45, -inf }
 0x2f1   : > { %7698 = vst [vmem:[#allocation28_spill] sm:$0xff] %v6864_v18  ;;  %v6867_v44 = vsel %vm2361_vm11, %v3404_v4, -inf  ;;  %v3373_v27 = vrot.slane %v3372_v24, 2  ;;  %v3392_v16 = vrot.slane %v3391_v15, 4  ;;  %v3418_v3 = vmax.f32 %v3416_v31, %v3417_v51 }
 0x2f2   : > { %v3424_v49 = vrot.slane %v6852_v35, 1  ;;  %v3379_v63 = vmax.f32 %v3377_v40, %v3378_v38  ;;  %v2487_v56 = vmax.f32 %v2455_v53, 0.0  ;;  %v3386_v9 = vmax.f32 %v3384_v57, %v3385_v48 }
 0x2f3   : > { %v3374_v1 = vmax.f32 %v3372_v24, %v3373_v27  ;;  %v3393_v8 = vmax.f32 %v3391_v15, %v3392_v16  ;;  %v2927_v13 = vrot.slane %v2488_v33, %v6321_v55  ;;  %v6874_v22 = vsel %vm2361_vm11, %v3411_v30, -inf }
 0x2f4   : > { %v3380_v4 = vrot.slane %v3379_v63, 2  ;;  %v2934_v59 = vrot.slane %v2920_v37, %v6321_v55  ;;  %v3387_v14 = vrot.slane %v3386_v9, 2  ;;  %v2903_v37 = vcombine.high %v2487_v56, %v2487_v56 }
 0x2f5   : > { %v4686_v54 = vpop.f32.mrf.mxu0  ;;  %v3375_v31 = vrot.slane %v3374_v1, 1  ;;  %v3394_v53 = vrot.slane %v3393_v8, 2  ;;  %v2935_v51 = vcombine.high %v2927_v13, %v2927_v13  ;;  %v3846_v33 = vsel %vm3201_vm12, %v2927_v13, -inf }
 0x2f6   : > { %2371 = vst.msk [vmem:[#allocation3 + $0x48] sm:$0xff] %vm2361_vm11, %v4686_v54  ;;  %v3381_v57 = vmax.f32 %v3379_v63, %v3380_v4  ;;  %v2936_v24 = vcombine.high %v2934_v59, %v2934_v59  ;;  %v3860_v38 = vsel %vm3201_vm12, %v2934_v59, -inf  ;;  %v3388_v48 = vmax.f32 %v3386_v9, %v3387_v14 }
 0x2f7   : > { %v2242_v40 = vpop.f32.mrf.mxu0  ;;  %v3395_v15 = vmax.f32 %v3393_v8, %v3394_v53  ;;  %v3847_v27 = vrot.slane %v3846_v33, 4  ;;  %v3853_v54 = vsel %vm3201_vm12, %v2935_v51, -inf  ;;  %v3861_v45 = vrot.slane %v3860_v38, 4 }
 0x2f8   : > { %2370 = vst.msk [vmem:[#allocation3 + $0x40] sm:$0xff] %vm2361_vm11, %v2242_v40  ;;  %v4710_v30 = vpop.f32.mrf.mxu1  ;;  %v3382_v16 = vrot.slane %v3381_v57, 1  ;;  %v3867_v63 = vsel %vm3201_vm12, %v2936_v24, -inf  ;;  %v3376_v17 = vmax.f32 %v3374_v1, %v3375_v31  ;;  %v3389_v13 = vrot.slane %v3388_v48, 1 }
 0x2f9   : > { %2387 = vst.msk [vmem:[#allocation3 + $0xc8] sm:$0xff] %vm2361_vm11, %v4710_v30  ;;  %v3396_v0 = vrot.slane %v3395_v15, 1  ;;  %v3848_v59 = vmax.f32 %v3846_v33, %v3847_v27  ;;  %v3854_v9 = vrot.slane %v3853_v54, 4  ;;  %v3862_v8 = vmax.f32 %v3860_v38, %v3861_v45 }
 0x2fa   : > { %v2322_v4 = vpop.f32.mrf.mxu1  ;;  %v3383_v40 = vmax.f32 %v3381_v57, %v3382_v16  ;;  %v2910_v14 = vrot.slane %v2487_v56, %v6321_v55  ;;  %v3390_v53 = vmax.f32 %v3388_v48, %v3389_v13  ;;  %v3868_v47 = vrot.slane %v3867_v63, 4 }
 0x2fb   : > { %2386 = vst.msk [vmem:[#allocation3 + $0xc0] sm:$0xff] %vm2361_vm11, %v2322_v4  ;;  %v3397_v30 = vmax.f32 %v3395_v15, %v3396_v0  ;;  %v3849_v41 = vrot.slane %v3848_v59, 2  ;;  %v3855_v46 = vmax.f32 %v3853_v54, %v3854_v9  ;;  %v3863_v24 = vrot.slane %v3862_v8, 2 }
 0x2fc   : > { %v4126_v51 = vsel %vm2361_vm11, %v3383_v40, -inf  ;;  %v2917_v1 = vrot.slane %v2903_v37, %v6321_v55  ;;  %v3425_v31 = vmax.f32 %v6852_v35, %v3424_v49  ;;  %v6890_v33 = vsel %vm2361_vm11, %v3418_v3, -inf }
 0x2fd   : > { %v4123_v57 = vsel %vm2361_vm11, %v3376_v17, -inf  ;;  %v3850_v45 = vmax.f32 %v3848_v59, %v3849_v41  ;;  %v4127_v56 = vmax.f32 %v6817_v29, %v4126_v51  ;;  %v4129_v0 = vsel %vm2361_vm11, %v3390_v53, -inf }
 0x2fe   : > { %v3856_v38 = vrot.slane %v3855_v46, 2  ;;  %v3864_v48 = vmax.f32 %v3862_v8, %v3863_v24  ;;  %v3869_v16 = vmax.f32 %v3867_v63, %v3868_v47  ;;  %v2918_v37 = vcombine.high %v2910_v14, %v2910_v14 }
 0x2ff   : > { %v3851_v27 = vrot.slane %v3850_v45, 1  ;;  %v4124_v35 = vmax.f32 %v6814_v60, %v4123_v57  ;;  %v6899_v3 = vsel %vm2361_vm11, %v3397_v30, -inf  ;;  %v2919_v17 = vcombine.high %v2917_v1, %v2917_v1 }
 0x300   : > { %v3857_v49 = vmax.f32 %v3855_v46, %v3856_v38  ;;  %v4130_v41 = vmax.f32 %v6820_v52, %v4129_v0  ;;  %v3865_v29 = vrot.slane %v3864_v48, 1  ;;  %v3818_v54 = vsel %vm3201_vm12, %v2910_v14, -inf  ;;  %v2403_v46 = vld [vmem:[#allocation3 + $0x48] sm:$0xff] }
 0x301   : > { %v3825_v4 = vsel %vm3201_vm12, %v2918_v37, -inf  ;;  %v4368_v13 = vsel %vm4354_vm13, %v4127_v56, %v4124_v35  ;;  %v3852_v59 = vmax.f32 %v3850_v45, %v3851_v27  ;;  %v3819_v40 = vrot.slane %v3818_v54, 4 }
 0x302   : > { %v3826_v47 = vrot.slane %v3825_v4, 4  ;;  %v3858_v63 = vrot.slane %v3857_v49, 1  ;;  %v3870_v9 = vrot.slane %v3869_v16, 2  ;;  %v3832_v60 = vsel %vm3201_vm12, %v2917_v1, -inf  ;;  %v2402_v1 = vld [vmem:[#allocation3 + $0x40] sm:$0xff] }
 0x303   : > { %v3839_v8 = vsel %vm3201_vm12, %v2919_v17, -inf  ;;  %v6910_v53 = vsel %vm2361_vm11, %v3425_v31, -inf  ;;  %v3820_v30 = vmax.f32 %v3818_v54, %v3819_v40  ;;  %v6915_v51 = vsel %vm4356_vm14, %v4130_v41, %v4368_v13 }
 0x304   : > { %v3866_v24 = vmax.f32 %v3864_v48, %v3865_v29  ;;  %v3827_v57 = vmax.f32 %v3825_v4, %v3826_v47  ;;  %v3833_v45 = vrot.slane %v3832_v60, 4  ;;  %v6918_v56 = vsel %vm2361_vm11, %v3852_v59, -inf }
 0x305   : > { %7699 = vst [vmem:[#allocation14_spill] sm:$0xff] %v6918_v56  ;;  %v3821_v0 = vrot.slane %v3820_v30, 2  ;;  %v3840_v38 = vrot.slane %v3839_v8, 4  ;;  %v2442_v27 = vadd.f32 %v6807_v58, %v2403_v46  ;;  %v3859_v31 = vmax.f32 %v3857_v49, %v3858_v63 }
 0x306   : > { %v3871_v37 = vmax.f32 %v3869_v16, %v3870_v9  ;;  %v3828_v35 = vrot.slane %v3827_v57, 2  ;;  %v3834_v17 = vmax.f32 %v3832_v60, %v3833_v45  ;;  %v2441_v41 = vadd.f32 %v6807_v58, %v2402_v1 }
 0x307   : > { %v3822_v52 = vmax.f32 %v3820_v30, %v3821_v0  ;;  %v3841_v54 = vmax.f32 %v3839_v8, %v3840_v38  ;;  %v2474_v40 = vmax.f32 %v2442_v27, 0.0  ;;  %v6925_v29 = vsel %vm2361_vm11, %v3866_v24, -inf  ;;  %v2419_v8 = vld [vmem:[#allocation3 + $0xc8] sm:$0xff] }
 0x308   : > { %7700 = vst [vmem:[#allocation30_spill] sm:$0xff] %v6925_v29  ;;  %v3829_v4 = vmax.f32 %v3827_v57, %v3828_v35  ;;  %v3835_v13 = vrot.slane %v3834_v17, 2  ;;  %v3872_v49 = vrot.slane %v3871_v37, 1  ;;  %v2473_v60 = vmax.f32 %v2441_v41, 0.0 }
 0x309   : > { %v3823_v59 = vrot.slane %v3822_v52, 1  ;;  %v3842_v47 = vrot.slane %v3841_v54, 2  ;;  %v2682_v46 = vcombine.high %v2474_v40, %v2474_v40  ;;  %v2689_v16 = vrot.slane %v2474_v40, %v6321_v55 }
 0x30a   : > { %v3830_v63 = vrot.slane %v3829_v4, 1  ;;  %v3836_v9 = vmax.f32 %v3834_v17, %v3835_v13  ;;  %v6930_v24 = vsel %vm2361_vm11, %v3859_v31, -inf  ;;  %v2458_v17 = vadd.f32 %v6807_v58, %v2419_v8 }
 0x30b   : > { %v3824_v30 = vmax.f32 %v3822_v52, %v3823_v59  ;;  %v3843_v45 = vmax.f32 %v3841_v54, %v3842_v47  ;;  %v2696_v1 = vrot.slane %v2682_v46, %v6321_v55  ;;  %v2697_v0 = vcombine.high %v2689_v16, %v2689_v16  ;;  %7701 = vst [vmem:[#allocation16_spill] sm:$0xff] %v6930_v24 }
 0x30c   : > { %v3831_v38 = vmax.f32 %v3829_v4, %v3830_v63  ;;  %v3454_v27 = vsel %vm3201_vm12, %v2689_v16, -inf  ;;  %v3837_v35 = vrot.slane %v3836_v9, 1  ;;  %v3873_v41 = vmax.f32 %v3871_v37, %v3872_v49 }
 0x30d   : > { %v2698_v40 = vcombine.high %v2696_v1, %v2696_v1  ;;  %v3455_v48 = vrot.slane %v3454_v27, 4  ;;  %v3844_v52 = vrot.slane %v3843_v45, 1  ;;  %v4219_v54 = vsel %vm2361_vm11, %v3824_v30, -inf }
 0x30e   : > { %v3461_v13 = vsel %vm3201_vm12, %v2697_v0, -inf  ;;  %v2665_v46 = vcombine.high %v2473_v60, %v2473_v60  ;;  %v4222_v4 = vsel %vm2361_vm11, %v3831_v38, -inf  ;;  %v3468_v16 = vsel %vm3201_vm12, %v2696_v1, -inf }
 0x30f   : > { %v3456_v59 = vmax.f32 %v3454_v27, %v3455_v48  ;;  %v3462_v47 = vrot.slane %v3461_v13, 4  ;;  %v3475_v63 = vsel %vm3201_vm12, %v2698_v40, -inf  ;;  %v2672_v8 = vrot.slane %v2473_v60, %v6321_v55 }
 0x310   : > { %v3838_v37 = vmax.f32 %v3836_v9, %v3837_v35  ;;  %v4220_v49 = vmax.f32 %v6848_v2, %v4219_v54  ;;  %v2490_v57 = vmax.f32 %v2458_v17, 0.0  ;;  %v3845_v0 = vmax.f32 %v3843_v45, %v3844_v52 }
 0x311   : > { %v3457_v30 = vrot.slane %v3456_v59, 2  ;;  %v3463_v15 = vmax.f32 %v3461_v13, %v3462_v47  ;;  %v3469_v14 = vrot.slane %v3468_v16, 4  ;;  %v3476_v31 = vrot.slane %v3475_v63, 4 }
 0x312   : > { %v4223_v48 = vmax.f32 %v6857_v36, %v4222_v4  ;;  %v2679_v38 = vrot.slane %v2665_v46, %v6321_v55  ;;  %v2680_v29 = vcombine.high %v2672_v8, %v2672_v8  ;;  %v3426_v60 = vsel %vm3201_vm12, %v2672_v8, -inf }
 0x313   : > { %v3458_v27 = vmax.f32 %v3456_v59, %v3457_v30  ;;  %v3464_v1 = vrot.slane %v3463_v15, 2  ;;  %v3470_v32 = vmax.f32 %v3468_v16, %v3469_v14  ;;  %v3477_v40 = vmax.f32 %v3475_v63, %v3476_v31 }
 0x314   : > { %v4225_v9 = vsel %vm2361_vm11, %v3838_v37, -inf  ;;  %v2681_v2 = vcombine.high %v2679_v38, %v2679_v38  ;;  %v3427_v35 = vrot.slane %v3426_v60, 4  ;;  %v3433_v45 = vsel %vm3201_vm12, %v2680_v29, -inf }
 0x315   : > { %v3465_v17 = vmax.f32 %v3463_v15, %v3464_v1  ;;  %v3471_v52 = vrot.slane %v3470_v32, 2  ;;  %v3478_v54 = vrot.slane %v3477_v40, 2  ;;  %v3434_v13 = vrot.slane %v3433_v45, 4 }
 0x316   : > { %v3459_v36 = vrot.slane %v3458_v27, 1  ;;  %v3428_v59 = vmax.f32 %v3426_v60, %v3427_v35  ;;  %v3440_v47 = vsel %vm3201_vm12, %v2679_v38, -inf  ;;  %v3447_v46 = vsel %vm3201_vm12, %v2681_v2, -inf }
 0x317   : > { %v3466_v14 = vrot.slane %v3465_v17, 1  ;;  %v3472_v31 = vmax.f32 %v3470_v32, %v3471_v52  ;;  %v3479_v4 = vmax.f32 %v3477_v40, %v3478_v54  ;;  %v3435_v16 = vmax.f32 %v3433_v45, %v3434_v13 }
 0x318   : > { %v4226_v63 = vmax.f32 %v6860_v62, %v4225_v9  ;;  %v3429_v8 = vrot.slane %v3428_v59, 2  ;;  %v3441_v37 = vrot.slane %v3440_v47, 4  ;;  %v3448_v30 = vrot.slane %v3447_v46, 4 }
 0x319   : > { %v6954_v15 = vsel %vm2361_vm11, %v3845_v0, -inf  ;;  %v4396_v29 = vsel %vm4354_vm13, %v4223_v48, %v4220_v49  ;;  %v3473_v1 = vrot.slane %v3472_v31, 1  ;;  %v3436_v60 = vrot.slane %v3435_v16, 2 }
 0x31a   : > { %7702 = vst [vmem:[#allocation32_spill] sm:$0xff] %v6954_v15  ;;  %v3460_v35 = vmax.f32 %v3458_v27, %v3459_v36  ;;  %v3442_v38 = vmax.f32 %v3440_v47, %v3441_v37  ;;  %v3449_v24 = vmax.f32 %v3447_v46, %v3448_v30  ;;  %v2954_v2 = vcombine.high %v2490_v57, %v2490_v57 }
 0x31b   : > { %v6958_v32 = vsel %vm2361_vm11, %v3873_v41, -inf  ;;  %v3467_v40 = vmax.f32 %v3465_v17, %v3466_v14  ;;  %v3480_v45 = vrot.slane %v3479_v4, 1  ;;  %v3430_v62 = vmax.f32 %v3428_v59, %v3429_v8 }
 0x31c   : > { %7703 = vst [vmem:[#allocation51_spill] sm:$0xff] %v6958_v32  ;;  %v3437_v9 = vmax.f32 %v3435_v16, %v3436_v60  ;;  %v3443_v52 = vrot.slane %v3442_v38, 2  ;;  %v3450_v54 = vrot.slane %v3449_v24, 2  ;;  %v2961_v0 = vrot.slane %v2490_v57, %v6321_v55 }
 0x31d   : > { %v6964_v48 = vsel %vm4356_vm14, %v4226_v63, %v4396_v29  ;;  %v3474_v27 = vmax.f32 %v3472_v31, %v3473_v1  ;;  %v2968_v36 = vrot.slane %v2954_v2, %v6321_v55  ;;  %v6969_v17 = vsel %vm2361_vm11, %v3460_v35, -inf }
 0x31e   : > { %7704 = vst [vmem:[#allocation66_spill] sm:$0xff] %v6964_v48  ;;  %v3444_v59 = vmax.f32 %v3442_v38, %v3443_v52  ;;  %v3451_v47 = vmax.f32 %v3449_v24, %v3450_v54  ;;  %v2969_v46 = vcombine.high %v2961_v0, %v2961_v0  ;;  %v3431_v14 = vrot.slane %v3430_v62, 1  ;;  %v2418_v24 = vld [vmem:[#allocation3 + $0xc0] sm:$0xff] }
 0x31f   : > { %v2970_v16 = vcombine.high %v2968_v36, %v2968_v36  ;;  %v3902_v63 = vsel %vm3201_vm12, %v2961_v0, -inf  ;;  %v3916_v31 = vsel %vm3201_vm12, %v2968_v36, -inf  ;;  %v3481_v37 = vmax.f32 %v3479_v4, %v3480_v45 }
 0x320   : > { %v4689_v13 = vpop.f32.mrf.mxu0  ;;  %v6976_v30 = vsel %vm2361_vm11, %v3467_v40, -inf  ;;  %v3438_v29 = vrot.slane %v3437_v9, 1  ;;  %v3903_v1 = vrot.slane %v3902_v63, 4  ;;  %v6980_v60 = vsel %vm2361_vm11, %v3474_v27, -inf }
 0x321   : > { %2373 = vst.msk [vmem:[#allocation3 + $0x58] sm:$0xff] %vm2361_vm11, %v4689_v13  ;;  %v4713_v41 = vpop.f32.mrf.mxu1  ;;  %v3909_v35 = vsel %vm3201_vm12, %v2969_v46, -inf  ;;  %v3917_v38 = vrot.slane %v3916_v31, 4  ;;  %v3923_v2 = vsel %vm3201_vm12, %v2970_v16, -inf  ;;  %v3445_v52 = vrot.slane %v3444_v59, 1 }
 0x322   : > { %2389 = vst.msk [vmem:[#allocation3 + $0xd8] sm:$0xff] %vm2361_vm11, %v4713_v41  ;;  %v2252_v57 = vpop.f32.mrf.mxu0  ;;  %v3452_v54 = vrot.slane %v3451_v47, 1  ;;  %v3904_v0 = vmax.f32 %v3902_v63, %v3903_v1  ;;  %v3910_v4 = vrot.slane %v3909_v35, 4  ;;  %v3432_v45 = vmax.f32 %v3430_v62, %v3431_v14 }
 0x323   : > { %2372 = vst.msk [vmem:[#allocation3 + $0x50] sm:$0xff] %vm2361_vm11, %v2252_v57  ;;  %v2332_v8 = vpop.f32.mrf.mxu1  ;;  %v3918_v40 = vmax.f32 %v3916_v31, %v3917_v38  ;;  %v3924_v13 = vrot.slane %v3923_v2, 4  ;;  %v2457_v36 = vadd.f32 %v6807_v58, %v2418_v24  ;;  %v6986_v41 = vsel %vm2361_vm11, %v3481_v37, -inf }
 0x324   : > { %2388 = vst.msk [vmem:[#allocation3 + $0xd0] sm:$0xff] %vm2361_vm11, %v2332_v8  ;;  %v3439_v57 = vmax.f32 %v3437_v9, %v3438_v29  ;;  %v3905_v27 = vrot.slane %v3904_v0, 2  ;;  %v3911_v8 = vmax.f32 %v3909_v35, %v3910_v4  ;;  %v3446_v63 = vmax.f32 %v3444_v59, %v3445_v52 }
 0x325   : > { %v3919_v46 = vrot.slane %v3918_v40, 2  ;;  %v3925_v28 = vmax.f32 %v3923_v2, %v3924_v13  ;;  %v2489_v56 = vmax.f32 %v2457_v36, 0.0  ;;  %v3453_v1 = vmax.f32 %v3451_v47, %v3452_v54 }
 0x326   : > { %v3906_v62 = vmax.f32 %v3904_v0, %v3905_v27  ;;  %v3912_v14 = vrot.slane %v3911_v8, 2  ;;  %v6990_v31 = vsel %vm2361_vm11, %v3432_v45, -inf  ;;  %v6994_v29 = vsel %vm2361_vm11, %v3439_v57, -inf }
 0x327   : > { %v3920_v24 = vmax.f32 %v3918_v40, %v3919_v46  ;;  %v2937_v37 = vcombine.high %v2489_v56, %v2489_v56  ;;  %v2944_v9 = vrot.slane %v2489_v56, %v6321_v55  ;;  %v3926_v47 = vrot.slane %v3925_v28, 2 }
 0x328   : > { %v2405_v49 = vld [vmem:[#allocation3 + $0x58] sm:$0xff]  ;;  %v3907_v59 = vrot.slane %v3906_v62, 1  ;;  %v7001_v54 = vsel %vm2361_vm11, %v3446_v63, -inf  ;;  %v7004_v0 = vsel %vm2361_vm11, %v3453_v1, -inf  ;;  %v3913_v56 = vmax.f32 %v3911_v8, %v3912_v14 }
 0x329   : > { %v2444_v16 = vadd.f32 %v6807_v58, %v2405_v49  ;;  %v2421_v7 = vld [vmem:[#allocation3 + $0xd8] sm:$0xff]  ;;  %v2951_v2 = vrot.slane %v2937_v37, %v6321_v55  ;;  %v2952_v52 = vcombine.high %v2944_v9, %v2944_v9  ;;  %v3874_v4 = vsel %vm3201_vm12, %v2944_v9, -inf }
 0x32a   : > { %v2460_v38 = vadd.f32 %v6807_v58, %v2421_v7  ;;  %v3921_v45 = vrot.slane %v3920_v24, 1  ;;  %v3875_v7 = vrot.slane %v3874_v4, 4  ;;  %v3927_v63 = vmax.f32 %v3925_v28, %v3926_v47 }
 0x32b   : > { %v2476_v35 = vmax.f32 %v2444_v16, 0.0  ;;  %v2953_v40 = vcombine.high %v2951_v2, %v2951_v2  ;;  %v3881_v36 = vsel %vm3201_vm12, %v2952_v52, -inf  ;;  %v3888_v57 = vsel %vm3201_vm12, %v2951_v2, -inf }
 0x32c   : > { %v2492_v46 = vmax.f32 %v2460_v38, 0.0  ;;  %v3908_v16 = vmax.f32 %v3906_v62, %v3907_v59  ;;  %v3876_v37 = vmax.f32 %v3874_v4, %v3875_v7  ;;  %v3882_v1 = vrot.slane %v3881_v36, 4 }
 0x32d   : > { %v2716_v27 = vcombine.high %v2476_v35, %v2476_v35  ;;  %v3914_v49 = vrot.slane %v3913_v56, 1  ;;  %v3889_v8 = vrot.slane %v3888_v57, 4  ;;  %v3895_v14 = vsel %vm3201_vm12, %v2953_v40, -inf }
 0x32e   : > { %v2723_v9 = vrot.slane %v2476_v35, %v6321_v55  ;;  %v3922_v43 = vmax.f32 %v3920_v24, %v3921_v45  ;;  %v3877_v15 = vrot.slane %v3876_v37, 2  ;;  %v3883_v18 = vmax.f32 %v3881_v36, %v3882_v1 }
 0x32f   : > { %v3896_v13 = vrot.slane %v3895_v14, 4  ;;  %v3890_v32 = vmax.f32 %v3888_v57, %v3889_v8  ;;  %v2730_v52 = vrot.slane %v2716_v27, %v6321_v55  ;;  %v3928_v24 = vrot.slane %v3927_v63, 1 }
 0x330   : > { %v2731_v2 = vcombine.high %v2723_v9, %v2723_v9  ;;  %v3510_v38 = vsel %vm3201_vm12, %v2723_v9, -inf  ;;  %v3878_v62 = vmax.f32 %v3876_v37, %v3877_v15  ;;  %v3884_v28 = vrot.slane %v3883_v18, 2 }
 0x331   : > { %v3897_v59 = vmax.f32 %v3895_v14, %v3896_v13  ;;  %v3511_v47 = vrot.slane %v3510_v38, 4  ;;  %v3891_v4 = vrot.slane %v3890_v32, 2  ;;  %v2732_v7 = vcombine.high %v2730_v52, %v2730_v52 }
 0x332   : > { %v3517_v40 = vsel %vm3201_vm12, %v2731_v2, -inf  ;;  %v3524_v35 = vsel %vm3201_vm12, %v2730_v52, -inf  ;;  %v3885_v45 = vmax.f32 %v3883_v18, %v3884_v28  ;;  %v3915_v9 = vmax.f32 %v3913_v56, %v3914_v49 }
 0x333   : > { %v3898_v36 = vrot.slane %v3897_v59, 2  ;;  %v3512_v1 = vmax.f32 %v3510_v38, %v3511_v47  ;;  %v3892_v57 = vmax.f32 %v3890_v32, %v3891_v4  ;;  %v3518_v8 = vrot.slane %v3517_v40, 4 }
 0x334   : > { %v3525_v27 = vrot.slane %v3524_v35, 4  ;;  %v3531_v10 = vsel %vm3201_vm12, %v2732_v7, -inf  ;;  %v7019_v15 = vsel %vm2361_vm11, %v3908_v16, -inf  ;;  %v3879_v14 = vrot.slane %v3878_v62, 1 }
 0x335   : > { %v3899_v13 = vmax.f32 %v3897_v59, %v3898_v36  ;;  %v3513_v37 = vrot.slane %v3512_v1, 2  ;;  %v3519_v48 = vmax.f32 %v3517_v40, %v3518_v8  ;;  %v3532_v34 = vrot.slane %v3531_v10, 4 }
 0x336   : > { %v3526_v2 = vmax.f32 %v3524_v35, %v3525_v27  ;;  %v7021_v52 = vmax.f32 %v3927_v63, %v3928_v24  ;;  %v3886_v18 = vrot.slane %v3885_v45, 1  ;;  %v3893_v28 = vrot.slane %v3892_v57, 1  ;;  %v2404_v27 = vld [vmem:[#allocation3 + $0x50] sm:$0xff] }
 0x337   : > { %v3514_v38 = vmax.f32 %v3512_v1, %v3513_v37  ;;  %v3900_v32 = vrot.slane %v3899_v13, 1  ;;  %v3520_v47 = vrot.slane %v3519_v48, 2  ;;  %v3533_v19 = vmax.f32 %v3531_v10, %v3532_v34 }
 0x338   : > { %7705 = vst [vmem:[#allocation17_spill] sm:$0xff] %v7021_v52  ;;  %v3527_v4 = vrot.slane %v3526_v2, 2  ;;  %v7024_v49 = vsel %vm2361_vm11, %v3915_v9, -inf  ;;  %v7027_v56 = vsel %vm2361_vm11, %v3922_v43, -inf  ;;  %v2988_v59 = vcombine.high %v2492_v46, %v2492_v46 }
 0x339   : > { %7706 = vst [vmem:[#allocation44_spill] sm:$0xff] %v7024_v49  ;;  %7707 = vst [vmem:[#allocation59_spill] sm:$0xff] %v7027_v56  ;;  %v3515_v16 = vrot.slane %v3514_v38, 1  ;;  %v3880_v7 = vmax.f32 %v3878_v62, %v3879_v14  ;;  %v3521_v40 = vmax.f32 %v3519_v48, %v3520_v47  ;;  %v3534_v63 = vrot.slane %v3533_v19, 2 }
 0x33a   : > { %v3528_v35 = vmax.f32 %v3526_v2, %v3527_v4  ;;  %v3887_v24 = vmax.f32 %v3885_v45, %v3886_v18  ;;  %v2995_v1 = vrot.slane %v2492_v46, %v6321_v55  ;;  %v3002_v8 = vrot.slane %v2988_v59, %v6321_v55 }
 0x33b   : > { %v3516_v36 = vmax.f32 %v3514_v38, %v3515_v16  ;;  %v3894_v34 = vmax.f32 %v3892_v57, %v3893_v28  ;;  %v3901_v10 = vmax.f32 %v3899_v13, %v3900_v32  ;;  %v3522_v9 = vrot.slane %v3521_v40, 1  ;;  %v2420_v32 = vld [vmem:[#allocation3 + $0xd0] sm:$0xff] }
 0x33c   : > { %v3535_v37 = vmax.f32 %v3533_v19, %v3534_v63  ;;  %v3529_v52 = vrot.slane %v3528_v35, 1  ;;  %v3003_v43 = vcombine.high %v2995_v1, %v2995_v1  ;;  %v3004_v56 = vcombine.high %v3002_v8, %v3002_v8 }
 0x33d   : > { %v3958_v49 = vsel %vm3201_vm12, %v2995_v1, -inf  ;;  %v7033_v48 = vsel %vm2361_vm11, %v3880_v7, -inf  ;;  %v7036_v45 = vsel %vm2361_vm11, %v3516_v36, -inf  ;;  %v2443_v46 = vadd.f32 %v6807_v58, %v2404_v27 }
 0x33e   : > { %v3536_v62 = vrot.slane %v3535_v37, 1  ;;  %v3959_v14 = vrot.slane %v3958_v49, 4  ;;  %v3965_v57 = vsel %vm3201_vm12, %v3003_v43, -inf  ;;  %v3972_v13 = vsel %vm3201_vm12, %v3002_v8, -inf }
 0x33f   : > { %v3979_v19 = vsel %vm3201_vm12, %v3004_v56, -inf  ;;  %v7043_v2 = vsel %vm2361_vm11, %v3887_v24, -inf  ;;  %v7046_v18 = vsel %vm2361_vm11, %v3894_v34, -inf  ;;  %v7049_v28 = vsel %vm2361_vm11, %v3901_v10, -inf }
 0x340   : > { %v3966_v38 = vrot.slane %v3965_v57, 4  ;;  %v3523_v47 = vmax.f32 %v3521_v40, %v3522_v9  ;;  %v3530_v4 = vmax.f32 %v3528_v35, %v3529_v52  ;;  %v3960_v16 = vmax.f32 %v3958_v49, %v3959_v14 }
 0x341   : > { %v3973_v59 = vrot.slane %v3972_v13, 4  ;;  %v3980_v56 = vrot.slane %v3979_v19, 4  ;;  %v2475_v36 = vmax.f32 %v2443_v46, 0.0  ;;  %v3537_v24 = vmax.f32 %v3535_v37, %v3536_v62 }
 0x342   : > { %v3967_v63 = vmax.f32 %v3965_v57, %v3966_v38  ;;  %v3961_v1 = vrot.slane %v3960_v16, 2  ;;  %v2459_v27 = vadd.f32 %v6807_v58, %v2420_v32  ;;  %v7056_v52 = vsel %vm2361_vm11, %v3523_v47, -inf }
 0x343   : > { %v3974_v8 = vmax.f32 %v3972_v13, %v3973_v59  ;;  %v3981_v10 = vmax.f32 %v3979_v19, %v3980_v56  ;;  %v2699_v43 = vcombine.high %v2475_v36, %v2475_v36  ;;  %v2706_v40 = vrot.slane %v2475_v36, %v6321_v55 }
 0x344   : > { %v3968_v34 = vrot.slane %v3967_v63, 2  ;;  %v7059_v49 = vsel %vm2361_vm11, %v3530_v4, -inf  ;;  %v3962_v35 = vmax.f32 %v3960_v16, %v3961_v1  ;;  %v2491_v19 = vmax.f32 %v2459_v27, 0.0 }
 0x345   : > { %v3975_v9 = vrot.slane %v3974_v8, 2  ;;  %v3982_v14 = vrot.slane %v3981_v10, 2  ;;  %v2713_v37 = vrot.slane %v2699_v43, %v6321_v55  ;;  %v2714_v62 = vcombine.high %v2706_v40, %v2706_v40 }
 0x346   : > { %v3969_v46 = vmax.f32 %v3967_v63, %v3968_v34  ;;  %v3963_v57 = vrot.slane %v3962_v35, 1  ;;  %v3482_v13 = vsel %vm3201_vm12, %v2706_v40, -inf  ;;  %v7064_v56 = vsel %vm2361_vm11, %v3537_v24, -inf }
 0x347   : > { %v3976_v58 = vmax.f32 %v3974_v8, %v3975_v9  ;;  %v3983_v32 = vmax.f32 %v3981_v10, %v3982_v14  ;;  %v2715_v59 = vcombine.high %v2713_v37, %v2713_v37  ;;  %v3483_v47 = vrot.slane %v3482_v13, 4 }
 0x348   : > { %v3970_v38 = vrot.slane %v3969_v46, 1  ;;  %v3489_v16 = vsel %vm3201_vm12, %v2714_v62, -inf  ;;  %v3496_v63 = vsel %vm3201_vm12, %v2713_v37, -inf  ;;  %v3964_v36 = vmax.f32 %v3962_v35, %v3963_v57 }
 0x349   : > { %v3977_v4 = vrot.slane %v3976_v58, 1  ;;  %v3984_v1 = vrot.slane %v3983_v32, 1  ;;  %v3484_v34 = vmax.f32 %v3482_v13, %v3483_v47  ;;  %v3490_v43 = vrot.slane %v3489_v16, 4 }
 0x34a   : > { %v3497_v27 = vrot.slane %v3496_v63, 4  ;;  %v3503_v10 = vsel %vm3201_vm12, %v2715_v59, -inf  ;;  %v2971_v40 = vcombine.high %v2491_v19, %v2491_v19  ;;  %v3971_v9 = vmax.f32 %v3969_v46, %v3970_v38 }
 0x34b   : > { %v3485_v14 = vrot.slane %v3484_v34, 2  ;;  %v7075_v37 = vmax.f32 %v3976_v58, %v3977_v4  ;;  %v3491_v35 = vmax.f32 %v3489_v16, %v3490_v43  ;;  %v7708_v13 = vmax.f32 %v6477_v50, %v6663_v39 }
 0x34c   : > { %v3498_v57 = vmax.f32 %v3496_v63, %v3497_v27  ;;  %v7082_v59 = vmax.f32 %v3983_v32, %v3984_v1  ;;  %v7085_v8 = vsel %vm2361_vm11, %v3964_v36, -inf  ;;  %v3504_v38 = vrot.slane %v3503_v10, 4 }
 0x34d   : > { %v4359_v47 = vsel %vm4358_vm15, %v7708_v13, %v6735_v21  ;;  %v3486_v46 = vmax.f32 %v3484_v34, %v3485_v14  ;;  %v3492_v24 = vrot.slane %v3491_v35, 2  ;;  %v2978_v58 = vrot.slane %v2491_v19, %v6321_v55 }
 0x34e   : > { %v3499_v7 = vrot.slane %v3498_v57, 2  ;;  %v2985_v4 = vrot.slane %v2971_v40, %v6321_v55  ;;  %v7090_v16 = vsel %vm2361_vm11, %v3971_v9, -inf  ;;  %v3505_v50 = vmax.f32 %v3503_v10, %v3504_v38 }
 0x34f   : > { %v3487_v63 = vrot.slane %v3486_v46, 1  ;;  %v3493_v39 = vmax.f32 %v3491_v35, %v3492_v24  ;;  %v2986_v32 = vcombine.high %v2978_v58, %v2978_v58  ;;  %v3930_v34 = vsel %vm3201_vm12, %v2978_v58, -inf }
 0x350   : > { %v3500_v21 = vmax.f32 %v3498_v57, %v3499_v7  ;;  %v2987_v1 = vcombine.high %v2985_v4, %v2985_v4  ;;  %v3506_v43 = vrot.slane %v3505_v50, 2  ;;  %v3944_v27 = vsel %vm3201_vm12, %v2985_v4, -inf }
 0x351   : > { %v3488_v36 = vmax.f32 %v3486_v46, %v3487_v63  ;;  %v3494_v14 = vrot.slane %v3493_v39, 1  ;;  %v3931_v40 = vrot.slane %v3930_v34, 4  ;;  %v3937_v9 = vsel %vm3201_vm12, %v2986_v32, -inf }
 0x352   : > { %v3501_v19 = vrot.slane %v3500_v21, 1  ;;  %v3507_v13 = vmax.f32 %v3505_v50, %v3506_v43  ;;  %v3938_v38 = vrot.slane %v3937_v9, 4  ;;  %v3945_v24 = vrot.slane %v3944_v27, 4 }
 0x353   : > { %v4147_v10 = vsel %vm2361_vm11, %v3488_v36, -inf  ;;  %v3495_v7 = vmax.f32 %v3493_v39, %v3494_v14  ;;  %v3932_v46 = vmax.f32 %v3930_v34, %v3931_v40  ;;  %v3951_v62 = vsel %vm3201_vm12, %v2987_v1, -inf }
 0x354   : > { %v3502_v35 = vmax.f32 %v3500_v21, %v3501_v19  ;;  %v4148_v57 = vmax.f32 %v6990_v31, %v4147_v10  ;;  %v3508_v63 = vrot.slane %v3507_v13, 1  ;;  %v3939_v58 = vmax.f32 %v3937_v9, %v3938_v38 }
 0x355   : > { %v3946_v4 = vmax.f32 %v3944_v27, %v3945_v24  ;;  %v4150_v55 = vsel %vm2361_vm11, %v3495_v7, -inf  ;;  %v3933_v32 = vrot.slane %v3932_v46, 2  ;;  %v3952_v36 = vrot.slane %v3951_v62, 4  ;;  %v7710_v24 = vld [vmem:[#allocation23_spill] sm:$0xff]  ;;  %v7711_v7 = vld [vmem:[#allocation41_spill] sm:$0xff] }
 0x356   : > { %v4153_v50 = vsel %vm2361_vm11, %v3502_v35, -inf  ;;  %v3509_v43 = vmax.f32 %v3507_v13, %v3508_v63  ;;  %v4151_v39 = vmax.f32 %v6994_v29, %v4150_v55  ;;  %v3940_v31 = vrot.slane %v3939_v58, 2 }
 0x357   : > { %v4154_v21 = vmax.f32 %v7001_v54, %v4153_v50  ;;  %v3934_v34 = vmax.f32 %v3932_v46, %v3933_v32  ;;  %v3947_v14 = vrot.slane %v3946_v4, 2  ;;  %v3953_v19 = vmax.f32 %v3951_v62, %v3952_v36  ;;  %v7713_v46 = vld [vmem:[#allocation27_spill] sm:$0xff] }
 0x358   : > { %v7709_v1 = vmax.f32 %v6415_v6, %v6581_v26  ;;  %v4156_v40 = vsel %vm2361_vm11, %v3509_v43, -inf  ;;  %v4375_v9 = vsel %vm4354_vm13, %v4151_v39, %v4148_v57  ;;  %v3941_v13 = vmax.f32 %v3939_v58, %v3940_v31  ;;  %v7714_v57 = vld [vmem:[#allocation29_spill] sm:$0xff] }
 0x359   : > { %v4157_v55 = vmax.f32 %v7004_v0, %v4156_v40  ;;  %v4376_v29 = vsel %vm4356_vm14, %v4154_v21, %v4375_v9  ;;  %v3935_v54 = vrot.slane %v3934_v34, 1  ;;  %v3948_v10 = vmax.f32 %v3946_v4, %v3947_v14 }
 0x35a   : > { %v4361_v27 = vsel %vm4360_vm0, %v7709_v1, %v4359_v47  ;;  %v3942_v62 = vrot.slane %v3941_v13, 1  ;;  %v3954_v38 = vrot.slane %v3953_v19, 2  ;;  %v7712_v35 = vmax.f32 %v7710_v24, %v7711_v7  ;;  %v7734_v24 = vld [vmem:[#allocation9_spill] sm:$0xff] }
 0x35b   : > { %v3936_v26 = vmax.f32 %v3934_v34, %v3935_v54  ;;  %v3949_v47 = vrot.slane %v3948_v10, 1  ;;  %v7715_v63 = vmax.f32 %v7713_v46, %v7714_v57  ;;  %v7716_v4 = vmax.f32 %v7692_v12, %v6631_v25  ;;  %v7730_v54 = vld [vmem:[#allocation32_spill] sm:$0xff] }
 0x35c   : > { %v4363_v6 = vsel %vm4362_vm1, %v7712_v35, %v4361_v27  ;;  %v3943_v0 = vmax.f32 %v3941_v13, %v3942_v62  ;;  %v3955_v50 = vmax.f32 %v3953_v19, %v3954_v38  ;;  %v7717_v36 = vmax.f32 %v6823_v5, %v6899_v3  ;;  %v7726_v13 = vld [vmem:[#allocation31_spill] sm:$0xff]  ;;  %v7733_v38 = vld [vmem:[#allocation22_spill] sm:$0xff] }
 0x35d   : > { %v4365_v58 = vsel %vm4364_vm2, %v7715_v63, %v4363_v6  ;;  %v3950_v39 = vmax.f32 %v3948_v10, %v3949_v47  ;;  %v4243_v21 = vsel %vm2361_vm11, %v3936_v26, -inf  ;;  %v7718_v31 = vmax.f32 %v6784_v20, %v6867_v44  ;;  %v7736_v26 = vld [vmem:[#allocation24_spill] sm:$0xff]  ;;  %v7737_v47 = vld [vmem:[#allocation15_spill] sm:$0xff]  ;;  %v7739_v63 = vld [vmem:[#allocation10_spill] sm:$0xff] }
 0x35e   : > { %v4367_v32 = vsel %vm4366_vm3, %v7716_v4, %v4365_v58  ;;  %v4370_v43 = vsel %vm4358_vm15, %v7717_v36, %v6915_v51  ;;  %v4377_v14 = vsel %vm4358_vm15, %v4157_v55, %v4376_v29  ;;  %v3956_v25 = vrot.slane %v3955_v50, 1  ;;  %v7729_v29 = vld [vmem:[#allocation28_spill] sm:$0xff]  ;;  %v7740_v58 = vld [vmem:[#allocation14_spill] sm:$0xff] }
 0x35f   : > { %v4371_v34 = vsel %vm4360_vm0, %v7718_v31, %v4370_v43  ;;  %4425 = vst.msk [vmem:[%s7136_s9] sm:$0xff] %vm2361_vm11, %v4367_v32  ;;  %v4244_v12 = vmax.f32 %v7033_v48, %v4243_v21  ;;  %v4246_v5 = vsel %vm2361_vm11, %v3943_v0, -inf  ;;  %v7719_v3 = vmax.f32 %v6790_v61, %v6874_v22  ;;  %v7743_v4 = vld [vmem:[#allocation42_spill] sm:$0xff]  ;;  %v7745_v43 = vld [vmem:[#allocation11_spill] sm:$0xff] }
 0x360   : > { %v4247_v44 = vmax.f32 %v7043_v2, %v4246_v5  ;;  %v4249_v51 = vsel %vm2361_vm11, %v3950_v39, -inf  ;;  %v7720_v19 = vmax.f32 %v6793_v11, %v6890_v33  ;;  %v7721_v27 = vmax.f32 %v6969_v17, %v7036_v45  ;;  %v7746_v39 = vld [vmem:[#allocation16_spill] sm:$0xff]  ;;  %v7753_v5 = vld [vmem:[#allocation30_spill] sm:$0xff] }
 0x361   : > { %v4372_v20 = vsel %vm4362_vm1, %v7719_v3, %v4371_v34  ;;  %v3957_v40 = vmax.f32 %v3955_v50, %v3956_v25  ;;  %v4250_v9 = vmax.f32 %v7046_v18, %v4249_v51  ;;  %v7722_v61 = vmax.f32 %v6799_v23, %v6910_v53  ;;  %v7725_v18 = vld [vmem:[#allocation25_spill] sm:$0xff]  ;;  %v7728_v53 = vld [vmem:[#allocation66_spill] sm:$0xff]  ;;  %v7742_v50 = vld [vmem:[#allocation8_spill] sm:$0xff] }
 0x362   : > { %v4373_v1 = vsel %vm4364_vm2, %v7720_v19, %v4372_v20  ;;  %v4378_v48 = vsel %vm4360_vm0, %v7721_v27, %v4377_v14  ;;  %v7723_v2 = vmax.f32 %v6976_v30, %v7056_v52  ;;  %v4403_v33 = vsel %vm4354_vm13, %v4247_v44, %v4244_v12  ;;  %v7748_v34 = vld [vmem:[#allocation44_spill] sm:$0xff]  ;;  %v7752_v12 = vld [vmem:[#allocation43_spill] sm:$0xff]  ;;  %v7755_v51 = vld [vmem:[#allocation17_spill] sm:$0xff] }
 0x363   : > { %v4374_v22 = vsel %vm4366_vm3, %v7722_v61, %v4373_v1  ;;  %v7724_v17 = vmax.f32 %v6980_v60, %v7059_v49  ;;  %v7727_v55 = vmax.f32 %v7725_v18, %v7726_v13  ;;  %v7731_v10 = vmax.f32 %v7729_v29, %v7730_v54  ;;  %v7756_v1 = vld [vmem:[#allocation59_spill] sm:$0xff]  ;;  %v7250_v18 = vld [vmem:[%s7507_s4] ss:$0 sm:$0xff] }
 0x364   : > { %v4379_v11 = vsel %vm4362_vm1, %v7723_v2, %v4378_v48  ;;  %4426 = vst.msk [vmem:[%s7136_s9 + $0x8] sm:$0xff] %vm2361_vm11, %v4374_v22  ;;  %v4252_v52 = vsel %vm2361_vm11, %v3957_v40, -inf  ;;  %v4404_v60 = vsel %vm4356_vm14, %v4250_v9, %v4403_v33  ;;  %v7732_v49 = vmax.f32 %v6986_v41, %v7064_v56  ;;  %v7757_v48 = vld [vmem:[#allocation12_spill] sm:$0xff]  ;;  %v7758_v40 = vld [vmem:[#allocation51_spill] sm:$0xff] }
 0x365   : > { %v4380_v45 = vsel %vm4364_vm2, %v7724_v17, %v4379_v11  ;;  %v4391_v23 = vsel %vm4358_vm15, %v7727_v55, %v6778_v42  ;;  %v4398_v30 = vsel %vm4358_vm15, %v7731_v10, %v7728_v53  ;;  %v7735_v42 = vmax.f32 %v7733_v38, %v7734_v24 }
 0x366   : > { %v4381_v62 = vsel %vm4366_vm3, %v7732_v49, %v4380_v45  ;;  %v4261_v35 = vsel %vm2361_vm11, %v7075_v37, -inf  ;;  %v4253_v6 = vmax.f32 %v7049_v28, %v4252_v52  ;;  %v7738_v46 = vmax.f32 %v7736_v26, %v7737_v47 }
 0x367   : > { %v4392_v7 = vsel %vm4360_vm0, %v7735_v42, %v4391_v23  ;;  %v7741_v41 = vmax.f32 %v7739_v63, %v7740_v58  ;;  %4427 = vst.msk [vmem:[%s7136_s9 + $0x10] sm:$0xff] %vm2361_vm11, %v4381_v62  ;;  %v4256_v0 = vmax.f32 %v7019_v15, %v7085_v8  ;;  %v4264_v37 = vsel %vm2361_vm11, %v7082_v59, -inf  ;;  %v7749_v15 = vld [vmem:[#allocation13_spill] sm:$0xff]  ;;  %v7750_v8 = vld [vmem:[#allocation26_spill] sm:$0xff] }
 0x368   : > { %v4393_v57 = vsel %vm4362_vm1, %v7738_v46, %v4392_v7  ;;  %v4692_v28 = vpop.f32.mrf.mxu0  ;;  %v7744_v32 = vmax.f32 %v7742_v50, %v7743_v4  ;;  %v7747_v21 = vmax.f32 %v7745_v43, %v7746_v39  ;;  %v4259_v14 = vmax.f32 %v7748_v34, %v7090_v16 }
 0x369   : > { %v4399_v56 = vsel %vm4360_vm0, %v7741_v41, %v4398_v30  ;;  %2375 = vst.msk [vmem:[#allocation3 + $0x68] sm:$0xff] %vm2361_vm11, %v4692_v28  ;;  %v7751_v59 = vmax.f32 %v7749_v15, %v7750_v8  ;;  %v7754_v3 = vmax.f32 %v7752_v12, %v7753_v5  ;;  %v4405_v44 = vsel %vm4358_vm15, %v4253_v6, %v4404_v60  ;;  %v7760_v30 = vld [vmem:[#allocation40_spill] sm:$0xff] }
 0x36a   : > { %v4394_v36 = vsel %vm4364_vm2, %v7744_v32, %v4393_v57  ;;  %v4400_v31 = vsel %vm4362_vm1, %v7747_v21, %v4399_v56  ;;  %v4263_v19 = vsel %vm2361_vm11, %v7755_v51, -inf  ;;  %v4262_v16 = vmax.f32 %v7756_v1, %v4261_v35  ;;  %v2262_v27 = vpop.f32.mrf.mxu0 }
 0x36b   : > { %v4395_v25 = vsel %vm4366_vm3, %v7751_v59, %v4394_v36  ;;  %v4401_v20 = vsel %vm4364_vm2, %v7754_v3, %v4400_v31  ;;  %v7759_v9 = vmax.f32 %v7757_v48, %v7758_v40  ;;  %v4406_v22 = vsel %vm4360_vm0, %v4256_v0, %v4405_v44  ;;  %2374 = vst.msk [vmem:[#allocation3 + $0x60] sm:$0xff] %vm2361_vm11, %v2262_v27 }
 0x36c   : > { %4429 = vst.msk [vmem:[%s7136_s9 + $0x20] sm:$0xff] %vm2361_vm11, %v4395_v25  ;;  %v4265_v2 = vmax.f32 %v4263_v19, %v4264_v37  ;;  %v4407_v11 = vsel %vm4362_vm1, %v4259_v14, %v4406_v22 }
 0x36d   : > { %v4402_v61 = vsel %vm4366_vm3, %v7759_v9, %v4401_v20  ;;  %v4408_v33 = vsel %vm4364_vm2, %v4262_v16, %v4407_v11 }
 0x36e   : > { %4430 = vst.msk [vmem:[%s7136_s9 + $0x28] sm:$0xff] %vm2361_vm11, %v4402_v61  ;;  %v4409_v17 = vsel %vm4366_vm3, %v4265_v2, %v4408_v33 }
 0x36f   : > { %4431 = vst.msk [vmem:[%s7136_s9 + $0x30] sm:$0xff] %vm2361_vm11, %v4409_v17 }
 0x370   : > { %v2407_v45 = vld [vmem:[#allocation3 + $0x68] sm:$0xff] }
 0x371   : > { %v2446_v13 = vadd.f32 %v7250_v18, %v2407_v45 }
 0x372   : > { %v2406_v23 = vld [vmem:[#allocation3 + $0x60] sm:$0xff] }
 0x373   : > { %v4716_v55 = vpop.f32.mrf.mxu1  ;;  %v2478_v53 = vmax.f32 %v2446_v13, 0.0  ;;  %v2445_v29 = vadd.f32 %v7250_v18, %v2406_v23 }
 0x374   : > { %2391 = vst.msk [vmem:[#allocation3 + $0xe8] sm:$0xff] %vm2361_vm11, %v4716_v55 }
 0x375   : > { %v2342_v54 = vpop.f32.mrf.mxu1  ;;  %v2750_v10 = vcombine.high %v2478_v53, %v2478_v53  ;;  %v2757_v52 = vrot.slane %v2478_v53, %v7760_v30  ;;  %v2477_v38 = vmax.f32 %v2445_v29, 0.0 }
 0x376   : > { %2390 = vst.msk [vmem:[#allocation3 + $0xe0] sm:$0xff] %vm2361_vm11, %v2342_v54 }
 0x377   : > { %v2764_v60 = vrot.slane %v2750_v10, %v7760_v30  ;;  %v2765_v49 = vcombine.high %v2757_v52, %v2757_v52  ;;  %v3566_v62 = vsel %vm3201_vm12, %v2757_v52, -inf  ;;  %v2740_v56 = vrot.slane %v2477_v38, %v7760_v30 }
 0x378   : > { %v3567_v24 = vrot.slane %v3566_v62, 4  ;;  %v2733_v20 = vcombine.high %v2477_v38, %v2477_v38 }
 0x379   : > { %v2766_v42 = vcombine.high %v2764_v60, %v2764_v60  ;;  %v3573_v7 = vsel %vm3201_vm12, %v2765_v49, -inf  ;;  %v3580_v35 = vsel %vm3201_vm12, %v2764_v60, -inf  ;;  %v3538_v31 = vsel %vm3201_vm12, %v2740_v56, -inf }
 0x37a   : > { %v4695_v6 = vpop.f32.mrf.mxu0  ;;  %v3574_v26 = vrot.slane %v3573_v7, 4  ;;  %v3581_v47 = vrot.slane %v3580_v35, 4  ;;  %v3568_v63 = vmax.f32 %v3566_v62, %v3567_v24  ;;  %v3539_v12 = vrot.slane %v3538_v31, 4 }
 0x37b   : > { %v2423_v46 = vld [vmem:[#allocation3 + $0xe8] sm:$0xff]  ;;  %2377 = vst.msk [vmem:[#allocation3 + $0x78] sm:$0xff] %vm2361_vm11, %v4695_v6  ;;  %v4719_v57 = vpop.f32.mrf.mxu1  ;;  %v3587_v58 = vsel %vm3201_vm12, %v2766_v42, -inf  ;;  %v2748_v51 = vcombine.high %v2740_v56, %v2740_v56  ;;  %v2747_v22 = vrot.slane %v2733_v20, %v7760_v30 }
 0x37c   : > { %v2462_v41 = vadd.f32 %v7250_v18, %v2423_v46  ;;  %2393 = vst.msk [vmem:[#allocation3 + $0xf8] sm:$0xff] %vm2361_vm11, %v4719_v57  ;;  %v2272_v0 = vpop.f32.mrf.mxu0  ;;  %v3575_v37 = vmax.f32 %v3573_v7, %v3574_v26  ;;  %v3588_v28 = vrot.slane %v3587_v58, 4  ;;  %v3582_v4 = vmax.f32 %v3580_v35, %v3581_v47 }
 0x37d   : > { %2376 = vst.msk [vmem:[#allocation3 + $0x70] sm:$0xff] %vm2361_vm11, %v2272_v0  ;;  %v2352_v50 = vpop.f32.mrf.mxu1  ;;  %v3569_v43 = vrot.slane %v3568_v63, 2  ;;  %v3540_v40 = vmax.f32 %v3538_v31, %v3539_v12  ;;  %v3545_v17 = vsel %vm3201_vm12, %v2748_v51, -inf  ;;  %v2749_v54 = vcombine.high %v2747_v22, %v2747_v22  ;;  %v2422_v62 = vld [vmem:[#allocation3 + $0xe0] sm:$0xff] }
 0x37e   : > { %v2494_v32 = vmax.f32 %v2462_v41, 0.0  ;;  %2392 = vst.msk [vmem:[#allocation3 + $0xf0] sm:$0xff] %vm2361_vm11, %v2352_v50  ;;  %v3589_v36 = vmax.f32 %v3587_v58, %v3588_v28  ;;  %v3576_v34 = vrot.slane %v3575_v37, 2  ;;  %v3583_v14 = vrot.slane %v3582_v4, 2 }
 0x37f   : > { %v3570_v5 = vmax.f32 %v3568_v63, %v3569_v43  ;;  %v3541_v53 = vrot.slane %v3540_v40, 2  ;;  %v3546_v10 = vrot.slane %v3545_v17, 4  ;;  %v3552_v42 = vsel %vm3201_vm12, %v2747_v22, -inf }
 0x380   : > { %v3022_v39 = vcombine.high %v2494_v32, %v2494_v32  ;;  %v3029_v21 = vrot.slane %v2494_v32, %v7760_v30  ;;  %v3590_v25 = vrot.slane %v3589_v36, 2  ;;  %v3577_v19 = vmax.f32 %v3575_v37, %v3576_v34 }
 0x381   : > { %v3584_v1 = vmax.f32 %v3582_v4, %v3583_v14  ;;  %v3571_v9 = vrot.slane %v3570_v5, 1  ;;  %v3542_v6 = vmax.f32 %v3540_v40, %v3541_v53  ;;  %v3547_v46 = vmax.f32 %v3545_v17, %v3546_v10 }
 0x382   : > { %v3036_v15 = vrot.slane %v3022_v39, %v7760_v30  ;;  %v3037_v8 = vcombine.high %v3029_v21, %v3029_v21  ;;  %v4014_v59 = vsel %vm3201_vm12, %v3029_v21, -inf  ;;  %v3591_v48 = vmax.f32 %v3589_v36, %v3590_v25  ;;  %v2409_v26 = vld [vmem:[#allocation3 + $0x78] sm:$0xff] }
 0x383   : > { %v4015_v44 = vrot.slane %v4014_v59, 4  ;;  %v3578_v45 = vrot.slane %v3577_v19, 1  ;;  %v3585_v13 = vrot.slane %v3584_v1, 1  ;;  %v3572_v29 = vmax.f32 %v3570_v5, %v3571_v9 }
 0x384   : > { %v3038_v3 = vcombine.high %v3036_v15, %v3036_v15  ;;  %v4021_v16 = vsel %vm3201_vm12, %v3037_v8, -inf  ;;  %v4028_v27 = vsel %vm3201_vm12, %v3036_v15, -inf  ;;  %v3592_v55 = vrot.slane %v3591_v48, 1 }
 0x385   : > { %v4016_v2 = vmax.f32 %v4014_v59, %v4015_v44  ;;  %v4022_v11 = vrot.slane %v4021_v16, 4  ;;  %v4029_v33 = vrot.slane %v4028_v27, 4  ;;  %v3579_v38 = vmax.f32 %v3577_v19, %v3578_v45 }
 0x386   : > { %v4035_v61 = vsel %vm3201_vm12, %v3038_v3, -inf  ;;  %v3586_v24 = vmax.f32 %v3584_v1, %v3585_v13  ;;  %v3593_v7 = vmax.f32 %v3591_v48, %v3592_v55  ;;  %v7281_v47 = vsel %vm2361_vm11, %v3572_v29, -inf  ;;  %v2425_v13 = vld [vmem:[#allocation3 + $0xf8] sm:$0xff] }
 0x387   : > { %v4036_v23 = vrot.slane %v4035_v61, 4  ;;  %v4017_v52 = vrot.slane %v4016_v2, 2  ;;  %v4023_v60 = vmax.f32 %v4021_v16, %v4022_v11  ;;  %v4030_v49 = vmax.f32 %v4028_v27, %v4029_v33 }
 0x388   : > { %v3559_v57 = vsel %vm3201_vm12, %v2749_v54, -inf  ;;  %v2461_v63 = vadd.f32 %v7250_v18, %v2422_v62  ;;  %v3553_v0 = vrot.slane %v3552_v42, 4  ;;  %v7286_v37 = vsel %vm2361_vm11, %v3579_v38, -inf }
 0x389   : > { %v7278_v35 = vmax.f32 %v4035_v61, %v4036_v23  ;;  %v4018_v58 = vmax.f32 %v4016_v2, %v4017_v52  ;;  %v4024_v41 = vrot.slane %v4023_v60, 2  ;;  %v4031_v56 = vrot.slane %v4030_v49, 2 }
 0x38a   : > { %v7289_v28 = vsel %vm2361_vm11, %v3586_v24, -inf  ;;  %v2493_v50 = vmax.f32 %v2461_v63, 0.0  ;;  %v2448_v4 = vadd.f32 %v7250_v18, %v2409_v26  ;;  %v7293_v32 = vsel %vm2361_vm11, %v3593_v7, -inf }
 0x38b   : > { %v4038_v36 = vrot.slane %v7278_v35, 2  ;;  %v3543_v43 = vrot.slane %v3542_v6, 1  ;;  %v3560_v39 = vrot.slane %v3559_v57, 4  ;;  %v3548_v21 = vrot.slane %v3547_v46, 2 }
 0x38c   : > { %v3005_v31 = vcombine.high %v2493_v50, %v2493_v50  ;;  %v3012_v34 = vrot.slane %v2493_v50, %v7760_v30  ;;  %v2480_v14 = vmax.f32 %v2448_v4, 0.0  ;;  %v4019_v15 = vrot.slane %v4018_v58, 1 }
 0x38d   : > { %v7297_v8 = vmax.f32 %v4023_v60, %v4024_v41  ;;  %v7299_v59 = vmax.f32 %v4030_v49, %v4031_v56  ;;  %v3554_v25 = vmax.f32 %v3552_v42, %v3553_v0  ;;  %v3544_v44 = vmax.f32 %v3542_v6, %v3543_v43 }
 0x38e   : > { %v3019_v12 = vrot.slane %v3005_v31, %v7760_v30  ;;  %v3020_v5 = vcombine.high %v3012_v34, %v3012_v34  ;;  %v3986_v3 = vsel %vm3201_vm12, %v3012_v34, -inf  ;;  %v2784_v20 = vcombine.high %v2480_v14, %v2480_v14 }
 0x38f   : > { %v3561_v51 = vmax.f32 %v3559_v57, %v3560_v39  ;;  %v3987_v19 = vrot.slane %v3986_v3, 4  ;;  %v2791_v1 = vrot.slane %v2480_v14, %v7760_v30  ;;  %v3549_v9 = vmax.f32 %v3547_v46, %v3548_v21 }
 0x390   : > { %v3021_v16 = vcombine.high %v3019_v12, %v3019_v12  ;;  %v3993_v27 = vsel %vm3201_vm12, %v3020_v5, -inf  ;;  %v4000_v48 = vsel %vm3201_vm12, %v3019_v12, -inf  ;;  %v2798_v40 = vrot.slane %v2784_v20, %v7760_v30 }
 0x391   : > { %v3555_v61 = vrot.slane %v3554_v25, 2  ;;  %v3994_v22 = vrot.slane %v3993_v27, 4  ;;  %v4001_v2 = vrot.slane %v4000_v48, 4  ;;  %v2799_v33 = vcombine.high %v2791_v1, %v2791_v1 }
 0x392   : > { %v4007_v11 = vsel %vm3201_vm12, %v3021_v16, -inf  ;;  %v2800_v17 = vcombine.high %v2798_v40, %v2798_v40  ;;  %v3622_v45 = vsel %vm3201_vm12, %v2791_v1, -inf  ;;  %v3562_v55 = vrot.slane %v3561_v51, 2 }
 0x393   : > { %v3988_v23 = vmax.f32 %v3986_v3, %v3987_v19  ;;  %v3995_v53 = vmax.f32 %v3993_v27, %v3994_v22  ;;  %v4008_v29 = vrot.slane %v4007_v11, 4  ;;  %v4002_v54 = vmax.f32 %v4000_v48, %v4001_v2 }
 0x394   : > { %v3623_v10 = vrot.slane %v3622_v45, 4  ;;  %v3629_v52 = vsel %vm3201_vm12, %v2799_v33, -inf  ;;  %v3636_v60 = vsel %vm3201_vm12, %v2798_v40, -inf  ;;  %v3550_v49 = vrot.slane %v3549_v9, 1 }
 0x395   : > { %v4009_v62 = vmax.f32 %v4007_v11, %v4008_v29  ;;  %v3643_v38 = vsel %vm3201_vm12, %v2800_v17, -inf  ;;  %v2464_v24 = vadd.f32 %v7250_v18, %v2425_v13  ;;  %v3556_v42 = vmax.f32 %v3554_v25, %v3555_v61 }
 0x396   : > { %v3624_v7 = vmax.f32 %v3622_v45, %v3623_v10  ;;  %v3630_v6 = vrot.slane %v3629_v52, 4  ;;  %v3637_v26 = vrot.slane %v3636_v60, 4  ;;  %v7313_v46 = vmax.f32 %v4018_v58, %v4019_v15  ;;  %v2408_v15 = vld [vmem:[#allocation3 + $0x70] sm:$0xff] }
 0x397   : > { %v7316_v57 = vmax.f32 %v7278_v35, %v4038_v36  ;;  %v3563_v63 = vmax.f32 %v3561_v51, %v3562_v55  ;;  %v3989_v41 = vrot.slane %v3988_v23, 2  ;;  %v3996_v56 = vrot.slane %v3995_v53, 2  ;;  %v2424_v55 = vld [vmem:[#allocation3 + $0xf0] sm:$0xff] }
 0x398   : > { %v4003_v0 = vrot.slane %v4002_v54, 2  ;;  %v3631_v50 = vmax.f32 %v3629_v52, %v3630_v6  ;;  %v3644_v4 = vrot.slane %v3643_v38, 4  ;;  %v4026_v43 = vrot.slane %v7297_v8, 1 }
 0x399   : > { %v4033_v39 = vrot.slane %v7299_v59, 1  ;;  %v4010_v21 = vrot.slane %v4009_v62, 2  ;;  %v2496_v31 = vmax.f32 %v2464_v24, 0.0  ;;  %v3551_v34 = vmax.f32 %v3549_v9, %v3550_v49 }
 0x39a   : > { %v3557_v14 = vrot.slane %v3556_v42, 1  ;;  %v3625_v25 = vrot.slane %v3624_v7, 2  ;;  %v3638_v58 = vmax.f32 %v3636_v60, %v3637_v26  ;;  %v4040_v35 = vrot.slane %v7316_v57, 1 }
 0x39b   : > { %v3564_v36 = vrot.slane %v3563_v63, 1  ;;  %v7322_v12 = vsel %vm2361_vm11, %v3544_v44, -inf  ;;  %v3990_v5 = vmax.f32 %v3988_v23, %v3989_v41  ;;  %v3997_v3 = vmax.f32 %v3995_v53, %v3996_v56 }
 0x39c   : > { %v4004_v20 = vmax.f32 %v4002_v54, %v4003_v0  ;;  %v3632_v51 = vrot.slane %v3631_v50, 2  ;;  %v3645_v19 = vmax.f32 %v3643_v38, %v3644_v4  ;;  %v7325_v1 = vmax.f32 %v7297_v8, %v4026_v43 }
 0x39d   : > { %v4011_v16 = vmax.f32 %v4009_v62, %v4010_v21  ;;  %v3056_v27 = vcombine.high %v2496_v31, %v2496_v31  ;;  %v2447_v48 = vadd.f32 %v7250_v18, %v2408_v15  ;;  %v3558_v40 = vmax.f32 %v3556_v42, %v3557_v14 }
 0x39e   : > { %v7329_v9 = vsel %vm2361_vm11, %v3551_v34, -inf  ;;  %v3626_v61 = vmax.f32 %v3624_v7, %v3625_v25  ;;  %v3639_v22 = vrot.slane %v3638_v58, 2  ;;  %v3565_v44 = vmax.f32 %v3563_v63, %v3564_v36 }
 0x39f   : > { %v3991_v2 = vrot.slane %v3990_v5, 1  ;;  %v3063_v11 = vrot.slane %v2496_v31, %v7760_v30  ;;  %v3070_v33 = vrot.slane %v3056_v27, %v7760_v30  ;;  %v3998_v17 = vrot.slane %v3997_v3, 1 }
 0x3a0   : > { %v4005_v45 = vrot.slane %v4004_v20, 1  ;;  %v3633_v8 = vmax.f32 %v3631_v50, %v3632_v51  ;;  %v3646_v13 = vrot.slane %v3645_v19, 2  ;;  %v4012_v23 = vrot.slane %v4011_v16, 1 }
 0x3a1   : > { %v3071_v53 = vcombine.high %v3063_v11, %v3063_v11  ;;  %v4070_v29 = vsel %vm3201_vm12, %v3063_v11, -inf  ;;  %v2479_v54 = vmax.f32 %v2447_v48, 0.0  ;;  %v7335_v10 = vsel %vm2361_vm11, %v3558_v40, -inf }
 0x3a2   : > { %v3627_v52 = vrot.slane %v3626_v61, 1  ;;  %v3640_v60 = vmax.f32 %v3638_v58, %v3639_v22  ;;  %v4071_v49 = vrot.slane %v4070_v29, 4  ;;  %v7338_v62 = vsel %vm2361_vm11, %v3565_v44, -inf }
 0x3a3   : > { %v7340_v38 = vmax.f32 %v3990_v5, %v3991_v2  ;;  %v3072_v24 = vcombine.high %v3070_v33, %v3070_v33  ;;  %v2463_v42 = vadd.f32 %v7250_v18, %v2424_v55  ;;  %v7343_v7 = vmax.f32 %v3997_v3, %v3998_v17 }
 0x3a4   : > { %v7345_v6 = vmax.f32 %v4004_v20, %v4005_v45  ;;  %v3634_v26 = vrot.slane %v3633_v8, 1  ;;  %v3647_v63 = vmax.f32 %v3645_v19, %v3646_v13  ;;  %v7347_v41 = vmax.f32 %v4011_v16, %v4012_v23 }
 0x3a5   : > { %v4077_v56 = vsel %vm3201_vm12, %v3071_v53, -inf  ;;  %v2767_v0 = vcombine.high %v2479_v54, %v2479_v54  ;;  %v2774_v50 = vrot.slane %v2479_v54, %v7760_v30  ;;  %v3628_v4 = vmax.f32 %v3626_v61, %v3627_v52 }
 0x3a6   : > { %v3641_v43 = vrot.slane %v3640_v60, 1  ;;  %v4072_v21 = vmax.f32 %v4070_v29, %v4071_v49  ;;  %v4084_v31 = vsel %vm3201_vm12, %v3070_v33, -inf  ;;  %v4091_v18 = vsel %vm3201_vm12, %v3072_v24, -inf }
 0x3a7   : > { %v2781_v34 = vrot.slane %v2767_v0, %v7760_v30  ;;  %v2782_v14 = vcombine.high %v2774_v50, %v2774_v50  ;;  %v3594_v25 = vsel %vm3201_vm12, %v2774_v50, -inf  ;;  %v3635_v58 = vmax.f32 %v3633_v8, %v3634_v26 }
 0x3a8   : > { %v3648_v15 = vrot.slane %v3647_v63, 1  ;;  %v4078_v36 = vrot.slane %v4077_v56, 4  ;;  %v3595_v5 = vrot.slane %v3594_v25, 4  ;;  %v4085_v3 = vrot.slane %v4084_v31, 4 }
 0x3a9   : > { %v2783_v20 = vcombine.high %v2781_v34, %v2781_v34  ;;  %v3601_v51 = vsel %vm3201_vm12, %v2782_v14, -inf  ;;  %v3608_v19 = vsel %vm3201_vm12, %v2781_v34, -inf  ;;  %v3642_v16 = vmax.f32 %v3640_v60, %v3641_v43 }
 0x3aa   : > { %v7358_v27 = vsel %vm2361_vm11, %v3628_v4, -inf  ;;  %v4092_v48 = vrot.slane %v4091_v18, 4  ;;  %v3596_v40 = vmax.f32 %v3594_v25, %v3595_v5  ;;  %v4073_v61 = vrot.slane %v4072_v21, 2 }
 0x3ab   : > { %v3602_v22 = vrot.slane %v3601_v51, 4  ;;  %v3609_v44 = vrot.slane %v3608_v19, 4  ;;  %v3615_v2 = vsel %vm3201_vm12, %v2783_v20, -inf  ;;  %v3649_v11 = vmax.f32 %v3647_v63, %v3648_v15 }
 0x3ac   : > { %v7362_v33 = vsel %vm2361_vm11, %v3635_v58, -inf  ;;  %v4079_v17 = vmax.f32 %v4077_v56, %v4078_v36  ;;  %v3597_v45 = vrot.slane %v3596_v40, 2  ;;  %v4086_v8 = vmax.f32 %v4084_v31, %v4085_v3 }
 0x3ad   : > { %v3603_v13 = vmax.f32 %v3601_v51, %v3602_v22  ;;  %v3610_v55 = vmax.f32 %v3608_v19, %v3609_v44  ;;  %v3616_v23 = vrot.slane %v3615_v2, 4  ;;  %v4184_v53 = vmax.f32 %v7281_v47, %v7358_v27 }
 0x3ae   : > { %v7367_v29 = vsel %vm2361_vm11, %v3642_v16, -inf  ;;  %v3598_v54 = vmax.f32 %v3596_v40, %v3597_v45  ;;  %v2495_v52 = vmax.f32 %v2463_v42, 0.0  ;;  %v4074_v60 = vmax.f32 %v4072_v21, %v4073_v61 }
 0x3af   : > { %v4093_v49 = vmax.f32 %v4091_v18, %v4092_v48  ;;  %v3604_v24 = vrot.slane %v3603_v13, 2  ;;  %v3611_v26 = vrot.slane %v3610_v55, 2  ;;  %v4187_v63 = vmax.f32 %v7286_v37, %v7362_v33 }
 0x3b0   : > { %v7372_v56 = vsel %vm2361_vm11, %v3649_v11, -inf  ;;  %v3599_v0 = vrot.slane %v3598_v54, 1  ;;  %v3617_v50 = vmax.f32 %v3615_v2, %v3616_v23  ;;  %v4190_v4 = vmax.f32 %v7289_v28, %v7367_v29 }
 0x3b1   : > { %v4080_v43 = vrot.slane %v4079_v17, 2  ;;  %v4087_v31 = vrot.slane %v4086_v8, 2  ;;  %v3605_v34 = vmax.f32 %v3603_v13, %v3604_v24  ;;  %v3612_v42 = vmax.f32 %v3610_v55, %v3611_v26 }
 0x3b2   : > { %v3600_v14 = vmax.f32 %v3598_v54, %v3599_v0  ;;  %v3618_v21 = vrot.slane %v3617_v50, 2  ;;  %v3039_v18 = vcombine.high %v2495_v52, %v2495_v52  ;;  %v4075_v25 = vrot.slane %v4074_v60, 1 }
 0x3b3   : > { %v4094_v58 = vrot.slane %v4093_v49, 2  ;;  %v3606_v15 = vrot.slane %v3605_v34, 1  ;;  %v3046_v36 = vrot.slane %v2495_v52, %v7760_v30  ;;  %v3613_v5 = vrot.slane %v3612_v42, 1 }
 0x3b4   : > { %v3619_v3 = vmax.f32 %v3617_v50, %v3618_v21  ;;  %v4171_v20 = vsel %vm2361_vm11, %v3600_v14, -inf  ;;  %v3053_v51 = vrot.slane %v3039_v18, %v7760_v30  ;;  %v4081_v19 = vmax.f32 %v4079_v17, %v4080_v43 }
 0x3b5   : > { %v3607_v16 = vmax.f32 %v3605_v34, %v3606_v15  ;;  %v3054_v48 = vcombine.high %v3046_v36, %v3046_v36  ;;  %v4042_v40 = vsel %vm3201_vm12, %v3046_v36, -inf  ;;  %v3614_v61 = vmax.f32 %v3612_v42, %v3613_v5 }
 0x3b6   : > { %v3620_v22 = vrot.slane %v3619_v3, 1  ;;  %v3055_v44 = vcombine.high %v3053_v51, %v3053_v51  ;;  %v4043_v2 = vrot.slane %v4042_v40, 4  ;;  %v4172_v11 = vmax.f32 %v7322_v12, %v4171_v20 }
 0x3b7   : > { %v4174_v45 = vsel %vm2361_vm11, %v3607_v16, -inf  ;;  %v4049_v13 = vsel %vm3201_vm12, %v3054_v48, -inf  ;;  %v4056_v55 = vsel %vm3201_vm12, %v3053_v51, -inf  ;;  %v4177_v17 = vsel %vm2361_vm11, %v3614_v61, -inf }
 0x3b8   : > { %v3621_v23 = vmax.f32 %v3619_v3, %v3620_v22  ;;  %v4175_v30 = vmax.f32 %v7329_v9, %v4174_v45  ;;  %v4044_v54 = vmax.f32 %v4042_v40, %v4043_v2  ;;  %v4178_v52 = vmax.f32 %v7335_v10, %v4177_v17 }
 0x3b9   : > { %v4050_v24 = vrot.slane %v4049_v13, 4  ;;  %v4057_v26 = vrot.slane %v4056_v55, 4  ;;  %v4063_v0 = vsel %vm3201_vm12, %v3055_v44, -inf  ;;  %v4088_v18 = vmax.f32 %v4086_v8, %v4087_v31 }
 0x3ba   : > { %v4180_v12 = vsel %vm2361_vm11, %v3621_v23, -inf  ;;  %v4382_v50 = vsel %vm4354_vm13, %v4175_v30, %v4172_v11  ;;  %v4045_v43 = vrot.slane %v4044_v54, 2  ;;  %v4064_v34 = vrot.slane %v4063_v0, 4 }
 0x3bb   : > { %v4181_v14 = vmax.f32 %v7338_v62, %v4180_v12  ;;  %v4383_v42 = vsel %vm4356_vm14, %v4178_v52, %v4382_v50  ;;  %v4051_v9 = vmax.f32 %v4049_v13, %v4050_v24  ;;  %v4058_v21 = vmax.f32 %v4056_v55, %v4057_v26 }
 0x3bc   : > { %v4046_v15 = vmax.f32 %v4044_v54, %v4045_v43  ;;  %v4065_v36 = vmax.f32 %v4063_v0, %v4064_v34  ;;  %v4193_v10 = vmax.f32 %v7293_v32, %v7372_v56  ;;  %v4095_v5 = vmax.f32 %v4093_v49, %v4094_v58 }
 0x3bd   : > { %v4052_v3 = vrot.slane %v4051_v9, 2  ;;  %v4059_v20 = vrot.slane %v4058_v21, 2  ;;  %v4384_v51 = vsel %vm4358_vm15, %v4181_v14, %v4383_v42  ;;  %v4076_v16 = vmax.f32 %v4074_v60, %v4075_v25 }
 0x3be   : > { %v4047_v48 = vrot.slane %v4046_v15, 1  ;;  %v4066_v40 = vrot.slane %v4065_v36, 2  ;;  %v4385_v62 = vsel %vm4360_vm0, %v4184_v53, %v4384_v51  ;;  %v4082_v61 = vrot.slane %v4081_v19, 1 }
 0x3bf   : > { %v4053_v8 = vmax.f32 %v4051_v9, %v4052_v3  ;;  %v4060_v31 = vmax.f32 %v4058_v21, %v4059_v20  ;;  %v4386_v32 = vsel %vm4362_vm1, %v4187_v63, %v4385_v62  ;;  %v4089_v49 = vrot.slane %v4088_v18, 1 }
 0x3c0   : > { %v4048_v56 = vmax.f32 %v4046_v15, %v4047_v48  ;;  %v4067_v58 = vmax.f32 %v4065_v36, %v4066_v40  ;;  %v4387_v60 = vsel %vm4364_vm2, %v4190_v4, %v4386_v32  ;;  %v4096_v47 = vrot.slane %v4095_v5, 1 }
 0x3c1   : > { %v4054_v27 = vrot.slane %v4053_v8, 1  ;;  %v4061_v53 = vrot.slane %v4060_v31, 1  ;;  %v4388_v25 = vsel %vm4366_vm3, %v4193_v10, %v4387_v60  ;;  %v4034_v22 = vmax.f32 %v7299_v59, %v4033_v39 }
 0x3c2   : > { %v4266_v37 = vsel %vm2361_vm11, %v7340_v38, -inf  ;;  %v4269_v33 = vsel %vm2361_vm11, %v7343_v7, -inf  ;;  %v4068_v63 = vrot.slane %v4067_v58, 1  ;;  %4428 = vst.msk [vmem:[%s7136_s9 + $0x18] sm:$0xff] %vm2361_vm11, %v4388_v25  ;;  %v4083_v28 = vmax.f32 %v4081_v19, %v4082_v61 }
 0x3c3   : > { %v4055_v29 = vmax.f32 %v4053_v8, %v4054_v27  ;;  %v4062_v4 = vmax.f32 %v4060_v31, %v4061_v53  ;;  %v4267_v44 = vsel %vm2361_vm11, %v4048_v56, -inf  ;;  %v4272_v2 = vsel %vm2361_vm11, %v7345_v6, -inf }
 0x3c4   : > { %v4275_v59 = vsel %vm2361_vm11, %v7347_v41, -inf  ;;  %v4090_v39 = vmax.f32 %v4088_v18, %v4089_v49  ;;  %v4069_v11 = vmax.f32 %v4067_v58, %v4068_v63  ;;  %v4097_v38 = vmax.f32 %v4095_v5, %v4096_v47 }
 0x3c5   : > { %v4279_v45 = vsel %vm2361_vm11, %v4076_v16, -inf  ;;  %v4270_v7 = vsel %vm2361_vm11, %v4055_v29, -inf  ;;  %v4273_v19 = vsel %vm2361_vm11, %v4062_v4, -inf  ;;  %v4268_v13 = vmax.f32 %v4266_v37, %v4267_v44 }
 0x3c6   : > { %v4271_v55 = vmax.f32 %v4269_v33, %v4270_v7  ;;  %v4274_v23 = vmax.f32 %v4272_v2, %v4273_v19  ;;  %v4276_v30 = vsel %vm2361_vm11, %v4069_v11, -inf  ;;  %v4041_v6 = vmax.f32 %v7316_v57, %v4040_v35 }
 0x3c7   : > { %v4282_v41 = vsel %vm2361_vm11, %v4083_v28, -inf  ;;  %v4277_v17 = vmax.f32 %v4275_v59, %v4276_v30  ;;  %v4278_v54 = vsel %vm2361_vm11, %v7313_v46, -inf  ;;  %v4285_v52 = vsel %vm2361_vm11, %v4090_v39, -inf }
 0x3c8   : > { %v4410_v24 = vsel %vm4354_vm13, %v4271_v55, %v4268_v13  ;;  %v4281_v26 = vsel %vm2361_vm11, %v7325_v1, -inf  ;;  %v4280_v0 = vmax.f32 %v4278_v54, %v4279_v45  ;;  %v4288_v12 = vsel %vm2361_vm11, %v4097_v38, -inf }
 0x3c9   : > { %v4411_v50 = vsel %vm4356_vm14, %v4274_v23, %v4410_v24  ;;  %v4284_v57 = vsel %vm2361_vm11, %v4034_v22, -inf  ;;  %v4283_v46 = vmax.f32 %v4281_v26, %v4282_v41  ;;  %v4287_v43 = vsel %vm2361_vm11, %v4041_v6, -inf }
 0x3ca   : > { %v4412_v35 = vsel %vm4358_vm15, %v4277_v17, %v4411_v50  ;;  %v4286_v34 = vmax.f32 %v4284_v57, %v4285_v52  ;;  %v4289_v14 = vmax.f32 %v4287_v43, %v4288_v12 }
 0x3cb   : > { %v4413_v1 = vsel %vm4360_vm0, %v4280_v0, %v4412_v35 }
 0x3cc   : > { %v4414_v42 = vsel %vm4362_vm1, %v4283_v46, %v4413_v1 }
 0x3cd   : > { %v4415_v9 = vsel %vm4364_vm2, %v4286_v34, %v4414_v42 }
 0x3ce   : > { %v4416_v21 = vsel %vm4366_vm3, %v4289_v14, %v4415_v9 }
 0x3cf   : > { %4432 = vst.msk [vmem:[%s7136_s9 + $0x38] sm:$0xff] %vm2361_vm11, %v4416_v21 }
 0x3d0   : > { %4826 = shalt.err (!%p4823_p5)
}
 0x3d1   : > { %s4827_s25 = scalar_lea.hbm %s7448_s12, 1024  ;;  %s4831_s9 = scalar_lea.hbm %s7508_s5, 2048 }
 0x3d2   : > { %p4828_p6 = scmp.ne.s32.totalorder %s7448_s12, %s4827_s25  ;;  %p4832_p10 = scmp.lt.s32.totalorder %s7448_s12, %s7508_s5 }
 0x3d3   : > { %p4833_p11 = scmp.lt.s32.totalorder %s4831_s9, %s4827_s25 }
 0x3d4   : > { %p4829_p7 = pnand %p4828_p6, %p4974_p4 }
 0x3d5   : > { %p4834_p12 = por %p4833_p11, %p4832_p10 }
 0x3d6   : > { %p4830_p9 = pneg %p4829_p7 }
 0x3d8   : > { %p4835_p13 = pnand %p4834_p12, %p4830_p9 }
 0x3da   : > { %4838 = shalt.err (!%p4835_p13)
}
 0x3db   : > { %s4902_s17 = smov 128   ;;  %s4903_s11 = smov 8  }
 0x3dc   : > { %4728 = dma.vmem_to_hbm [thread:$0]  (%p4974_p4), %s7450_s10, 1024, %s7448_s12, %s7458_s21, %s4902_s17, %s4902_s17, %s4903_s11  }
 0x3dd PF: > { %p4734_p0 = scmp.ge.s32.totalorder %s4889_s23, 2  ;;  %s4464_s15 = sand.u32 1, %s4869_s18  }
 0x3de   : > { %s4465_s13 = scalar_lea.sflag [#allocation5], %s4464_s15 }
 0x3df   : > { %p4731_p1 = pnand %p4734_p0, %p4981_p8 }
 0x3e1   : > { %p4732_p2 = pneg %p4731_p1 }
 0x3e3   : > { %4864 = dma.done.wait (%p4732_p2), %s4465_s13, 1024  }
 0x3e4   : > { %4866 = vsyncadd (%p4732_p2), %s4465_s13, 4294966272  ;;  %s18_s23 = sadd.s32 1, %s4889_s23   ;;  %s7761_s18 = smov %s4873_s19 }
 0x3e5   : > { %p15_p3 = scmp.ge.s32.totalorder %s18_s23, 4   ;;  %s7762_s19 = smov %s4877_s20 }
 0x3e6   : > { %s7763_s20 = smov %s4987_s6  ;;  %s7764_s21 = smov %s4885_s22 }
 0x3e7   : > { %s7765_s22 = smov %s7767_s26  ;;  %17 = sbr.rel (!%p15_p3) target bundleno = 4 (0x4), region = 84 }
 0x3ec   :  { %4470 = vsyncpa [#allocation5], 1 }
 0x3ed   :  { %4472 = vsyncpa [#allocation5 + $0x1], 1 }

</bundles_post_ra>
